<compile_context>
chip_gen: v7x
topology: tpu7x:2x2x1
jax: 0.10.0
libtpu: 0.0.40
codegen_flags: <defaults>
</compile_context>

<pallas_src>
import math

import jax
import jax.numpy as jnp
from jax.experimental import pallas as pl
from jax.experimental.pallas import tpu as pltpu

# ---------------- model config (small, self-consistent) ----------------
VOCAB = 100
MAX_POS = 16
TYPE_VOCAB = 2
HIDDEN = 32
NUM_LAYERS = 2
NUM_HEADS = 2
HEAD_DIM = HIDDEN // NUM_HEADS
INTERMEDIATE = 64
NUM_LABELS = 5
PAD_LABELS = 128          # lane-dense classifier output (unmasked 128-lane store)
LN_EPS = 1e-12
ATTN_SCALE = 1.0 / math.sqrt(HEAD_DIM)
B_BLK = 8                 # batch elements per grid step -> B_BLK*S MXU rows (64 for S=8)


# ---------------- in-kernel helpers ----------------
def _layernorm(x, g, b):
    mean = jnp.mean(x, axis=-1, keepdims=True)
    var = jnp.mean(jnp.square(x - mean), axis=-1, keepdims=True)
    return (x - mean) * jax.lax.rsqrt(var + LN_EPS) * g + b


def _mm(a, w):
    """MXU matmul: bf16 operands, f32 accumulation (w already bf16)."""
    return jnp.dot(a.astype(jnp.bfloat16), w, preferred_element_type=jnp.float32)


# ---------------- fused Pallas kernel (one grid step == one batch block) ----------------
def _bert_kernel(ids_ref, mask_ref,
                 word_ref, pos_ref, type_ref,
                 emb_g_ref, emb_b_ref,
                 qkv_w_ref, qkv_b_ref, o_w_ref, o_b_ref,
                 ln1_g_ref, ln1_b_ref,
                 i_w_ref, i_b_ref, f_w_ref, f_b_ref,
                 ln2_g_ref, ln2_b_ref,
                 pool_w_ref, pool_b_ref, cls_w_ref, cls_b_ref,
                 out_ref):
    b_blk, S = mask_ref.shape
    BS = b_blk * S

    # ---- fused embeddings: word gather as a one-hot matmul on the MXU ----
    ids = ids_ref[...]                                                   # (BS, 1) int32
    onehot = jax.lax.broadcasted_iota(jnp.int32, (BS, VOCAB), 1) == ids  # (BS, VOCAB)
    word = jnp.dot(onehot.astype(jnp.bfloat16), word_ref[...],
                   preferred_element_type=jnp.float32)                   # (BS, H)
    pos = jnp.tile(pos_ref[0:S, :], (b_blk, 1))                          # (BS, H)
    x = word + pos + type_ref[0:1, :]                                    # token_type_ids == 0
    h = _layernorm(x, emb_g_ref[...], emb_b_ref[...])                    # (BS, H)

    # additive key mask, broadcast ONCE (hoisted out of layer/head loops)
    amask = (1.0 - mask_ref[...].astype(jnp.float32)) * -10000.0         # (b_blk, S)
    amask_b = jnp.broadcast_to(amask[:, None, :], (b_blk, S, S))         # (b_blk, S, S)

    for li in range(NUM_LAYERS):                  # static unroll
        # ---- self attention: fused QKV over the whole batch block ----
        qkv = _mm(h, qkv_w_ref[li]) + qkv_b_ref[li]                      # (BS, 3H)
        qkv3 = qkv.reshape(b_blk, S, 3 * HIDDEN)                         # leading-dim split only
        ctx_heads = []
        for hh in range(NUM_HEADS):               # static unroll
            lo = hh * HEAD_DIM
            q = qkv3[:, :, lo:lo + HEAD_DIM]                             # (b, S, Dh)
            k = qkv3[:, :, HIDDEN + lo:HIDDEN + lo + HEAD_DIM]
            v = qkv3[:, :, 2 * HIDDEN + lo:2 * HIDDEN + lo + HEAD_DIM]
            s = jnp.einsum('bqd,bkd->bqk',
                           q.astype(jnp.bfloat16), k.astype(jnp.bfloat16),
                           preferred_element_type=jnp.float32) * ATTN_SCALE
            s = s + amask_b
            s = s - jnp.max(s, axis=-1, keepdims=True)
            p = jnp.exp(s)
            p = p * pl.reciprocal(jnp.sum(p, axis=-1, keepdims=True), approx=True)
            ctx_heads.append(
                jnp.einsum('bqk,bkd->bqd', p.astype(jnp.bfloat16),
                           v.astype(jnp.bfloat16),
                           preferred_element_type=jnp.float32))          # (b, S, Dh)
        # concat heads -> single output projection (one MXU pass, no per-head accumulation)
        ctx = jnp.concatenate(ctx_heads, axis=-1).reshape(BS, HIDDEN)
        attn = _mm(ctx, o_w_ref[li]) + o_b_ref[li]                       # (BS, H)
        h = _layernorm(attn + h, ln1_g_ref[li], ln1_b_ref[li])

        # ---- feed forward ----
        inter = _mm(h, i_w_ref[li]) + i_b_ref[li]                        # (BS, I)
        # TODO(synk): HF BERT uses exact erf-GELU; tanh-approx GELU used for safe Mosaic lowering.
        inter = jax.nn.gelu(inter, approximate=True)
        ffn = _mm(inter, f_w_ref[li]) + f_b_ref[li]                      # (BS, H)
        h = _layernorm(ffn + h, ln2_g_ref[li], ln2_b_ref[li])

    # ---- pooler (CLS row of every batch element) + classifier + sigmoid ----
    # dropout(p=0.3) is an inference-time identity
    cls = h.reshape(b_blk, S, HIDDEN)[:, 0, :]                           # (b_blk, H)
    pooled = jnp.tanh(_mm(cls, pool_w_ref[...]) + pool_b_ref[...])       # (b_blk, H)
    logits = _mm(pooled, cls_w_ref[...]) + cls_b_ref[...]                # (b_blk, 128)
    out_ref[...] = jax.nn.sigmoid(logits)                                # unmasked (8,128) store


def _full_spec(shape):
    """Whole-array VMEM block, invariant across the batch-block grid."""
    return pl.BlockSpec(shape, lambda *_: (0,) * len(shape))


# ---------------- parameter construction (deterministic) ----------------
def init_params(key):
    def nrm(k, shape):
        return (jax.random.normal(k, shape, jnp.float32) * 0.02).astype(jnp.float32)

    keys = jax.random.split(key, 8 + NUM_LAYERS)
    p = {
        "word_emb": nrm(keys[0], (VOCAB, HIDDEN)),
        "pos_emb": nrm(keys[1], (MAX_POS, HIDDEN)),
        "type_emb": nrm(keys[2], (TYPE_VOCAB, HIDDEN)),
        "emb_ln_g": jnp.ones((HIDDEN,), jnp.float32),
        "emb_ln_b": jnp.zeros((HIDDEN,), jnp.float32),
        "pooler_w": nrm(keys[3], (HIDDEN, HIDDEN)),
        "pooler_b": jnp.zeros((HIDDEN,), jnp.float32),
        "cls_w": nrm(keys[4], (HIDDEN, NUM_LABELS)),
        "cls_b": jnp.zeros((NUM_LABELS,), jnp.float32),
        "layers": [],
    }
    for li in range(NUM_LAYERS):
        lk = jax.random.split(keys[8 + li], 6)
        p["layers"].append({
            "q_w": nrm(lk[0], (HIDDEN, HIDDEN)), "q_b": jnp.zeros((HIDDEN,), jnp.float32),
            "k_w": nrm(lk[1], (HIDDEN, HIDDEN)), "k_b": jnp.zeros((HIDDEN,), jnp.float32),
            "v_w": nrm(lk[2], (HIDDEN, HIDDEN)), "v_b": jnp.zeros((HIDDEN,), jnp.float32),
            "o_w": nrm(lk[3], (HIDDEN, HIDDEN)), "o_b": jnp.zeros((HIDDEN,), jnp.float32),
            "ln1_g": jnp.ones((HIDDEN,), jnp.float32), "ln1_b": jnp.zeros((HIDDEN,), jnp.float32),
            "i_w": nrm(lk[4], (HIDDEN, INTERMEDIATE)), "i_b": jnp.zeros((INTERMEDIATE,), jnp.float32),
            "f_w": nrm(lk[5], (INTERMEDIATE, HIDDEN)), "f_b": jnp.zeros((HIDDEN,), jnp.float32),
            "ln2_g": jnp.ones((HIDDEN,), jnp.float32), "ln2_b": jnp.zeros((HIDDEN,), jnp.float32),
        })
    return p


def pack_params(p):
    """Fuse per-layer Q/K/V, stack layers, cast matmul weights to bf16,
    reshape biases to (·, 1, N), pad classifier to 128 lanes."""
    layers = p["layers"]
    bf = lambda a: a.astype(jnp.bfloat16)
    sw = lambda name: bf(jnp.stack([lp[name] for lp in layers]))             # (L, K, N) bf16
    sb = lambda name: jnp.stack([lp[name] for lp in layers])[:, None, :]     # (L, 1, N) f32
    qkv_w = bf(jnp.stack([jnp.concatenate([lp["q_w"], lp["k_w"], lp["v_w"]], axis=1)
                          for lp in layers]))                                # (L, H, 3H)
    qkv_b = jnp.stack([jnp.concatenate([lp["q_b"], lp["k_b"], lp["v_b"]])
                       for lp in layers])[:, None, :]                        # (L, 1, 3H)
    cls_w_pad = jnp.zeros((HIDDEN, PAD_LABELS), jnp.float32).at[:, :NUM_LABELS].set(p["cls_w"])
    cls_b_pad = jnp.zeros((1, PAD_LABELS), jnp.float32).at[0, :NUM_LABELS].set(p["cls_b"])
    return {
        "word_emb": bf(p["word_emb"]),                     # bf16 (used in one-hot matmul)
        "pos_emb": p["pos_emb"], "type_emb": p["type_emb"],  # f32 (element-wise adds only)
        "emb_ln_g": p["emb_ln_g"][None, :], "emb_ln_b": p["emb_ln_b"][None, :],
        "qkv_w": qkv_w, "qkv_b": qkv_b,
        "o_w": sw("o_w"), "o_b": sb("o_b"),
        "ln1_g": sb("ln1_g"), "ln1_b": sb("ln1_b"),
        "i_w": sw("i_w"), "i_b": sb("i_b"),
        "f_w": sw("f_w"), "f_b": sb("f_b"),
        "ln2_g": sb("ln2_g"), "ln2_b": sb("ln2_b"),
        "pooler_w": bf(p["pooler_w"]), "pooler_b": p["pooler_b"][None, :],
        "cls_w_pad": bf(cls_w_pad), "cls_b_pad": cls_b_pad,
    }


# ---------------- forward pass ----------------
def bert_multilabel_forward(packed, input_ids, attention_mask):
    B, S = input_ids.shape
    L = NUM_LAYERS
    n_blk = pl.cdiv(B, B_BLK)
    B_pad = n_blk * B_BLK
    pad = B_pad - B

    # pad the batch up to a full block; padded rows use mask=1 / id=0 and are sliced off
    ids = jnp.pad(input_ids.astype(jnp.int32), ((0, pad), (0, 0)))
    mask = jnp.pad(attention_mask.astype(jnp.int32), ((0, pad), (0, 0)), constant_values=1)
    ids_flat = ids.reshape(B_pad * S, 1)                       # rows = batch*seq (MXU rows)

    in_specs = [
        pl.BlockSpec((B_BLK * S, 1), lambda i: (i, 0)),        # input ids (per-block)
        pl.BlockSpec((B_BLK, S), lambda i: (i, 0)),            # attention mask (per-block)
        _full_spec((VOCAB, HIDDEN)),                           # word embedding table
        _full_spec((MAX_POS, HIDDEN)),                         # position embedding table
        _full_spec((TYPE_VOCAB, HIDDEN)),                      # token-type embedding table
        _full_spec((1, HIDDEN)), _full_spec((1, HIDDEN)),                        # emb LN
        _full_spec((L, HIDDEN, 3 * HIDDEN)), _full_spec((L, 1, 3 * HIDDEN)),     # fused QKV
        _full_spec((L, HIDDEN, HIDDEN)), _full_spec((L, 1, HIDDEN)),             # attn out proj
        _full_spec((L, 1, HIDDEN)), _full_spec((L, 1, HIDDEN)),                  # LN1
        _full_spec((L, HIDDEN, INTERMEDIATE)), _full_spec((L, 1, INTERMEDIATE)), # FFN in
        _full_spec((L, INTERMEDIATE, HIDDEN)), _full_spec((L, 1, HIDDEN)),       # FFN out
        _full_spec((L, 1, HIDDEN)), _full_spec((L, 1, HIDDEN)),                  # LN2
        _full_spec((HIDDEN, HIDDEN)), _full_spec((1, HIDDEN)),                   # pooler
        _full_spec((HIDDEN, PAD_LABELS)), _full_spec((1, PAD_LABELS)),           # classifier (padded)
    ]

    out = pl.pallas_call(
        _bert_kernel,
        out_shape=jax.ShapeDtypeStruct((B_pad, PAD_LABELS), jnp.float32),
        grid=(n_blk,),
        in_specs=in_specs,
        out_specs=pl.BlockSpec((B_BLK, PAD_LABELS), lambda i: (i, 0)),
        compiler_params=pltpu.CompilerParams(dimension_semantics=("arbitrary",)),
    )(ids_flat, mask,
      packed["word_emb"], packed["pos_emb"], packed["type_emb"],
      packed["emb_ln_g"], packed["emb_ln_b"],
      packed["qkv_w"], packed["qkv_b"], packed["o_w"], packed["o_b"],
      packed["ln1_g"], packed["ln1_b"],
      packed["i_w"], packed["i_b"], packed["f_w"], packed["f_b"],
      packed["ln2_g"], packed["ln2_b"],
      packed["pooler_w"], packed["pooler_b"], packed["cls_w_pad"], packed["cls_b_pad"])

    return out[:B, :NUM_LABELS]                                # sigmoid probabilities, (B, 5)


if __name__ == "__main__":
    B, S = 2, 8
    root = jax.random.PRNGKey(0)
    k_param, k_ids = jax.random.split(root)

    packed = pack_params(init_params(k_param))
    input_ids = jax.random.randint(k_ids, (B, S), 0, VOCAB, dtype=jnp.int32)
    attention_mask = jnp.ones((B, S), dtype=jnp.int32).at[1, 6:].set(0)  # pad tail of example 1

    fwd = jax.jit(bert_multilabel_forward)
    probs = jax.block_until_ready(fwd(packed, input_ids, attention_mask))

    assert probs.shape == (B, NUM_LABELS)
    assert bool(jnp.all((probs >= 0.0) & (probs <= 1.0)))
    assert bool(jnp.all(jnp.isfinite(probs)))
    print("KERNEL_OK")
</pallas_src>

<mosaic_0001>
module attributes {stable_mosaic.version = 11 : i64} {
  func.func @_bert_kernel(%arg0: i32, %arg1: memref<64x1xi32, #tpu.memory_space<vmem>>, %arg2: memref<8x8xi32, #tpu.memory_space<vmem>>, %arg3: memref<100x32xbf16, #tpu.memory_space<vmem>>, %arg4: memref<16x32xf32, #tpu.memory_space<vmem>>, %arg5: memref<2x32xf32, #tpu.memory_space<vmem>>, %arg6: memref<1x32xf32, #tpu.memory_space<vmem>>, %arg7: memref<1x32xf32, #tpu.memory_space<vmem>>, %arg8: memref<2x32x96xbf16, #tpu.memory_space<vmem>>, %arg9: memref<2x1x96xf32, #tpu.memory_space<vmem>>, %arg10: memref<2x32x32xbf16, #tpu.memory_space<vmem>>, %arg11: memref<2x1x32xf32, #tpu.memory_space<vmem>>, %arg12: memref<2x1x32xf32, #tpu.memory_space<vmem>>, %arg13: memref<2x1x32xf32, #tpu.memory_space<vmem>>, %arg14: memref<2x32x64xbf16, #tpu.memory_space<vmem>>, %arg15: memref<2x1x64xf32, #tpu.memory_space<vmem>>, %arg16: memref<2x64x32xbf16, #tpu.memory_space<vmem>>, %arg17: memref<2x1x32xf32, #tpu.memory_space<vmem>>, %arg18: memref<2x1x32xf32, #tpu.memory_space<vmem>>, %arg19: memref<2x1x32xf32, #tpu.memory_space<vmem>>, %arg20: memref<32x32xbf16, #tpu.memory_space<vmem>>, %arg21: memref<1x32xf32, #tpu.memory_space<vmem>>, %arg22: memref<32x128xbf16, #tpu.memory_space<vmem>>, %arg23: memref<1x128xf32, #tpu.memory_space<vmem>>, %arg24: memref<8x128xf32, #tpu.memory_space<vmem>>) attributes {dimension_semantics = [#tpu.dimension_semantics<arbitrary>], iteration_bounds = array<i64: 1>, scalar_prefetch = 0 : i64, scratch_operands = 0 : i64, tpu.core_type = #tpu.core_type<tc>, window_params = [{transform_indices = @transform_0, window_bounds = array<i64: 64, 1>}, {transform_indices = @transform_1, window_bounds = array<i64: 8, 8>}, {pipeline_mode = #tpu.pipeline_mode<synchronous>, transform_indices = @transform_2, window_bounds = array<i64: 100, 32>}, {pipeline_mode = #tpu.pipeline_mode<synchronous>, transform_indices = @transform_3, window_bounds = array<i64: 16, 32>}, {pipeline_mode = #tpu.pipeline_mode<synchronous>, transform_indices = @transform_4, window_bounds = array<i64: 2, 32>}, {pipeline_mode = #tpu.pipeline_mode<synchronous>, transform_indices = @transform_5, window_bounds = array<i64: 1, 32>}, {pipeline_mode = #tpu.pipeline_mode<synchronous>, transform_indices = @transform_6, window_bounds = array<i64: 1, 32>}, {pipeline_mode = #tpu.pipeline_mode<synchronous>, transform_indices = @transform_7, window_bounds = array<i64: 2, 32, 96>}, {pipeline_mode = #tpu.pipeline_mode<synchronous>, transform_indices = @transform_8, window_bounds = array<i64: 2, 1, 96>}, {pipeline_mode = #tpu.pipeline_mode<synchronous>, transform_indices = @transform_9, window_bounds = array<i64: 2, 32, 32>}, {pipeline_mode = #tpu.pipeline_mode<synchronous>, transform_indices = @transform_10, window_bounds = array<i64: 2, 1, 32>}, {pipeline_mode = #tpu.pipeline_mode<synchronous>, transform_indices = @transform_11, window_bounds = array<i64: 2, 1, 32>}, {pipeline_mode = #tpu.pipeline_mode<synchronous>, transform_indices = @transform_12, window_bounds = array<i64: 2, 1, 32>}, {pipeline_mode = #tpu.pipeline_mode<synchronous>, transform_indices = @transform_13, window_bounds = array<i64: 2, 32, 64>}, {pipeline_mode = #tpu.pipeline_mode<synchronous>, transform_indices = @transform_14, window_bounds = array<i64: 2, 1, 64>}, {pipeline_mode = #tpu.pipeline_mode<synchronous>, transform_indices = @transform_15, window_bounds = array<i64: 2, 64, 32>}, {pipeline_mode = #tpu.pipeline_mode<synchronous>, transform_indices = @transform_16, window_bounds = array<i64: 2, 1, 32>}, {pipeline_mode = #tpu.pipeline_mode<synchronous>, transform_indices = @transform_17, window_bounds = array<i64: 2, 1, 32>}, {pipeline_mode = #tpu.pipeline_mode<synchronous>, transform_indices = @transform_18, window_bounds = array<i64: 2, 1, 32>}, {pipeline_mode = #tpu.pipeline_mode<synchronous>, transform_indices = @transform_19, window_bounds = array<i64: 32, 32>}, {pipeline_mode = #tpu.pipeline_mode<synchronous>, transform_indices = @transform_20, window_bounds = array<i64: 1, 32>}, {pipeline_mode = #tpu.pipeline_mode<synchronous>, transform_indices = @transform_21, window_bounds = array<i64: 32, 128>}, {pipeline_mode = #tpu.pipeline_mode<synchronous>, transform_indices = @transform_22, window_bounds = array<i64: 1, 128>}, {transform_indices = @transform_23, window_bounds = array<i64: 8, 128>}]} {
    %c0 = arith.constant 0 : index
    %c0_0 = arith.constant 0 : index
    %0 = vector.load %arg1[%c0, %c0_0] : memref<64x1xi32, #tpu.memory_space<vmem>>, vector<64x1xi32>
    %1 = tpu.iota {dimensions = array<i32: 1>} : vector<64x100xi32>
    %2 = vector.broadcast %0 : vector<64x1xi32> to vector<64x100xi32>
    %3 = arith.cmpi eq, %1, %2 : vector<64x100xi32>
    %4 = arith.extui %3 : vector<64x100xi1> to vector<64x100xi32>
    %5 = arith.sitofp %4 : vector<64x100xi32> to vector<64x100xf32>
    %6 = arith.truncf %5 : vector<64x100xf32> to vector<64x100xbf16>
    %c0_1 = arith.constant 0 : index
    %c0_2 = arith.constant 0 : index
    %7 = vector.load %arg3[%c0_1, %c0_2] : memref<100x32xbf16, #tpu.memory_space<vmem>>, vector<100x32xbf16>
    %cst = arith.constant dense<0.000000e+00> : vector<64x32xf32>
    %8 = tpu.matmul %6, %7, %cst {dimension_numbers = #tpu.dot_dimension_numbers<[1], [0], [0], [1], [0, 0, 1, 1], [], []>} : vector<64x100xbf16>, vector<100x32xbf16>, vector<64x32xf32> -> vector<64x32xf32>
    %c0_3 = arith.constant 0 : index
    %c0_4 = arith.constant 0 : index
    %9 = vector.load %arg4[%c0_3, %c0_4] : memref<16x32xf32, #tpu.memory_space<vmem>>, vector<8x32xf32>
    %10 = tpu.concatenate %9, %9, %9, %9, %9, %9, %9, %9 in 0 : vector<8x32xf32>, vector<8x32xf32>, vector<8x32xf32>, vector<8x32xf32>, vector<8x32xf32>, vector<8x32xf32>, vector<8x32xf32>, vector<8x32xf32> -> vector<64x32xf32>
    %11 = arith.addf %8, %10 : vector<64x32xf32>
    %c0_5 = arith.constant 0 : index
    %c0_6 = arith.constant 0 : index
    %12 = vector.load %arg5[%c0_5, %c0_6] : memref<2x32xf32, #tpu.memory_space<vmem>>, vector<1x32xf32>
    %13 = vector.broadcast %12 : vector<1x32xf32> to vector<64x32xf32>
    %14 = arith.addf %11, %13 : vector<64x32xf32>
    %c0_7 = arith.constant 0 : index
    %c0_8 = arith.constant 0 : index
    %15 = vector.load %arg6[%c0_7, %c0_8] : memref<1x32xf32, #tpu.memory_space<vmem>>, vector<1x32xf32>
    %c0_9 = arith.constant 0 : index
    %c0_10 = arith.constant 0 : index
    %16 = vector.load %arg7[%c0_9, %c0_10] : memref<1x32xf32, #tpu.memory_space<vmem>>, vector<1x32xf32>
    %cst_11 = arith.constant dense<0.000000e+00> : vector<64xf32>
    %17 = vector.multi_reduction <add>, %14, %cst_11 [1] : vector<64x32xf32> to vector<64xf32>
    %18 = vector.shape_cast %17 : vector<64xf32> to vector<64x1xf32>
    %cst_12 = arith.constant 3.200000e+01 : f32
    %19 = vector.broadcast %cst_12 : f32 to vector<64x1xf32>
    %20 = arith.divf %18, %19 : vector<64x1xf32>
    %21 = vector.broadcast %20 : vector<64x1xf32> to vector<64x32xf32>
    %22 = arith.subf %14, %21 : vector<64x32xf32>
    %23 = arith.mulf %22, %22 : vector<64x32xf32>
    %cst_13 = arith.constant dense<0.000000e+00> : vector<64xf32>
    %24 = vector.multi_reduction <add>, %23, %cst_13 [1] : vector<64x32xf32> to vector<64xf32>
    %25 = vector.shape_cast %24 : vector<64xf32> to vector<64x1xf32>
    %cst_14 = arith.constant 3.200000e+01 : f32
    %26 = vector.broadcast %cst_14 : f32 to vector<64x1xf32>
    %27 = arith.divf %25, %26 : vector<64x1xf32>
    %28 = vector.broadcast %20 : vector<64x1xf32> to vector<64x32xf32>
    %29 = arith.subf %14, %28 : vector<64x32xf32>
    %cst_15 = arith.constant 9.99999996E-13 : f32
    %30 = vector.broadcast %cst_15 : f32 to vector<64x1xf32>
    %31 = arith.addf %27, %30 : vector<64x1xf32>
    %32 = math.rsqrt %31 : vector<64x1xf32>
    %33 = vector.broadcast %32 : vector<64x1xf32> to vector<64x32xf32>
    %34 = arith.mulf %29, %33 : vector<64x32xf32>
    %35 = vector.broadcast %15 : vector<1x32xf32> to vector<64x32xf32>
    %36 = arith.mulf %34, %35 : vector<64x32xf32>
    %37 = vector.broadcast %16 : vector<1x32xf32> to vector<64x32xf32>
    %38 = arith.addf %36, %37 : vector<64x32xf32>
    %c0_16 = arith.constant 0 : index
    %c0_17 = arith.constant 0 : index
    %39 = vector.load %arg2[%c0_16, %c0_17] : memref<8x8xi32, #tpu.memory_space<vmem>>, vector<8x8xi32>
    %40 = arith.sitofp %39 : vector<8x8xi32> to vector<8x8xf32>
    %cst_18 = arith.constant 1.000000e+00 : f32
    %41 = vector.broadcast %cst_18 : f32 to vector<8x8xf32>
    %42 = arith.subf %41, %40 : vector<8x8xf32>
    %cst_19 = arith.constant -1.000000e+04 : f32
    %43 = vector.broadcast %cst_19 : f32 to vector<8x8xf32>
    %44 = arith.mulf %42, %43 : vector<8x8xf32>
    %45 = vector.shape_cast %44 : vector<8x8xf32> to vector<8x1x8xf32>
    %46 = vector.shape_cast %45 : vector<8x1x8xf32> to vector<8x1x8xf32>
    %47 = vector.broadcast %46 : vector<8x1x8xf32> to vector<8x8x8xf32>
    %c0_20 = arith.constant 0 : index
    %c0_21 = arith.constant 0 : index
    %c0_22 = arith.constant 0 : index
    %48 = vector.load %arg8[%c0_20, %c0_21, %c0_22] : memref<2x32x96xbf16, #tpu.memory_space<vmem>>, vector<1x32x96xbf16>
    %49 = vector.shape_cast %48 : vector<1x32x96xbf16> to vector<32x96xbf16>
    %50 = arith.truncf %38 : vector<64x32xf32> to vector<64x32xbf16>
    %cst_23 = arith.constant dense<0.000000e+00> : vector<64x96xf32>
    %51 = tpu.matmul %50, %49, %cst_23 {dimension_numbers = #tpu.dot_dimension_numbers<[1], [0], [0], [1], [0, 0, 1, 1], [], []>} : vector<64x32xbf16>, vector<32x96xbf16>, vector<64x96xf32> -> vector<64x96xf32>
    %c0_24 = arith.constant 0 : index
    %c0_25 = arith.constant 0 : index
    %c0_26 = arith.constant 0 : index
    %52 = vector.load %arg9[%c0_24, %c0_25, %c0_26] : memref<2x1x96xf32, #tpu.memory_space<vmem>>, vector<1x1x96xf32>
    %53 = vector.shape_cast %52 : vector<1x1x96xf32> to vector<1x96xf32>
    %54 = vector.broadcast %53 : vector<1x96xf32> to vector<64x96xf32>
    %55 = arith.addf %51, %54 : vector<64x96xf32>
    %56 = vector.shape_cast %55 : vector<64x96xf32> to vector<8x8x96xf32>
    %57 = vector.extract_strided_slice %56 {offsets = [0, 0, 0], sizes = [8, 8, 16], strides = [1, 1, 1]} : vector<8x8x96xf32> to vector<8x8x16xf32>
    %58 = vector.extract_strided_slice %56 {offsets = [0, 0, 32], sizes = [8, 8, 16], strides = [1, 1, 1]} : vector<8x8x96xf32> to vector<8x8x16xf32>
    %59 = vector.extract_strided_slice %56 {offsets = [0, 0, 64], sizes = [8, 8, 16], strides = [1, 1, 1]} : vector<8x8x96xf32> to vector<8x8x16xf32>
    %60 = arith.truncf %57 : vector<8x8x16xf32> to vector<8x8x16xbf16>
    %61 = arith.truncf %58 : vector<8x8x16xf32> to vector<8x8x16xbf16>
    "tpu.trace_start"() <{level = 10 : i32, message = "bqd,bkd->bqk"}> : () -> ()
    %cst_27 = arith.constant dense<0.000000e+00> : vector<8x8x8xf32>
    %62 = tpu.matmul %60, %61, %cst_27 {dimension_numbers = #tpu.dot_dimension_numbers<[2], [2], [1], [1], [0, 0, 0, 1, 1, 1], [0], [0]>} : vector<8x8x16xbf16>, vector<8x8x16xbf16>, vector<8x8x8xf32> -> vector<8x8x8xf32>
    "tpu.trace_stop"() : () -> ()
    %cst_28 = arith.constant 2.500000e-01 : f32
    %63 = vector.broadcast %cst_28 : f32 to vector<8x8x8xf32>
    %64 = arith.mulf %62, %63 : vector<8x8x8xf32>
    %65 = arith.addf %64, %47 : vector<8x8x8xf32>
    %cst_29 = arith.constant dense<0xFF800000> : vector<8x8xf32>
    %66 = vector.multi_reduction <maximumf>, %65, %cst_29 [2] : vector<8x8x8xf32> to vector<8x8xf32>
    %67 = vector.shape_cast %66 : vector<8x8xf32> to vector<8x8x1xf32>
    %68 = vector.broadcast %67 : vector<8x8x1xf32> to vector<8x8x8xf32>
    %69 = arith.subf %65, %68 : vector<8x8x8xf32>
    %70 = math.exp %69 : vector<8x8x8xf32>
    %cst_30 = arith.constant dense<0.000000e+00> : vector<8x8xf32>
    %71 = vector.multi_reduction <add>, %70, %cst_30 [2] : vector<8x8x8xf32> to vector<8x8xf32>
    %72 = vector.shape_cast %71 : vector<8x8xf32> to vector<8x8x1xf32>
    %73 = tpu.reciprocal %72 {approx = true} : vector<8x8x1xf32> -> vector<8x8x1xf32>
    %74 = vector.broadcast %73 : vector<8x8x1xf32> to vector<8x8x8xf32>
    %75 = arith.mulf %70, %74 : vector<8x8x8xf32>
    %76 = arith.truncf %75 : vector<8x8x8xf32> to vector<8x8x8xbf16>
    %77 = arith.truncf %59 : vector<8x8x16xf32> to vector<8x8x16xbf16>
    "tpu.trace_start"() <{level = 10 : i32, message = "bqk,bkd->bqd"}> : () -> ()
    %cst_31 = arith.constant dense<0.000000e+00> : vector<8x8x16xf32>
    %78 = tpu.matmul %76, %77, %cst_31 {dimension_numbers = #tpu.dot_dimension_numbers<[2], [1], [1], [2], [0, 0, 0, 1, 1, 2], [0], [0]>} : vector<8x8x8xbf16>, vector<8x8x16xbf16>, vector<8x8x16xf32> -> vector<8x8x16xf32>
    "tpu.trace_stop"() : () -> ()
    %79 = vector.extract_strided_slice %56 {offsets = [0, 0, 16], sizes = [8, 8, 16], strides = [1, 1, 1]} : vector<8x8x96xf32> to vector<8x8x16xf32>
    %80 = vector.extract_strided_slice %56 {offsets = [0, 0, 48], sizes = [8, 8, 16], strides = [1, 1, 1]} : vector<8x8x96xf32> to vector<8x8x16xf32>
    %81 = vector.extract_strided_slice %56 {offsets = [0, 0, 80], sizes = [8, 8, 16], strides = [1, 1, 1]} : vector<8x8x96xf32> to vector<8x8x16xf32>
    %82 = arith.truncf %79 : vector<8x8x16xf32> to vector<8x8x16xbf16>
    %83 = arith.truncf %80 : vector<8x8x16xf32> to vector<8x8x16xbf16>
    "tpu.trace_start"() <{level = 10 : i32, message = "bqd,bkd->bqk"}> : () -> ()
    %cst_32 = arith.constant dense<0.000000e+00> : vector<8x8x8xf32>
    %84 = tpu.matmul %82, %83, %cst_32 {dimension_numbers = #tpu.dot_dimension_numbers<[2], [2], [1], [1], [0, 0, 0, 1, 1, 1], [0], [0]>} : vector<8x8x16xbf16>, vector<8x8x16xbf16>, vector<8x8x8xf32> -> vector<8x8x8xf32>
    "tpu.trace_stop"() : () -> ()
    %cst_33 = arith.constant 2.500000e-01 : f32
    %85 = vector.broadcast %cst_33 : f32 to vector<8x8x8xf32>
    %86 = arith.mulf %84, %85 : vector<8x8x8xf32>
    %87 = arith.addf %86, %47 : vector<8x8x8xf32>
    %cst_34 = arith.constant dense<0xFF800000> : vector<8x8xf32>
    %88 = vector.multi_reduction <maximumf>, %87, %cst_34 [2] : vector<8x8x8xf32> to vector<8x8xf32>
    %89 = vector.shape_cast %88 : vector<8x8xf32> to vector<8x8x1xf32>
    %90 = vector.broadcast %89 : vector<8x8x1xf32> to vector<8x8x8xf32>
    %91 = arith.subf %87, %90 : vector<8x8x8xf32>
    %92 = math.exp %91 : vector<8x8x8xf32>
    %cst_35 = arith.constant dense<0.000000e+00> : vector<8x8xf32>
    %93 = vector.multi_reduction <add>, %92, %cst_35 [2] : vector<8x8x8xf32> to vector<8x8xf32>
    %94 = vector.shape_cast %93 : vector<8x8xf32> to vector<8x8x1xf32>
    %95 = tpu.reciprocal %94 {approx = true} : vector<8x8x1xf32> -> vector<8x8x1xf32>
    %96 = vector.broadcast %95 : vector<8x8x1xf32> to vector<8x8x8xf32>
    %97 = arith.mulf %92, %96 : vector<8x8x8xf32>
    %98 = arith.truncf %97 : vector<8x8x8xf32> to vector<8x8x8xbf16>
    %99 = arith.truncf %81 : vector<8x8x16xf32> to vector<8x8x16xbf16>
    "tpu.trace_start"() <{level = 10 : i32, message = "bqk,bkd->bqd"}> : () -> ()
    %cst_36 = arith.constant dense<0.000000e+00> : vector<8x8x16xf32>
    %100 = tpu.matmul %98, %99, %cst_36 {dimension_numbers = #tpu.dot_dimension_numbers<[2], [1], [1], [2], [0, 0, 0, 1, 1, 2], [0], [0]>} : vector<8x8x8xbf16>, vector<8x8x16xbf16>, vector<8x8x16xf32> -> vector<8x8x16xf32>
    "tpu.trace_stop"() : () -> ()
    %101 = tpu.concatenate %78, %100 in 2 : vector<8x8x16xf32>, vector<8x8x16xf32> -> vector<8x8x32xf32>
    %102 = vector.shape_cast %101 : vector<8x8x32xf32> to vector<64x32xf32>
    %c0_37 = arith.constant 0 : index
    %c0_38 = arith.constant 0 : index
    %c0_39 = arith.constant 0 : index
    %103 = vector.load %arg10[%c0_37, %c0_38, %c0_39] : memref<2x32x32xbf16, #tpu.memory_space<vmem>>, vector<1x32x32xbf16>
    %104 = vector.shape_cast %103 : vector<1x32x32xbf16> to vector<32x32xbf16>
    %105 = arith.truncf %102 : vector<64x32xf32> to vector<64x32xbf16>
    %cst_40 = arith.constant dense<0.000000e+00> : vector<64x32xf32>
    %106 = tpu.matmul %105, %104, %cst_40 {dimension_numbers = #tpu.dot_dimension_numbers<[1], [0], [0], [1], [0, 0, 1, 1], [], []>} : vector<64x32xbf16>, vector<32x32xbf16>, vector<64x32xf32> -> vector<64x32xf32>
    %c0_41 = arith.constant 0 : index
    %c0_42 = arith.constant 0 : index
    %c0_43 = arith.constant 0 : index
    %107 = vector.load %arg11[%c0_41, %c0_42, %c0_43] : memref<2x1x32xf32, #tpu.memory_space<vmem>>, vector<1x1x32xf32>
    %108 = vector.shape_cast %107 : vector<1x1x32xf32> to vector<1x32xf32>
    %109 = vector.broadcast %108 : vector<1x32xf32> to vector<64x32xf32>
    %110 = arith.addf %106, %109 : vector<64x32xf32>
    %111 = arith.addf %110, %38 : vector<64x32xf32>
    %c0_44 = arith.constant 0 : index
    %c0_45 = arith.constant 0 : index
    %c0_46 = arith.constant 0 : index
    %112 = vector.load %arg12[%c0_44, %c0_45, %c0_46] : memref<2x1x32xf32, #tpu.memory_space<vmem>>, vector<1x1x32xf32>
    %113 = vector.shape_cast %112 : vector<1x1x32xf32> to vector<1x32xf32>
    %c0_47 = arith.constant 0 : index
    %c0_48 = arith.constant 0 : index
    %c0_49 = arith.constant 0 : index
    %114 = vector.load %arg13[%c0_47, %c0_48, %c0_49] : memref<2x1x32xf32, #tpu.memory_space<vmem>>, vector<1x1x32xf32>
    %115 = vector.shape_cast %114 : vector<1x1x32xf32> to vector<1x32xf32>
    %cst_50 = arith.constant dense<0.000000e+00> : vector<64xf32>
    %116 = vector.multi_reduction <add>, %111, %cst_50 [1] : vector<64x32xf32> to vector<64xf32>
    %117 = vector.shape_cast %116 : vector<64xf32> to vector<64x1xf32>
    %cst_51 = arith.constant 3.200000e+01 : f32
    %118 = vector.broadcast %cst_51 : f32 to vector<64x1xf32>
    %119 = arith.divf %117, %118 : vector<64x1xf32>
    %120 = vector.broadcast %119 : vector<64x1xf32> to vector<64x32xf32>
    %121 = arith.subf %111, %120 : vector<64x32xf32>
    %122 = arith.mulf %121, %121 : vector<64x32xf32>
    %cst_52 = arith.constant dense<0.000000e+00> : vector<64xf32>
    %123 = vector.multi_reduction <add>, %122, %cst_52 [1] : vector<64x32xf32> to vector<64xf32>
    %124 = vector.shape_cast %123 : vector<64xf32> to vector<64x1xf32>
    %cst_53 = arith.constant 3.200000e+01 : f32
    %125 = vector.broadcast %cst_53 : f32 to vector<64x1xf32>
    %126 = arith.divf %124, %125 : vector<64x1xf32>
    %127 = vector.broadcast %119 : vector<64x1xf32> to vector<64x32xf32>
    %128 = arith.subf %111, %127 : vector<64x32xf32>
    %cst_54 = arith.constant 9.99999996E-13 : f32
    %129 = vector.broadcast %cst_54 : f32 to vector<64x1xf32>
    %130 = arith.addf %126, %129 : vector<64x1xf32>
    %131 = math.rsqrt %130 : vector<64x1xf32>
    %132 = vector.broadcast %131 : vector<64x1xf32> to vector<64x32xf32>
    %133 = arith.mulf %128, %132 : vector<64x32xf32>
    %134 = vector.broadcast %113 : vector<1x32xf32> to vector<64x32xf32>
    %135 = arith.mulf %133, %134 : vector<64x32xf32>
    %136 = vector.broadcast %115 : vector<1x32xf32> to vector<64x32xf32>
    %137 = arith.addf %135, %136 : vector<64x32xf32>
    %c0_55 = arith.constant 0 : index
    %c0_56 = arith.constant 0 : index
    %c0_57 = arith.constant 0 : index
    %138 = vector.load %arg14[%c0_55, %c0_56, %c0_57] : memref<2x32x64xbf16, #tpu.memory_space<vmem>>, vector<1x32x64xbf16>
    %139 = vector.shape_cast %138 : vector<1x32x64xbf16> to vector<32x64xbf16>
    %140 = arith.truncf %137 : vector<64x32xf32> to vector<64x32xbf16>
    %cst_58 = arith.constant dense<0.000000e+00> : vector<64x64xf32>
    %141 = tpu.matmul %140, %139, %cst_58 {dimension_numbers = #tpu.dot_dimension_numbers<[1], [0], [0], [1], [0, 0, 1, 1], [], []>} : vector<64x32xbf16>, vector<32x64xbf16>, vector<64x64xf32> -> vector<64x64xf32>
    %c0_59 = arith.constant 0 : index
    %c0_60 = arith.constant 0 : index
    %c0_61 = arith.constant 0 : index
    %142 = vector.load %arg15[%c0_59, %c0_60, %c0_61] : memref<2x1x64xf32, #tpu.memory_space<vmem>>, vector<1x1x64xf32>
    %143 = vector.shape_cast %142 : vector<1x1x64xf32> to vector<1x64xf32>
    %144 = vector.broadcast %143 : vector<1x64xf32> to vector<64x64xf32>
    %145 = arith.addf %141, %144 : vector<64x64xf32>
    %146 = arith.mulf %145, %145 : vector<64x64xf32>
    %147 = arith.mulf %145, %146 : vector<64x64xf32>
    %cst_62 = arith.constant 4.471500e-02 : f32
    %148 = vector.broadcast %cst_62 : f32 to vector<64x64xf32>
    %149 = arith.mulf %148, %147 : vector<64x64xf32>
    %150 = arith.addf %145, %149 : vector<64x64xf32>
    %cst_63 = arith.constant 0.797884583 : f32
    %151 = vector.broadcast %cst_63 : f32 to vector<64x64xf32>
    %152 = arith.mulf %151, %150 : vector<64x64xf32>
    %153 = math.tanh %152 : vector<64x64xf32>
    %cst_64 = arith.constant 1.000000e+00 : f32
    %154 = vector.broadcast %cst_64 : f32 to vector<64x64xf32>
    %155 = arith.addf %154, %153 : vector<64x64xf32>
    %cst_65 = arith.constant 5.000000e-01 : f32
    %156 = vector.broadcast %cst_65 : f32 to vector<64x64xf32>
    %157 = arith.mulf %156, %155 : vector<64x64xf32>
    %158 = arith.mulf %145, %157 : vector<64x64xf32>
    %c0_66 = arith.constant 0 : index
    %c0_67 = arith.constant 0 : index
    %c0_68 = arith.constant 0 : index
    %159 = vector.load %arg16[%c0_66, %c0_67, %c0_68] : memref<2x64x32xbf16, #tpu.memory_space<vmem>>, vector<1x64x32xbf16>
    %160 = vector.shape_cast %159 : vector<1x64x32xbf16> to vector<64x32xbf16>
    %161 = arith.truncf %158 : vector<64x64xf32> to vector<64x64xbf16>
    %cst_69 = arith.constant dense<0.000000e+00> : vector<64x32xf32>
    %162 = tpu.matmul %161, %160, %cst_69 {dimension_numbers = #tpu.dot_dimension_numbers<[1], [0], [0], [1], [0, 0, 1, 1], [], []>} : vector<64x64xbf16>, vector<64x32xbf16>, vector<64x32xf32> -> vector<64x32xf32>
    %c0_70 = arith.constant 0 : index
    %c0_71 = arith.constant 0 : index
    %c0_72 = arith.constant 0 : index
    %163 = vector.load %arg17[%c0_70, %c0_71, %c0_72] : memref<2x1x32xf32, #tpu.memory_space<vmem>>, vector<1x1x32xf32>
    %164 = vector.shape_cast %163 : vector<1x1x32xf32> to vector<1x32xf32>
    %165 = vector.broadcast %164 : vector<1x32xf32> to vector<64x32xf32>
    %166 = arith.addf %162, %165 : vector<64x32xf32>
    %167 = arith.addf %166, %137 : vector<64x32xf32>
    %c0_73 = arith.constant 0 : index
    %c0_74 = arith.constant 0 : index
    %c0_75 = arith.constant 0 : index
    %168 = vector.load %arg18[%c0_73, %c0_74, %c0_75] : memref<2x1x32xf32, #tpu.memory_space<vmem>>, vector<1x1x32xf32>
    %169 = vector.shape_cast %168 : vector<1x1x32xf32> to vector<1x32xf32>
    %c0_76 = arith.constant 0 : index
    %c0_77 = arith.constant 0 : index
    %c0_78 = arith.constant 0 : index
    %170 = vector.load %arg19[%c0_76, %c0_77, %c0_78] : memref<2x1x32xf32, #tpu.memory_space<vmem>>, vector<1x1x32xf32>
    %171 = vector.shape_cast %170 : vector<1x1x32xf32> to vector<1x32xf32>
    %cst_79 = arith.constant dense<0.000000e+00> : vector<64xf32>
    %172 = vector.multi_reduction <add>, %167, %cst_79 [1] : vector<64x32xf32> to vector<64xf32>
    %173 = vector.shape_cast %172 : vector<64xf32> to vector<64x1xf32>
    %cst_80 = arith.constant 3.200000e+01 : f32
    %174 = vector.broadcast %cst_80 : f32 to vector<64x1xf32>
    %175 = arith.divf %173, %174 : vector<64x1xf32>
    %176 = vector.broadcast %175 : vector<64x1xf32> to vector<64x32xf32>
    %177 = arith.subf %167, %176 : vector<64x32xf32>
    %178 = arith.mulf %177, %177 : vector<64x32xf32>
    %cst_81 = arith.constant dense<0.000000e+00> : vector<64xf32>
    %179 = vector.multi_reduction <add>, %178, %cst_81 [1] : vector<64x32xf32> to vector<64xf32>
    %180 = vector.shape_cast %179 : vector<64xf32> to vector<64x1xf32>
    %cst_82 = arith.constant 3.200000e+01 : f32
    %181 = vector.broadcast %cst_82 : f32 to vector<64x1xf32>
    %182 = arith.divf %180, %181 : vector<64x1xf32>
    %183 = vector.broadcast %175 : vector<64x1xf32> to vector<64x32xf32>
    %184 = arith.subf %167, %183 : vector<64x32xf32>
    %cst_83 = arith.constant 9.99999996E-13 : f32
    %185 = vector.broadcast %cst_83 : f32 to vector<64x1xf32>
    %186 = arith.addf %182, %185 : vector<64x1xf32>
    %187 = math.rsqrt %186 : vector<64x1xf32>
    %188 = vector.broadcast %187 : vector<64x1xf32> to vector<64x32xf32>
    %189 = arith.mulf %184, %188 : vector<64x32xf32>
    %190 = vector.broadcast %169 : vector<1x32xf32> to vector<64x32xf32>
    %191 = arith.mulf %189, %190 : vector<64x32xf32>
    %192 = vector.broadcast %171 : vector<1x32xf32> to vector<64x32xf32>
    %193 = arith.addf %191, %192 : vector<64x32xf32>
    %c1 = arith.constant 1 : index
    %c0_84 = arith.constant 0 : index
    %c0_85 = arith.constant 0 : index
    %194 = vector.load %arg8[%c1, %c0_84, %c0_85] : memref<2x32x96xbf16, #tpu.memory_space<vmem>>, vector<1x32x96xbf16>
    %195 = vector.shape_cast %194 : vector<1x32x96xbf16> to vector<32x96xbf16>
    %196 = arith.truncf %193 : vector<64x32xf32> to vector<64x32xbf16>
    %cst_86 = arith.constant dense<0.000000e+00> : vector<64x96xf32>
    %197 = tpu.matmul %196, %195, %cst_86 {dimension_numbers = #tpu.dot_dimension_numbers<[1], [0], [0], [1], [0, 0, 1, 1], [], []>} : vector<64x32xbf16>, vector<32x96xbf16>, vector<64x96xf32> -> vector<64x96xf32>
    %c1_87 = arith.constant 1 : index
    %c0_88 = arith.constant 0 : index
    %c0_89 = arith.constant 0 : index
    %198 = vector.load %arg9[%c1_87, %c0_88, %c0_89] : memref<2x1x96xf32, #tpu.memory_space<vmem>>, vector<1x1x96xf32>
    %199 = vector.shape_cast %198 : vector<1x1x96xf32> to vector<1x96xf32>
    %200 = vector.broadcast %199 : vector<1x96xf32> to vector<64x96xf32>
    %201 = arith.addf %197, %200 : vector<64x96xf32>
    %202 = vector.shape_cast %201 : vector<64x96xf32> to vector<8x8x96xf32>
    %203 = vector.extract_strided_slice %202 {offsets = [0, 0, 0], sizes = [8, 8, 16], strides = [1, 1, 1]} : vector<8x8x96xf32> to vector<8x8x16xf32>
    %204 = vector.extract_strided_slice %202 {offsets = [0, 0, 32], sizes = [8, 8, 16], strides = [1, 1, 1]} : vector<8x8x96xf32> to vector<8x8x16xf32>
    %205 = vector.extract_strided_slice %202 {offsets = [0, 0, 64], sizes = [8, 8, 16], strides = [1, 1, 1]} : vector<8x8x96xf32> to vector<8x8x16xf32>
    %206 = arith.truncf %203 : vector<8x8x16xf32> to vector<8x8x16xbf16>
    %207 = arith.truncf %204 : vector<8x8x16xf32> to vector<8x8x16xbf16>
    "tpu.trace_start"() <{level = 10 : i32, message = "bqd,bkd->bqk"}> : () -> ()
    %cst_90 = arith.constant dense<0.000000e+00> : vector<8x8x8xf32>
    %208 = tpu.matmul %206, %207, %cst_90 {dimension_numbers = #tpu.dot_dimension_numbers<[2], [2], [1], [1], [0, 0, 0, 1, 1, 1], [0], [0]>} : vector<8x8x16xbf16>, vector<8x8x16xbf16>, vector<8x8x8xf32> -> vector<8x8x8xf32>
    "tpu.trace_stop"() : () -> ()
    %cst_91 = arith.constant 2.500000e-01 : f32
    %209 = vector.broadcast %cst_91 : f32 to vector<8x8x8xf32>
    %210 = arith.mulf %208, %209 : vector<8x8x8xf32>
    %211 = arith.addf %210, %47 : vector<8x8x8xf32>
    %cst_92 = arith.constant dense<0xFF800000> : vector<8x8xf32>
    %212 = vector.multi_reduction <maximumf>, %211, %cst_92 [2] : vector<8x8x8xf32> to vector<8x8xf32>
    %213 = vector.shape_cast %212 : vector<8x8xf32> to vector<8x8x1xf32>
    %214 = vector.broadcast %213 : vector<8x8x1xf32> to vector<8x8x8xf32>
    %215 = arith.subf %211, %214 : vector<8x8x8xf32>
    %216 = math.exp %215 : vector<8x8x8xf32>
    %cst_93 = arith.constant dense<0.000000e+00> : vector<8x8xf32>
    %217 = vector.multi_reduction <add>, %216, %cst_93 [2] : vector<8x8x8xf32> to vector<8x8xf32>
    %218 = vector.shape_cast %217 : vector<8x8xf32> to vector<8x8x1xf32>
    %219 = tpu.reciprocal %218 {approx = true} : vector<8x8x1xf32> -> vector<8x8x1xf32>
    %220 = vector.broadcast %219 : vector<8x8x1xf32> to vector<8x8x8xf32>
    %221 = arith.mulf %216, %220 : vector<8x8x8xf32>
    %222 = arith.truncf %221 : vector<8x8x8xf32> to vector<8x8x8xbf16>
    %223 = arith.truncf %205 : vector<8x8x16xf32> to vector<8x8x16xbf16>
    "tpu.trace_start"() <{level = 10 : i32, message = "bqk,bkd->bqd"}> : () -> ()
    %cst_94 = arith.constant dense<0.000000e+00> : vector<8x8x16xf32>
    %224 = tpu.matmul %222, %223, %cst_94 {dimension_numbers = #tpu.dot_dimension_numbers<[2], [1], [1], [2], [0, 0, 0, 1, 1, 2], [0], [0]>} : vector<8x8x8xbf16>, vector<8x8x16xbf16>, vector<8x8x16xf32> -> vector<8x8x16xf32>
    "tpu.trace_stop"() : () -> ()
    %225 = vector.extract_strided_slice %202 {offsets = [0, 0, 16], sizes = [8, 8, 16], strides = [1, 1, 1]} : vector<8x8x96xf32> to vector<8x8x16xf32>
    %226 = vector.extract_strided_slice %202 {offsets = [0, 0, 48], sizes = [8, 8, 16], strides = [1, 1, 1]} : vector<8x8x96xf32> to vector<8x8x16xf32>
    %227 = vector.extract_strided_slice %202 {offsets = [0, 0, 80], sizes = [8, 8, 16], strides = [1, 1, 1]} : vector<8x8x96xf32> to vector<8x8x16xf32>
    %228 = arith.truncf %225 : vector<8x8x16xf32> to vector<8x8x16xbf16>
    %229 = arith.truncf %226 : vector<8x8x16xf32> to vector<8x8x16xbf16>
    "tpu.trace_start"() <{level = 10 : i32, message = "bqd,bkd->bqk"}> : () -> ()
    %cst_95 = arith.constant dense<0.000000e+00> : vector<8x8x8xf32>
    %230 = tpu.matmul %228, %229, %cst_95 {dimension_numbers = #tpu.dot_dimension_numbers<[2], [2], [1], [1], [0, 0, 0, 1, 1, 1], [0], [0]>} : vector<8x8x16xbf16>, vector<8x8x16xbf16>, vector<8x8x8xf32> -> vector<8x8x8xf32>
    "tpu.trace_stop"() : () -> ()
    %cst_96 = arith.constant 2.500000e-01 : f32
    %231 = vector.broadcast %cst_96 : f32 to vector<8x8x8xf32>
    %232 = arith.mulf %230, %231 : vector<8x8x8xf32>
    %233 = arith.addf %232, %47 : vector<8x8x8xf32>
    %cst_97 = arith.constant dense<0xFF800000> : vector<8x8xf32>
    %234 = vector.multi_reduction <maximumf>, %233, %cst_97 [2] : vector<8x8x8xf32> to vector<8x8xf32>
    %235 = vector.shape_cast %234 : vector<8x8xf32> to vector<8x8x1xf32>
    %236 = vector.broadcast %235 : vector<8x8x1xf32> to vector<8x8x8xf32>
    %237 = arith.subf %233, %236 : vector<8x8x8xf32>
    %238 = math.exp %237 : vector<8x8x8xf32>
    %cst_98 = arith.constant dense<0.000000e+00> : vector<8x8xf32>
    %239 = vector.multi_reduction <add>, %238, %cst_98 [2] : vector<8x8x8xf32> to vector<8x8xf32>
    %240 = vector.shape_cast %239 : vector<8x8xf32> to vector<8x8x1xf32>
    %241 = tpu.reciprocal %240 {approx = true} : vector<8x8x1xf32> -> vector<8x8x1xf32>
    %242 = vector.broadcast %241 : vector<8x8x1xf32> to vector<8x8x8xf32>
    %243 = arith.mulf %238, %242 : vector<8x8x8xf32>
    %244 = arith.truncf %243 : vector<8x8x8xf32> to vector<8x8x8xbf16>
    %245 = arith.truncf %227 : vector<8x8x16xf32> to vector<8x8x16xbf16>
    "tpu.trace_start"() <{level = 10 : i32, message = "bqk,bkd->bqd"}> : () -> ()
    %cst_99 = arith.constant dense<0.000000e+00> : vector<8x8x16xf32>
    %246 = tpu.matmul %244, %245, %cst_99 {dimension_numbers = #tpu.dot_dimension_numbers<[2], [1], [1], [2], [0, 0, 0, 1, 1, 2], [0], [0]>} : vector<8x8x8xbf16>, vector<8x8x16xbf16>, vector<8x8x16xf32> -> vector<8x8x16xf32>
    "tpu.trace_stop"() : () -> ()
    %247 = tpu.concatenate %224, %246 in 2 : vector<8x8x16xf32>, vector<8x8x16xf32> -> vector<8x8x32xf32>
    %248 = vector.shape_cast %247 : vector<8x8x32xf32> to vector<64x32xf32>
    %c1_100 = arith.constant 1 : index
    %c0_101 = arith.constant 0 : index
    %c0_102 = arith.constant 0 : index
    %249 = vector.load %arg10[%c1_100, %c0_101, %c0_102] : memref<2x32x32xbf16, #tpu.memory_space<vmem>>, vector<1x32x32xbf16>
    %250 = vector.shape_cast %249 : vector<1x32x32xbf16> to vector<32x32xbf16>
    %251 = arith.truncf %248 : vector<64x32xf32> to vector<64x32xbf16>
    %cst_103 = arith.constant dense<0.000000e+00> : vector<64x32xf32>
    %252 = tpu.matmul %251, %250, %cst_103 {dimension_numbers = #tpu.dot_dimension_numbers<[1], [0], [0], [1], [0, 0, 1, 1], [], []>} : vector<64x32xbf16>, vector<32x32xbf16>, vector<64x32xf32> -> vector<64x32xf32>
    %c1_104 = arith.constant 1 : index
    %c0_105 = arith.constant 0 : index
    %c0_106 = arith.constant 0 : index
    %253 = vector.load %arg11[%c1_104, %c0_105, %c0_106] : memref<2x1x32xf32, #tpu.memory_space<vmem>>, vector<1x1x32xf32>
    %254 = vector.shape_cast %253 : vector<1x1x32xf32> to vector<1x32xf32>
    %255 = vector.broadcast %254 : vector<1x32xf32> to vector<64x32xf32>
    %256 = arith.addf %252, %255 : vector<64x32xf32>
    %257 = arith.addf %256, %193 : vector<64x32xf32>
    %c1_107 = arith.constant 1 : index
    %c0_108 = arith.constant 0 : index
    %c0_109 = arith.constant 0 : index
    %258 = vector.load %arg12[%c1_107, %c0_108, %c0_109] : memref<2x1x32xf32, #tpu.memory_space<vmem>>, vector<1x1x32xf32>
    %259 = vector.shape_cast %258 : vector<1x1x32xf32> to vector<1x32xf32>
    %c1_110 = arith.constant 1 : index
    %c0_111 = arith.constant 0 : index
    %c0_112 = arith.constant 0 : index
    %260 = vector.load %arg13[%c1_110, %c0_111, %c0_112] : memref<2x1x32xf32, #tpu.memory_space<vmem>>, vector<1x1x32xf32>
    %261 = vector.shape_cast %260 : vector<1x1x32xf32> to vector<1x32xf32>
    %cst_113 = arith.constant dense<0.000000e+00> : vector<64xf32>
    %262 = vector.multi_reduction <add>, %257, %cst_113 [1] : vector<64x32xf32> to vector<64xf32>
    %263 = vector.shape_cast %262 : vector<64xf32> to vector<64x1xf32>
    %cst_114 = arith.constant 3.200000e+01 : f32
    %264 = vector.broadcast %cst_114 : f32 to vector<64x1xf32>
    %265 = arith.divf %263, %264 : vector<64x1xf32>
    %266 = vector.broadcast %265 : vector<64x1xf32> to vector<64x32xf32>
    %267 = arith.subf %257, %266 : vector<64x32xf32>
    %268 = arith.mulf %267, %267 : vector<64x32xf32>
    %cst_115 = arith.constant dense<0.000000e+00> : vector<64xf32>
    %269 = vector.multi_reduction <add>, %268, %cst_115 [1] : vector<64x32xf32> to vector<64xf32>
    %270 = vector.shape_cast %269 : vector<64xf32> to vector<64x1xf32>
    %cst_116 = arith.constant 3.200000e+01 : f32
    %271 = vector.broadcast %cst_116 : f32 to vector<64x1xf32>
    %272 = arith.divf %270, %271 : vector<64x1xf32>
    %273 = vector.broadcast %265 : vector<64x1xf32> to vector<64x32xf32>
    %274 = arith.subf %257, %273 : vector<64x32xf32>
    %cst_117 = arith.constant 9.99999996E-13 : f32
    %275 = vector.broadcast %cst_117 : f32 to vector<64x1xf32>
    %276 = arith.addf %272, %275 : vector<64x1xf32>
    %277 = math.rsqrt %276 : vector<64x1xf32>
    %278 = vector.broadcast %277 : vector<64x1xf32> to vector<64x32xf32>
    %279 = arith.mulf %274, %278 : vector<64x32xf32>
    %280 = vector.broadcast %259 : vector<1x32xf32> to vector<64x32xf32>
    %281 = arith.mulf %279, %280 : vector<64x32xf32>
    %282 = vector.broadcast %261 : vector<1x32xf32> to vector<64x32xf32>
    %283 = arith.addf %281, %282 : vector<64x32xf32>
    %c1_118 = arith.constant 1 : index
    %c0_119 = arith.constant 0 : index
    %c0_120 = arith.constant 0 : index
    %284 = vector.load %arg14[%c1_118, %c0_119, %c0_120] : memref<2x32x64xbf16, #tpu.memory_space<vmem>>, vector<1x32x64xbf16>
    %285 = vector.shape_cast %284 : vector<1x32x64xbf16> to vector<32x64xbf16>
    %286 = arith.truncf %283 : vector<64x32xf32> to vector<64x32xbf16>
    %cst_121 = arith.constant dense<0.000000e+00> : vector<64x64xf32>
    %287 = tpu.matmul %286, %285, %cst_121 {dimension_numbers = #tpu.dot_dimension_numbers<[1], [0], [0], [1], [0, 0, 1, 1], [], []>} : vector<64x32xbf16>, vector<32x64xbf16>, vector<64x64xf32> -> vector<64x64xf32>
    %c1_122 = arith.constant 1 : index
    %c0_123 = arith.constant 0 : index
    %c0_124 = arith.constant 0 : index
    %288 = vector.load %arg15[%c1_122, %c0_123, %c0_124] : memref<2x1x64xf32, #tpu.memory_space<vmem>>, vector<1x1x64xf32>
    %289 = vector.shape_cast %288 : vector<1x1x64xf32> to vector<1x64xf32>
    %290 = vector.broadcast %289 : vector<1x64xf32> to vector<64x64xf32>
    %291 = arith.addf %287, %290 : vector<64x64xf32>
    %292 = arith.mulf %291, %291 : vector<64x64xf32>
    %293 = arith.mulf %291, %292 : vector<64x64xf32>
    %cst_125 = arith.constant 4.471500e-02 : f32
    %294 = vector.broadcast %cst_125 : f32 to vector<64x64xf32>
    %295 = arith.mulf %294, %293 : vector<64x64xf32>
    %296 = arith.addf %291, %295 : vector<64x64xf32>
    %cst_126 = arith.constant 0.797884583 : f32
    %297 = vector.broadcast %cst_126 : f32 to vector<64x64xf32>
    %298 = arith.mulf %297, %296 : vector<64x64xf32>
    %299 = math.tanh %298 : vector<64x64xf32>
    %cst_127 = arith.constant 1.000000e+00 : f32
    %300 = vector.broadcast %cst_127 : f32 to vector<64x64xf32>
    %301 = arith.addf %300, %299 : vector<64x64xf32>
    %cst_128 = arith.constant 5.000000e-01 : f32
    %302 = vector.broadcast %cst_128 : f32 to vector<64x64xf32>
    %303 = arith.mulf %302, %301 : vector<64x64xf32>
    %304 = arith.mulf %291, %303 : vector<64x64xf32>
    %c1_129 = arith.constant 1 : index
    %c0_130 = arith.constant 0 : index
    %c0_131 = arith.constant 0 : index
    %305 = vector.load %arg16[%c1_129, %c0_130, %c0_131] : memref<2x64x32xbf16, #tpu.memory_space<vmem>>, vector<1x64x32xbf16>
    %306 = vector.shape_cast %305 : vector<1x64x32xbf16> to vector<64x32xbf16>
    %307 = arith.truncf %304 : vector<64x64xf32> to vector<64x64xbf16>
    %cst_132 = arith.constant dense<0.000000e+00> : vector<64x32xf32>
    %308 = tpu.matmul %307, %306, %cst_132 {dimension_numbers = #tpu.dot_dimension_numbers<[1], [0], [0], [1], [0, 0, 1, 1], [], []>} : vector<64x64xbf16>, vector<64x32xbf16>, vector<64x32xf32> -> vector<64x32xf32>
    %c1_133 = arith.constant 1 : index
    %c0_134 = arith.constant 0 : index
    %c0_135 = arith.constant 0 : index
    %309 = vector.load %arg17[%c1_133, %c0_134, %c0_135] : memref<2x1x32xf32, #tpu.memory_space<vmem>>, vector<1x1x32xf32>
    %310 = vector.shape_cast %309 : vector<1x1x32xf32> to vector<1x32xf32>
    %311 = vector.broadcast %310 : vector<1x32xf32> to vector<64x32xf32>
    %312 = arith.addf %308, %311 : vector<64x32xf32>
    %313 = arith.addf %312, %283 : vector<64x32xf32>
    %c1_136 = arith.constant 1 : index
    %c0_137 = arith.constant 0 : index
    %c0_138 = arith.constant 0 : index
    %314 = vector.load %arg18[%c1_136, %c0_137, %c0_138] : memref<2x1x32xf32, #tpu.memory_space<vmem>>, vector<1x1x32xf32>
    %315 = vector.shape_cast %314 : vector<1x1x32xf32> to vector<1x32xf32>
    %c1_139 = arith.constant 1 : index
    %c0_140 = arith.constant 0 : index
    %c0_141 = arith.constant 0 : index
    %316 = vector.load %arg19[%c1_139, %c0_140, %c0_141] : memref<2x1x32xf32, #tpu.memory_space<vmem>>, vector<1x1x32xf32>
    %317 = vector.shape_cast %316 : vector<1x1x32xf32> to vector<1x32xf32>
    %cst_142 = arith.constant dense<0.000000e+00> : vector<64xf32>
    %318 = vector.multi_reduction <add>, %313, %cst_142 [1] : vector<64x32xf32> to vector<64xf32>
    %319 = vector.shape_cast %318 : vector<64xf32> to vector<64x1xf32>
    %cst_143 = arith.constant 3.200000e+01 : f32
    %320 = vector.broadcast %cst_143 : f32 to vector<64x1xf32>
    %321 = arith.divf %319, %320 : vector<64x1xf32>
    %322 = vector.broadcast %321 : vector<64x1xf32> to vector<64x32xf32>
    %323 = arith.subf %313, %322 : vector<64x32xf32>
    %324 = arith.mulf %323, %323 : vector<64x32xf32>
    %cst_144 = arith.constant dense<0.000000e+00> : vector<64xf32>
    %325 = vector.multi_reduction <add>, %324, %cst_144 [1] : vector<64x32xf32> to vector<64xf32>
    %326 = vector.shape_cast %325 : vector<64xf32> to vector<64x1xf32>
    %cst_145 = arith.constant 3.200000e+01 : f32
    %327 = vector.broadcast %cst_145 : f32 to vector<64x1xf32>
    %328 = arith.divf %326, %327 : vector<64x1xf32>
    %329 = vector.broadcast %321 : vector<64x1xf32> to vector<64x32xf32>
    %330 = arith.subf %313, %329 : vector<64x32xf32>
    %cst_146 = arith.constant 9.99999996E-13 : f32
    %331 = vector.broadcast %cst_146 : f32 to vector<64x1xf32>
    %332 = arith.addf %328, %331 : vector<64x1xf32>
    %333 = math.rsqrt %332 : vector<64x1xf32>
    %334 = vector.broadcast %333 : vector<64x1xf32> to vector<64x32xf32>
    %335 = arith.mulf %330, %334 : vector<64x32xf32>
    %336 = vector.broadcast %315 : vector<1x32xf32> to vector<64x32xf32>
    %337 = arith.mulf %335, %336 : vector<64x32xf32>
    %338 = vector.broadcast %317 : vector<1x32xf32> to vector<64x32xf32>
    %339 = arith.addf %337, %338 : vector<64x32xf32>
    %340 = vector.shape_cast %339 : vector<64x32xf32> to vector<8x8x32xf32>
    %341 = vector.extract_strided_slice %340 {offsets = [0, 0, 0], sizes = [8, 1, 32], strides = [1, 1, 1]} : vector<8x8x32xf32> to vector<8x1x32xf32>
    %342 = vector.shape_cast %341 : vector<8x1x32xf32> to vector<8x32xf32>
    %c0_147 = arith.constant 0 : index
    %c0_148 = arith.constant 0 : index
    %343 = vector.load %arg20[%c0_147, %c0_148] : memref<32x32xbf16, #tpu.memory_space<vmem>>, vector<32x32xbf16>
    %344 = arith.truncf %342 : vector<8x32xf32> to vector<8x32xbf16>
    %cst_149 = arith.constant dense<0.000000e+00> : vector<8x32xf32>
    %345 = tpu.matmul %344, %343, %cst_149 {dimension_numbers = #tpu.dot_dimension_numbers<[1], [0], [0], [1], [0, 0, 1, 1], [], []>} : vector<8x32xbf16>, vector<32x32xbf16>, vector<8x32xf32> -> vector<8x32xf32>
    %c0_150 = arith.constant 0 : index
    %c0_151 = arith.constant 0 : index
    %346 = vector.load %arg21[%c0_150, %c0_151] : memref<1x32xf32, #tpu.memory_space<vmem>>, vector<1x32xf32>
    %347 = vector.broadcast %346 : vector<1x32xf32> to vector<8x32xf32>
    %348 = arith.addf %345, %347 : vector<8x32xf32>
    %349 = math.tanh %348 : vector<8x32xf32>
    %c0_152 = arith.constant 0 : index
    %c0_153 = arith.constant 0 : index
    %350 = vector.load %arg22[%c0_152, %c0_153] : memref<32x128xbf16, #tpu.memory_space<vmem>>, vector<32x128xbf16>
    %351 = arith.truncf %349 : vector<8x32xf32> to vector<8x32xbf16>
    %cst_154 = arith.constant dense<0.000000e+00> : vector<8x128xf32>
    %352 = tpu.matmul %351, %350, %cst_154 {dimension_numbers = #tpu.dot_dimension_numbers<[1], [0], [0], [1], [0, 0, 1, 1], [], []>} : vector<8x32xbf16>, vector<32x128xbf16>, vector<8x128xf32> -> vector<8x128xf32>
    %c0_155 = arith.constant 0 : index
    %c0_156 = arith.constant 0 : index
    %353 = vector.load %arg23[%c0_155, %c0_156] : memref<1x128xf32, #tpu.memory_space<vmem>>, vector<1x128xf32>
    %354 = vector.broadcast %353 : vector<1x128xf32> to vector<8x128xf32>
    %355 = arith.addf %352, %354 : vector<8x128xf32>
    %356 = arith.negf %355 : vector<8x128xf32>
    %357 = math.exp %356 : vector<8x128xf32>
    %cst_157 = arith.constant 1.000000e+00 : f32
    %358 = vector.broadcast %cst_157 : f32 to vector<8x128xf32>
    %359 = arith.addf %358, %357 : vector<8x128xf32>
    %360 = arith.divf %358, %359 : vector<8x128xf32>
    %c0_158 = arith.constant 0 : index
    %c0_159 = arith.constant 0 : index
    %361 = vector.load %arg24[%c0_158, %c0_159] : memref<8x128xf32, #tpu.memory_space<vmem>>, vector<8x128xf32>
    tpu.vector_store %arg24[%c0_158, %c0_159], %360 {strides = array<i32>} : memref<8x128xf32, #tpu.memory_space<vmem>>, vector<8x128xf32>,
    return
  }
  func.func @transform_0(%arg0: i32) -> (i32, i32) {
    %c0_i32 = arith.constant 0 : i32
    %c0_i32_0 = arith.constant 0 : i32
    return %arg0, %c0_i32 : i32, i32
  }
  func.func @transform_1(%arg0: i32) -> (i32, i32) {
    %c0_i32 = arith.constant 0 : i32
    %c0_i32_0 = arith.constant 0 : i32
    return %arg0, %c0_i32 : i32, i32
  }
  func.func @transform_2(%arg0: i32) -> (i32, i32) {
    %c0_i32 = arith.constant 0 : i32
    %c0_i32_0 = arith.constant 0 : i32
    %c0_i32_1 = arith.constant 0 : i32
    return %c0_i32, %c0_i32_0 : i32, i32
  }
  func.func @transform_3(%arg0: i32) -> (i32, i32) {
    %c0_i32 = arith.constant 0 : i32
    %c0_i32_0 = arith.constant 0 : i32
    %c0_i32_1 = arith.constant 0 : i32
    return %c0_i32, %c0_i32_0 : i32, i32
  }
  func.func @transform_4(%arg0: i32) -> (i32, i32) {
    %c0_i32 = arith.constant 0 : i32
    %c0_i32_0 = arith.constant 0 : i32
    %c0_i32_1 = arith.constant 0 : i32
    return %c0_i32, %c0_i32_0 : i32, i32
  }
  func.func @transform_5(%arg0: i32) -> (i32, i32) {
    %c0_i32 = arith.constant 0 : i32
    %c0_i32_0 = arith.constant 0 : i32
    %c0_i32_1 = arith.constant 0 : i32
    return %c0_i32, %c0_i32_0 : i32, i32
  }
  func.func @transform_6(%arg0: i32) -> (i32, i32) {
    %c0_i32 = arith.constant 0 : i32
    %c0_i32_0 = arith.constant 0 : i32
    %c0_i32_1 = arith.constant 0 : i32
    return %c0_i32, %c0_i32_0 : i32, i32
  }
  func.func @transform_7(%arg0: i32) -> (i32, i32, i32) {
    %c0_i32 = arith.constant 0 : i32
    %c0_i32_0 = arith.constant 0 : i32
    %c0_i32_1 = arith.constant 0 : i32
    %c0_i32_2 = arith.constant 0 : i32
    return %c0_i32, %c0_i32_0, %c0_i32_1 : i32, i32, i32
  }
  func.func @transform_8(%arg0: i32) -> (i32, i32, i32) {
    %c0_i32 = arith.constant 0 : i32
    %c0_i32_0 = arith.constant 0 : i32
    %c0_i32_1 = arith.constant 0 : i32
    %c0_i32_2 = arith.constant 0 : i32
    return %c0_i32, %c0_i32_0, %c0_i32_1 : i32, i32, i32
  }
  func.func @transform_9(%arg0: i32) -> (i32, i32, i32) {
    %c0_i32 = arith.constant 0 : i32
    %c0_i32_0 = arith.constant 0 : i32
    %c0_i32_1 = arith.constant 0 : i32
    %c0_i32_2 = arith.constant 0 : i32
    return %c0_i32, %c0_i32_0, %c0_i32_1 : i32, i32, i32
  }
  func.func @transform_10(%arg0: i32) -> (i32, i32, i32) {
    %c0_i32 = arith.constant 0 : i32
    %c0_i32_0 = arith.constant 0 : i32
    %c0_i32_1 = arith.constant 0 : i32
    %c0_i32_2 = arith.constant 0 : i32
    return %c0_i32, %c0_i32_0, %c0_i32_1 : i32, i32, i32
  }
  func.func @transform_11(%arg0: i32) -> (i32, i32, i32) {
    %c0_i32 = arith.constant 0 : i32
    %c0_i32_0 = arith.constant 0 : i32
    %c0_i32_1 = arith.constant 0 : i32
    %c0_i32_2 = arith.constant 0 : i32
    return %c0_i32, %c0_i32_0, %c0_i32_1 : i32, i32, i32
  }
  func.func @transform_12(%arg0: i32) -> (i32, i32, i32) {
    %c0_i32 = arith.constant 0 : i32
    %c0_i32_0 = arith.constant 0 : i32
    %c0_i32_1 = arith.constant 0 : i32
    %c0_i32_2 = arith.constant 0 : i32
    return %c0_i32, %c0_i32_0, %c0_i32_1 : i32, i32, i32
  }
  func.func @transform_13(%arg0: i32) -> (i32, i32, i32) {
    %c0_i32 = arith.constant 0 : i32
    %c0_i32_0 = arith.constant 0 : i32
    %c0_i32_1 = arith.constant 0 : i32
    %c0_i32_2 = arith.constant 0 : i32
    return %c0_i32, %c0_i32_0, %c0_i32_1 : i32, i32, i32
  }
  func.func @transform_14(%arg0: i32) -> (i32, i32, i32) {
    %c0_i32 = arith.constant 0 : i32
    %c0_i32_0 = arith.constant 0 : i32
    %c0_i32_1 = arith.constant 0 : i32
    %c0_i32_2 = arith.constant 0 : i32
    return %c0_i32, %c0_i32_0, %c0_i32_1 : i32, i32, i32
  }
  func.func @transform_15(%arg0: i32) -> (i32, i32, i32) {
    %c0_i32 = arith.constant 0 : i32
    %c0_i32_0 = arith.constant 0 : i32
    %c0_i32_1 = arith.constant 0 : i32
    %c0_i32_2 = arith.constant 0 : i32
    return %c0_i32, %c0_i32_0, %c0_i32_1 : i32, i32, i32
  }
  func.func @transform_16(%arg0: i32) -> (i32, i32, i32) {
    %c0_i32 = arith.constant 0 : i32
    %c0_i32_0 = arith.constant 0 : i32
    %c0_i32_1 = arith.constant 0 : i32
    %c0_i32_2 = arith.constant 0 : i32
    return %c0_i32, %c0_i32_0, %c0_i32_1 : i32, i32, i32
  }
  func.func @transform_17(%arg0: i32) -> (i32, i32, i32) {
    %c0_i32 = arith.constant 0 : i32
    %c0_i32_0 = arith.constant 0 : i32
    %c0_i32_1 = arith.constant 0 : i32
    %c0_i32_2 = arith.constant 0 : i32
    return %c0_i32, %c0_i32_0, %c0_i32_1 : i32, i32, i32
  }
  func.func @transform_18(%arg0: i32) -> (i32, i32, i32) {
    %c0_i32 = arith.constant 0 : i32
    %c0_i32_0 = arith.constant 0 : i32
    %c0_i32_1 = arith.constant 0 : i32
    %c0_i32_2 = arith.constant 0 : i32
    return %c0_i32, %c0_i32_0, %c0_i32_1 : i32, i32, i32
  }
  func.func @transform_19(%arg0: i32) -> (i32, i32) {
    %c0_i32 = arith.constant 0 : i32
    %c0_i32_0 = arith.constant 0 : i32
    %c0_i32_1 = arith.constant 0 : i32
    return %c0_i32, %c0_i32_0 : i32, i32
  }
  func.func @transform_20(%arg0: i32) -> (i32, i32) {
    %c0_i32 = arith.constant 0 : i32
    %c0_i32_0 = arith.constant 0 : i32
    %c0_i32_1 = arith.constant 0 : i32
    return %c0_i32, %c0_i32_0 : i32, i32
  }
  func.func @transform_21(%arg0: i32) -> (i32, i32) {
    %c0_i32 = arith.constant 0 : i32
    %c0_i32_0 = arith.constant 0 : i32
    %c0_i32_1 = arith.constant 0 : i32
    return %c0_i32, %c0_i32_0 : i32, i32
  }
  func.func @transform_22(%arg0: i32) -> (i32, i32) {
    %c0_i32 = arith.constant 0 : i32
    %c0_i32_0 = arith.constant 0 : i32
    %c0_i32_1 = arith.constant 0 : i32
    return %c0_i32, %c0_i32_0 : i32, i32
  }
  func.func @transform_23(%arg0: i32) -> (i32, i32) {
    %c0_i32 = arith.constant 0 : i32
    %c0_i32_0 = arith.constant 0 : i32
    return %arg0, %c0_i32 : i32, i32
  }
}

</mosaic_0001>

<bundles_post_ra>
// kernel: bert_multilabel_forward.1
= control target key start
LH: loop header
LB: loop body
LE: loop exit
PB: predicated region body
PF: predicated region fallthrough
CT: control target
= control target key end

     0   :  { %v7206_v0 = vmov 0   ;;  %vm203_vm0 = vcmask 1041408   ;;  %v7207_v17 = vmov 0.0   ;;  %v83_v18 = vlaneseq  ;;  %s7210_s27 = smov 64   ;;  %s7215_s25 = smov 16   ;;  %s8916_s0 = inlined_call_operand.vmem [shape: s32[64,1], index: 0, kind: input, shape index: {}]   ;;  %s8917_s2 = inlined_call_operand.vmem [shape: bf16[100,32], index: 2, kind: input, shape index: {}]   ;;  %s8918_s3 = inlined_call_operand.vmem [shape: f32[16,32], index: 3, kind: input, shape index: {}]   ;;  %s8919_s4 = inlined_call_operand.vmem [shape: f32[2,32], index: 4, kind: input, shape index: {}]   ;;  %s8920_s7 = inlined_call_operand.vmem [shape: bf16[2,32,96], index: 7, kind: input, shape index: {}]   ;;  %s8921_s5 = inlined_call_operand.vmem [shape: f32[1,32], index: 5, kind: input, shape index: {}]   ;;  %s8922_s6 = inlined_call_operand.vmem [shape: f32[1,32], index: 6, kind: input, shape index: {}]   ;;  %s8923_s8 = inlined_call_operand.vmem [shape: f32[2,1,96], index: 8, kind: input, shape index: {}]   ;;  %s8924_s1 = inlined_call_operand.vmem [shape: s32[8,8], index: 1, kind: input, shape index: {}]   ;;  %s8925_s9 = inlined_call_operand.vmem [shape: bf16[2,32,32], index: 9, kind: input, shape index: {}]   ;;  %s8926_s10 = inlined_call_operand.vmem [shape: f32[2,1,32], index: 10, kind: input, shape index: {}]   ;;  %s8927_s13 = inlined_call_operand.vmem [shape: bf16[2,32,64], index: 13, kind: input, shape index: {}]   ;;  %s8928_s11 = inlined_call_operand.vmem [shape: f32[2,1,32], index: 11, kind: input, shape index: {}]   ;;  %s8929_s12 = inlined_call_operand.vmem [shape: f32[2,1,32], index: 12, kind: input, shape index: {}]   ;;  %s8930_s15 = inlined_call_operand.vmem [shape: bf16[2,64,32], index: 15, kind: input, shape index: {}]   ;;  %s8931_s14 = inlined_call_operand.vmem [shape: f32[2,1,64], index: 14, kind: input, shape index: {}]   ;;  %s8932_s16 = inlined_call_operand.vmem [shape: f32[2,1,32], index: 16, kind: input, shape index: {}]   ;;  %s8933_s17 = inlined_call_operand.vmem [shape: f32[2,1,32], index: 17, kind: input, shape index: {}]   ;;  %s8934_s18 = inlined_call_operand.vmem [shape: f32[2,1,32], index: 18, kind: input, shape index: {}]   ;;  %s8935_s19 = inlined_call_operand.vmem [shape: bf16[32,32], index: 19, kind: input, shape index: {}]   ;;  %s8936_s21 = inlined_call_operand.vmem [shape: bf16[32,128], index: 21, kind: input, shape index: {}]   ;;  %s8937_s20 = inlined_call_operand.vmem [shape: f32[1,32], index: 20, kind: input, shape index: {}]   ;;  %s8938_s22 = inlined_call_operand.vmem [shape: f32[1,128], index: 22, kind: input, shape index: {}]   ;;  %s8939_s23 = inlined_call_operand.vmem [shape: f32[8,128], index: 23, kind: output, shape index: {}]  }
   0x1   :  { %8944 = sst [smem:[#allocation2_spill]] %s8916_s0  ;;  %6888 = vset.pattern.permute.xlu1 %v7206_v0  ;;  %6887 = vset.pattern.permute.xlu0 %v7206_v0  ;;  %vm190_vm5 = vcmask 818176   ;;  %vm287_vm10 = vcmask 261120   ;;  %vm7208_vm11 = vmmov 0   ;;  %vm630_vm12 = vcmask 130048   ;;  %s7213_s0 = smov 112  }
   0x2   :  { %8945 = sst [smem:[#allocation3_spill]] %s8917_s2  ;;  %s8952_s24 = sld [smem:[#allocation2_spill]]  ;;  %v84_v19 = vand.u32 127, %v83_v18  ;;  %vm1138_vm13 = vcmask 1043456   ;;  %vm1036_vm14 = vcmask 64512   ;;  %vm2919_vm15 = vcmask 523264  }
   0x3   :  { %8946 = sst [smem:[#allocation4_spill]] %s8918_s3  ;;  %s8953_s28 = sld [smem:[#allocation3_spill]] }
   0x4   :  { %8947 = sst [smem:[#allocation5_spill]] %s8919_s4  ;;  %s8954_s2 = sld [smem:[#allocation4_spill]] }
   0x5   :  { %8948 = sst [smem:[#allocation6_spill]] %s8920_s7  ;;  %s7214_s7 = smov 48  }
   0x6   :  { %8949 = sst [smem:[#allocation7_spill]] %s8921_s5  ;;  %s8956_s29 = sld [smem:[#allocation6_spill]] }
   0x7   :  { %8950 = sst [smem:[#allocation8_spill]] %s8922_s6  ;;  %s8955_s6 = sld [smem:[#allocation5_spill]] }
   0x8   :  { %8951 = sst [smem:[#allocation9_spill]] %s8923_s8  ;;  %v77_v1 = vld [vmem:[%s8952_s24 + $0x10] sm:$0xff]  ;;  %v75_v2 = vld [vmem:[%s8952_s24] sm:$0xff]  ;;  %v78_v3 = vld [vmem:[%s8952_s24 + $0x18] sm:$0xff]  ;;  %s8958_s5 = sld [smem:[#allocation8_spill]] }
   0x9   :  { %92 = vperm.xlu1 %6888, %v77_v1   ;;  %86 = vperm.xlu0 %6887, %v75_v2   ;;  %v76_v4 = vld [vmem:[%s8952_s24 + $0x8] sm:$0xff]  ;;  %v6929_v5 = vld [vmem:[%s8953_s28] sm:$0xff]   ;;  %v6931_v9 = vld [vmem:[%s8953_s28 + $0x10] sm:$0xff]   ;;  %s8959_s3 = sld [smem:[#allocation9_spill]] }
   0xa   :  { %v6930_v6 = vld [vmem:[%s8953_s28 + $0x8] sm:$0xff]   ;;  %v79_v8 = vld [vmem:[%s8952_s24 + $0x20] sm:$0xff]  ;;  %6350 = vmatprep.subr.bf16.mxu0 %v6929_v5  ;;  %v82_v10 = vld [vmem:[%s8952_s24 + $0x38] sm:$0xff] }
   0xb   :  { %v80_v7 = vld [vmem:[%s8952_s24 + $0x28] sm:$0xff]  ;;  %6351 = vmatpush3.bf16.msra.mxu0 %v6929_v5  ;;  %v81_v11 = vld [vmem:[%s8952_s24 + $0x30] sm:$0xff]  ;;  %v6932_v12 = vld [vmem:[%s8953_s28 + $0x18] sm:$0xff]   ;;  %s8957_s24 = sld [smem:[#allocation7_spill]] }
   0xc   :  { %6352 = vmatprep.subr.bf16.mxu0 %v6930_v6  ;;  %v6933_v13 = vld [vmem:[%s8953_s28 + $0x20] sm:$0xff]   ;;  %v6934_v14 = vld [vmem:[%s8953_s28 + $0x28] sm:$0xff]   ;;  %v6935_v15 = vld [vmem:[%s8953_s28 + $0x30] ss:$0 sps:$4 sm:$0x33]  }
   0xd   :  { %95 = vperm.xlu1 %6888, %v78_v3   ;;  %89 = vperm.xlu0 %6887, %v76_v4   ;;  %v205_v16 = vsel %vm203_vm0, %v6935_v15, 0  ;;  %v150_v40 = vld [vmem:[%s8954_s2] sm:$0xff] }
   0xe   :  { %v5981_v43 = vld [vmem:[%s8955_s6] ss:$0 sm:$0xff]  ;;  %s7209_s6 = smov 96  }
   0xf   :  { %6353 = vmatpush3.bf16.msra.mxu0 %v6930_v6 }
  0x10   :  { %6354 = vmatprep.subr.bf16.mxu0 %v6931_v9 }
  0x11   :  { %101 = vperm.xlu1 %6888, %v80_v7   ;;  %98 = vperm.xlu0 %6887, %v79_v8  }
  0x13   :  { %6355 = vmatpush3.bf16.msra.mxu0 %v6931_v9 }
  0x14   :  { %6356 = vmatprep.subr.bf16.mxu0 %v6932_v12 }
  0x15   :  { %107 = vperm.xlu1 %6888, %v82_v10   ;;  %104 = vperm.xlu0 %6887, %v81_v11  }
  0x17   :  { %6357 = vmatpush3.bf16.msra.mxu0 %v6932_v12 }
  0x18   :  { %6358 = vmatprep.subr.bf16.mxu0 %v6933_v13 }
  0x1b   :  { %6359 = vmatpush3.bf16.msra.mxu0 %v6933_v13 }
  0x1c   :  { %6360 = vmatprep.subr.bf16.mxu0 %v6934_v14 }
  0x1f   :  { %6361 = vmatpush3.bf16.msra.mxu0 %v6934_v14 }
  0x20   :  { %6876 = vmatprep.subr.msk.bf16.mxu0 %vm203_vm0, %v6935_v15  ;;  %vm5807_vm0 = vcmask 1041409  }
  0x23   :  { %6363 = vmatpush3.bf16.msra.mxu0 %v205_v16 }
  0x24   :  { %6402 = vmatprep.subr.bf16.mxu0 %v7207_v17 }
  0x88   :  { %v93_v20 = vpop.permute.xlu1 %92  ;;  %v87_v21 = vpop.permute.xlu0 %86 }
  0x89   :  { %vm111_vm1 = vcmp.eq.s32.totalorder %v84_v19, %v93_v20  ;;  %vm109_vm2 = vcmp.eq.s32.totalorder %v84_v19, %v87_v21 }
  0x8a   :  { %v5964_v24 = vsel %vm111_vm1, 1.0, %v7207_v17  ;;  %v5962_v26 = vsel %vm109_vm2, 1.0, %v7207_v17  ;;  %vm5810_vm1 = vcmask 1042434   ;;  %vm5813_vm2 = vcmask 1043459  }
  0x8c   :  { %v96_v22 = vpop.permute.xlu1 %95  ;;  %v90_v23 = vpop.permute.xlu0 %89 }
  0x8d   :  { %vm112_vm3 = vcmp.eq.s32.totalorder %v84_v19, %v96_v22  ;;  %vm110_vm4 = vcmp.eq.s32.totalorder %v84_v19, %v90_v23 }
  0x8e   :  { %v5965_v25 = vsel %vm112_vm3, 1.0, %v7207_v17  ;;  %v5963_v27 = vsel %vm110_vm4, 1.0, %v7207_v17  ;;  %vm5816_vm3 = vcmask 1044484   ;;  %vm5819_vm4 = vcmask 1045509  }
  0x8f   :  { %v134_v28 = vpack.c.bf16 %v5965_v25, %v5964_v24  ;;  %v133_v29 = vpack.c.bf16 %v5963_v27, %v5962_v26 }
  0x90   :  { %v102_v30 = vpop.permute.xlu1 %101  ;;  %v99_v31 = vpop.permute.xlu0 %98 }
  0x91   :  { %vm114_vm6 = vcmp.eq.s32.totalorder %v84_v19, %v102_v30  ;;  %vm113_vm7 = vcmp.eq.s32.totalorder %v84_v19, %v99_v31  ;;  %6364 = vmatprep.mubr.msk.bf16.mxu0 %vm190_vm5, %v133_v29 }
  0x92   :  { %v5967_v32 = vsel %vm114_vm6, 1.0, %v7207_v17  ;;  %v5966_v33 = vsel %vm113_vm7, 1.0, %v7207_v17  ;;  %6365 = vmatmul.mubr.msk.bf16.vlgmr.msra.gmra.mrb[0].mxu0 %vm190_vm5, %v134_v28  ;;  %vm5825_vm6 = vcmask 1047559  }
  0x93   :  { %v135_v34 = vpack.c.bf16 %v5967_v32, %v5966_v33 }
  0x94   :  { %v108_v35 = vpop.permute.xlu1 %107  ;;  %v105_v36 = vpop.permute.xlu0 %104 }
  0x95   :  { %vm116_vm8 = vcmp.eq.s32.totalorder %v84_v19, %v108_v35  ;;  %vm115_vm9 = vcmp.eq.s32.totalorder %v84_v19, %v105_v36  ;;  %6368 = vmatprep.mubr.msk.bf16.mxu0 %vm190_vm5, %v135_v34 }
  0x96   :  { %v5969_v37 = vsel %vm116_vm8, 1.0, %v7207_v17  ;;  %v5968_v38 = vsel %vm115_vm9, 1.0, %v7207_v17 }
  0x97   :  { %v136_v39 = vpack.c.bf16 %v5969_v37, %v5968_v38 }
  0x9a   :  { %6369 = vmatmul.mubr.msk.bf16.gmra.mrb[4].mxu0 %vm190_vm5, %v136_v39  ;;  %vm5822_vm5 = vcmask 1046534  }
  0x9b   :  { %6404 = vmatprep.mubr.msk.bf16.mxu0 %vm7208_vm11, %v7207_v17 }
 0x165   :  { %v6366_v41 = vpop.f32.mrb[0].mxu0 }
 0x166   :  { %v241_v42 = vpop.f32.mrb[1].mxu0  ;;  %v250_v44 = vadd.f32 %v6366_v41, %v150_v40 }
 0x167   :  { %v242_v45 = vadd.f32 %v241_v42, %v150_v40  ;;  %v6367_v46 = vpop.f32.mrb[2].mxu0 }
 0x168   :  { %v244_v47 = vpop.f32.mrb[3].mxu0  ;;  %v253_v50 = vadd.f32 %v6367_v46, %v150_v40  ;;  %v279_v53 = vadd.f32 %v5981_v43, %v250_v44 }
 0x169   :  { %v245_v48 = vadd.f32 %v244_v47, %v150_v40  ;;  %v277_v49 = vadd.f32 %v5981_v43, %v242_v45 }
 0x16a   :  { %v280_v57 = vadd.f32 %v5981_v43, %v253_v50  ;;  %v294_v61 = vsel %vm287_vm10, %v279_v53, 0.0 }
 0x16b   :  { %v288_v51 = vsel %vm287_vm10, %v277_v49, 0.0  ;;  %v278_v52 = vadd.f32 %v5981_v43, %v245_v48 }
 0x16c   :  { %289 = vadd.xlane.f32.xlu0 %v288_v51  ;;  %v297_v1 = vsel %vm287_vm10, %v280_v57, 0.0 }
 0x16d   :  { %v6370_v54 = vpop.f32.mrb[4].mxu0  ;;  %v291_v55 = vsel %vm287_vm10, %v278_v52, 0.0 }
 0x16e   :  { %292 = vadd.xlane.f32.xlu1 %v291_v55  ;;  %v257_v56 = vpop.f32.mrb[5].mxu0  ;;  %v266_v58 = vadd.f32 %v6370_v54, %v150_v40 }
 0x16f   :  { %v258_v59 = vadd.f32 %v257_v56, %v150_v40  ;;  %v6371_v60 = vpop.f32.mrb[6].mxu0 }
 0x170   :  { %295 = vadd.xlane.f32.xlu0 %v294_v61  ;;  %v260_v62 = vpop.f32.mrb[7].mxu0  ;;  %v269_v2 = vadd.f32 %v6371_v60, %v150_v40  ;;  %v283_v5 = vadd.f32 %v5981_v43, %v266_v58 }
 0x171   :  { %v261_v63 = vadd.f32 %v260_v62, %v150_v40  ;;  %v281_v0 = vadd.f32 %v5981_v43, %v258_v59 }
 0x172   :  { %v306_v7 = vsel %vm287_vm10, %v283_v5, 0.0  ;;  %v284_v8 = vadd.f32 %v5981_v43, %v269_v2 }
 0x173   :  { %v300_v3 = vsel %vm287_vm10, %v281_v0, 0.0  ;;  %v282_v4 = vadd.f32 %v5981_v43, %v261_v63 }
 0x174   :  { %298 = vadd.xlane.f32.xlu0 %v297_v1  ;;  %301 = vadd.xlane.f32.xlu1 %v300_v3  ;;  %v309_v9 = vsel %vm287_vm10, %v284_v8, 0.0 }
 0x175   :  { %v303_v6 = vsel %vm287_vm10, %v282_v4, 0.0 }
 0x178   :  { %304 = vadd.xlane.f32.xlu0 %v303_v6  ;;  %307 = vadd.xlane.f32.xlu1 %v306_v7 }
 0x17c   :  { %310 = vadd.xlane.f32.xlu0 %v309_v9 }
 0x1f9   :  { %v290_v10 = vpop.xlane.xlu0 %289 }
 0x1fa   :  { %v313_v11 = vmul.f32 0.03125, %v290_v10 }
 0x1fb   :  { %v293_v12 = vpop.xlane.xlu1 %292 }
 0x1fc   :  { %v7409_v13 = vsub.f32 %v277_v49, %v313_v11  ;;  %v314_v14 = vmul.f32 0.03125, %v293_v12  ;;  %v5982_v12 = vld [vmem:[%s8957_s24] ss:$0 sm:$0xff] }
 0x1fd   :  { %v296_v15 = vpop.xlane.xlu0 %295 }
 0x1fe   :  { %v7411_v16 = vsub.f32 %v278_v52, %v314_v14  ;;  %v315_v19 = vmul.f32 0.03125, %v296_v15  ;;  %v329_v20 = vmul.f32 %v7409_v13, %v7409_v13  ;;  %v6936_v52 = vld [vmem:[%s8956_s29] sm:$0xff]  }
 0x1ff   :  { %6372 = vmatprep.subr.bf16.mxu1 %v6936_v52 }
 0x200   :  { %v7415_v21 = vsub.f32 %v279_v53, %v315_v19  ;;  %v337_v22 = vsel %vm287_vm10, %v329_v20, 0.0  ;;  %v330_v23 = vmul.f32 %v7411_v16, %v7411_v16  ;;  %6373 = vmatpush3.bf16.msra.mxu1 %v6936_v52  ;;  %v6937_v53 = vld [vmem:[%s8956_s29 + $0x8] sm:$0xff]  }
 0x201   :  { %v302_v24 = vpop.xlane.xlu1 %301  ;;  %338 = vadd.xlane.f32.xlu1 %v337_v22  ;;  %v299_v25 = vpop.xlane.xlu0 %298  ;;  %6374 = vmatprep.subr.bf16.mxu1 %v6937_v53 }
 0x202   :  { %v317_v26 = vmul.f32 0.03125, %v302_v24  ;;  %v316_v27 = vmul.f32 0.03125, %v299_v25  ;;  %v340_v28 = vsel %vm287_vm10, %v330_v23, 0.0  ;;  %v331_v29 = vmul.f32 %v7415_v21, %v7415_v21 }
 0x203   :  { %341 = vadd.xlane.f32.xlu0 %v340_v28 }
 0x204   :  { %v7423_v30 = vsub.f32 %v281_v0, %v317_v26  ;;  %v7425_v31 = vsub.f32 %v280_v57, %v316_v27  ;;  %v343_v32 = vsel %vm287_vm10, %v331_v29, 0.0  ;;  %6375 = vmatpush3.bf16.msra.mxu1 %v6937_v53  ;;  %v5983_v26 = vld [vmem:[%s8958_s5] ss:$0 sm:$0xff] }
 0x205   :  { %v308_v33 = vpop.xlane.xlu1 %307  ;;  %344 = vadd.xlane.f32.xlu1 %v343_v32  ;;  %v305_v34 = vpop.xlane.xlu0 %304  ;;  %6384 = vmatprep.subr.bf16.mxu1 %v7207_v17 }
 0x206   :  { %v319_v35 = vmul.f32 0.03125, %v308_v33  ;;  %v318_v36 = vmul.f32 0.03125, %v305_v34  ;;  %v333_v37 = vmul.f32 %v7423_v30, %v7423_v30  ;;  %v332_v38 = vmul.f32 %v7425_v31, %v7425_v31 }
 0x208   :  { %v7432_v39 = vsub.f32 %v283_v5, %v319_v35  ;;  %v7434_v40 = vsub.f32 %v282_v4, %v318_v36  ;;  %v349_v41 = vsel %vm287_vm10, %v333_v37, 0.0  ;;  %v346_v42 = vsel %vm287_vm10, %v332_v38, 0.0 }
 0x209   :  { %350 = vadd.xlane.f32.xlu1 %v349_v41  ;;  %347 = vadd.xlane.f32.xlu0 %v346_v42  ;;  %v311_v43 = vpop.xlane.xlu0 %310 }
 0x20a   :  { %v320_v44 = vmul.f32 0.03125, %v311_v43  ;;  %v335_v45 = vmul.f32 %v7432_v39, %v7432_v39  ;;  %v334_v46 = vmul.f32 %v7434_v40, %v7434_v40 }
 0x20c   :  { %v7442_v47 = vsub.f32 %v284_v8, %v320_v44  ;;  %v355_v48 = vsel %vm287_vm10, %v335_v45, 0.0  ;;  %v352_v49 = vsel %vm287_vm10, %v334_v46, 0.0 }
 0x20d   :  { %356 = vadd.xlane.f32.xlu1 %v355_v48  ;;  %353 = vadd.xlane.f32.xlu0 %v352_v49 }
 0x20e   :  { %v336_v50 = vmul.f32 %v7442_v47, %v7442_v47 }
 0x210   :  { %v358_v51 = vsel %vm287_vm10, %v336_v50, 0.0 }
 0x211   :  { %359 = vadd.xlane.f32.xlu0 %v358_v51 }
 0x28e   :  { %v339_v54 = vpop.xlane.xlu1 %338 }
 0x28f   :  { %v361_v55 = vmul.f32 0.03125, %v339_v54  ;;  %v5984_v54 = vld [vmem:[%s8959_s3] ss:$0 sm:$0xff] }
 0x290   :  { %v342_v56 = vpop.xlane.xlu0 %341 }
 0x291   :  { %v369_v57 = vadd.f32 1e-12, %v361_v55  ;;  %v362_v58 = vmul.f32 0.03125, %v342_v56 }
 0x292   :  { %v345_v59 = vpop.xlane.xlu1 %344 }
 0x293   :  { %6960 = vrsqrt.f32 %v369_v57  ;;  %v370_v60 = vadd.f32 1e-12, %v362_v58  ;;  %v363_v61 = vmul.f32 0.03125, %v345_v59 }
 0x295   :  { %6962 = vrsqrt.f32 %v370_v60  ;;  %v371_v62 = vadd.f32 1e-12, %v363_v61 }
 0x296   :  { %v351_v63 = vpop.xlane.xlu1 %350  ;;  %v348_v0 = vpop.xlane.xlu0 %347 }
 0x297   :  { %6964 = vrsqrt.f32 %v371_v62  ;;  %v365_v1 = vmul.f32 0.03125, %v351_v63  ;;  %v364_v2 = vmul.f32 0.03125, %v348_v0 }
 0x299   :  { %v373_v3 = vadd.f32 1e-12, %v365_v1  ;;  %v372_v4 = vadd.f32 1e-12, %v364_v2 }
 0x29a   :  { %v357_v5 = vpop.xlane.xlu1 %356  ;;  %v354_v6 = vpop.xlane.xlu0 %353 }
 0x29b   :  { %6966 = vrsqrt.f32 %v373_v3  ;;  %v367_v7 = vmul.f32 0.03125, %v357_v5  ;;  %v366_v8 = vmul.f32 0.03125, %v354_v6 }
 0x29c   :  { %6968 = vrsqrt.f32 %v372_v4 }
 0x29d   :  { %v6961_v9 = vpop.eup %6960  ;;  %v375_v10 = vadd.f32 1e-12, %v367_v7  ;;  %v374_v11 = vadd.f32 1e-12, %v366_v8 }
 0x29e   :  { %v360_v14 = vpop.xlane.xlu0 %359  ;;  %v385_v15 = vmul.f32 %v6961_v9, %v7409_v13 }
 0x29f   :  { %v6963_v19 = vpop.eup %6962  ;;  %6970 = vrsqrt.f32 %v375_v10  ;;  %v368_v20 = vmul.f32 0.03125, %v360_v14 }
 0x2a0   :  { %6972 = vrsqrt.f32 %v374_v11  ;;  %v386_v22 = vmul.f32 %v6963_v19, %v7411_v16  ;;  %v399_v23 = vmul.f32 %v5982_v12, %v385_v15 }
 0x2a1   :  { %v6965_v24 = vpop.eup %6964  ;;  %v376_v25 = vadd.f32 1e-12, %v368_v20 }
 0x2a2   :  { %v400_v27 = vmul.f32 %v5982_v12, %v386_v22  ;;  %v387_v28 = vmul.f32 %v6965_v24, %v7415_v21  ;;  %v7465_v29 = vadd.f32 %v5983_v26, %v399_v23 }
 0x2a3   :  { %6974 = vrsqrt.f32 %v376_v25 }
 0x2a4   :  { %v7467_v13 = vadd.f32 %v5983_v26, %v400_v27  ;;  %v401_v35 = vmul.f32 %v5982_v12, %v387_v28 }
 0x2a5   :  { %v6967_v32 = vpop.eup %6966 }
 0x2a6   :  { %v6969_v33 = vpop.eup %6968  ;;  %v519_v16 = vpack.c.bf16 %v7467_v13, %v7465_v29  ;;  %v389_v36 = vmul.f32 %v6967_v32, %v7423_v30  ;;  %v7475_v42 = vadd.f32 %v5983_v26, %v401_v35 }
 0x2a7   :  { %v388_v34 = vmul.f32 %v6969_v33, %v7425_v31 }
 0x2a8   :  { %6376 = vmatprep.mubr.msk.bf16.mxu1 %vm287_vm10, %v519_v16  ;;  %v403_v45 = vmul.f32 %v5982_v12, %v389_v36 }
 0x2a9   :  { %v6971_v37 = vpop.eup %6970  ;;  %v402_v38 = vmul.f32 %v5982_v12, %v388_v34 }
 0x2aa   :  { %v6973_v41 = vpop.eup %6972  ;;  %v391_v21 = vmul.f32 %v6971_v37, %v7432_v39  ;;  %v7484_v50 = vadd.f32 %v5983_v26, %v403_v45  ;;  %v421_v45 = vld [vmem:[%s8924_s1] sm:$0xff]  ;;  %s7212_s1 = smov 80  }
 0x2ab   :  { %v7477_v43 = vadd.f32 %v5983_v26, %v402_v38  ;;  %v390_v44 = vmul.f32 %v6973_v41, %v7434_v40 }
 0x2ac   :  { %v405_v49 = vmul.f32 %v5982_v12, %v391_v21 }
 0x2ad   :  { %v6975_v46 = vpop.eup %6974  ;;  %v520_v31 = vpack.c.bf16 %v7477_v43, %v7475_v42  ;;  %v404_v48 = vmul.f32 %v5982_v12, %v390_v44 }
 0x2ae   :  { %v392_v30 = vmul.f32 %v6975_v46, %v7442_v47  ;;  %v7490_v40 = vadd.f32 %v5983_v26, %v405_v49  ;;  %v422_v46 = vcvt.s32.f32 %v421_v45 }
 0x2af   :  { %6377 = vmatmul.mubr.msk.bf16.vlgmr.msra.gmra.mrb[0].mxu1 %vm287_vm10, %v520_v31  ;;  %v7486_v39 = vadd.f32 %v5983_v26, %v404_v48  ;;  %v7211_v48 = vmov 1966171168  }
 0x2b0   :  { %v406_v51 = vmul.f32 %v5982_v12, %v392_v30  ;;  %v423_v31 = vsub.f32 1.0, %v422_v46  ;;  %v428_v30 = vunpack.c.l.s4 %v7211_v48 }
 0x2b1   :  { %v521_v52 = vpack.c.bf16 %v7486_v39, %v7484_v50 }
 0x2b2   :  { %v7492_v53 = vadd.f32 %v5983_v26, %v406_v51  ;;  %v424_v49 = vmul.f32 -10000.0, %v423_v31  ;;  %v429_v51 = vunpack.c.0.s8 %v428_v30 }
 0x2b3   :  { %6380 = vmatprep.mubr.msk.bf16.mxu1 %vm287_vm10, %v521_v52  ;;  %v431_v52 = vshrl.u32 %v83_v18, 7 }
 0x2b4   :  { %v522_v47 = vpack.c.bf16 %v7492_v53, %v7490_v40 }
 0x2b7   :  { %6381 = vmatmul.mubr.msk.bf16.gmra.mrb[4].mxu1 %vm287_vm10, %v522_v47  ;;  %v426_v47 = vcombine.high %v424_v49, %v424_v49 }
 0x2b8   :  { %6386 = vmatprep.mubr.msk.bf16.mxu1 %vm7208_vm11, %v7207_v17 }
 0x382   :  { %v6378_v55 = vpop.f32.mrb[0].mxu1 }
 0x383   :  { %v588_v56 = vpop.f32.mrb[1].mxu1  ;;  %v597_v60 = vadd.f32 %v6378_v55, %v5984_v54 }
 0x384   :  { %v589_v57 = vadd.f32 %v5984_v54, %v588_v56  ;;  %v6379_v58 = vpop.f32.mrb[2].mxu1 }
 0x385   :  { %v591_v59 = vpop.f32.mrb[3].mxu1  ;;  %v7511_v0 = vpack.c.bf16 %v597_v60, %v597_v60  ;;  %v600_v1 = vadd.f32 %v6379_v58, %v5984_v54 }
 0x386   :  { %v7505_v61 = vpack.c.bf16 %v589_v57, %v589_v57  ;;  %v592_v62 = vadd.f32 %v5984_v54, %v591_v59  ;;  %v7603_v57 = vsub.s32 0, %v431_v52 }
 0x387   :  { %v7517_v7 = vpack.c.bf16 %v600_v1, %v600_v1 }
 0x388   :  { %v7507_v63 = vpack.c.bf16 %v592_v62, %v592_v62  ;;  %628 = vrot.lane.b32.xlu1 %v7505_v61, %s7209_s6 }
 0x38a   :  { %678 = vrot.lane.b32.xlu0 %v7507_v63, %s7209_s6  ;;  %v6382_v2 = vpop.f32.mrb[4].mxu1 }
 0x38b   :  { %v604_v3 = vpop.f32.mrb[5].mxu1  ;;  %v613_v8 = vadd.f32 %v6382_v2, %v5984_v54 }
 0x38c   :  { %v605_v4 = vadd.f32 %v5984_v54, %v604_v3  ;;  %727 = vrot.lane.b32.xlu1 %v7511_v0, %s7209_s6  ;;  %v6383_v5 = vpop.f32.mrb[6].mxu1 }
 0x38d   :  { %v607_v6 = vpop.f32.mrb[7].mxu1  ;;  %v7525_v11 = vpack.c.bf16 %v613_v8, %v613_v8  ;;  %v616_v12 = vadd.f32 %v6383_v5, %v5984_v54 }
 0x38e   :  { %v7519_v9 = vpack.c.bf16 %v605_v4, %v605_v4  ;;  %v608_v10 = vadd.f32 %v5984_v54, %v607_v6  ;;  %v432_v54 = vsub.s32 %v429_v51, %v431_v52 }
 0x38f   :  { %v7533_v15 = vpack.c.bf16 %v616_v12, %v616_v12 }
 0x390   :  { %776 = vrot.lane.b32.xlu1 %v7517_v7, %s7209_s6  ;;  %825 = vrot.lane.b32.xlu0 %v7519_v9, %s7209_s6  ;;  %v7527_v14 = vpack.c.bf16 %v608_v10, %v608_v10  ;;  %v440_v55 = vrot.slane %v426_v47, %v432_v54  ;;  %v433_v60 = vrot.slane %v424_v49, %v432_v54 }
 0x392   :  { %v7601_v56 = vrot.slane %v440_v55, %v432_v54  ;;  %v449_v62 = vrot.slane %v433_v60, %v432_v54  ;;  %v441_v1 = vcombine.high %v433_v60, %v433_v60 }
 0x394   :  { %874 = vrot.lane.b32.xlu1 %v7527_v14, %s7209_s6  ;;  %923 = vrot.lane.b32.xlu0 %v7525_v11, %s7209_s6  ;;  %v472_v58 = vcombine.high %v7601_v56, %v7601_v56  ;;  %v7611_v2 = vrot.slane %v449_v62, %v7603_v57  ;;  %v463_v18 = vrot.slane %v441_v1, %v432_v54 }
 0x396   :  { %v7608_v59 = vrot.slane %v472_v58, %v7603_v57  ;;  %v473_v12 = vcombine.high %v463_v18, %v463_v18 }
 0x398   :  { %972 = vrot.lane.b32.xlu1 %v7533_v15, %s7209_s6  ;;  %1182 = vrot.lane.b32.xlu0 %v7507_v63, %s7210_s27 }
 0x39c   :  { %1133 = vrot.lane.b32.xlu1 %v7505_v61, %s7210_s27 }
 0x3a0   :  { %1230 = vrot.lane.b32.xlu1 %v7511_v0, %s7210_s27 }
 0x3a4   :  { %1278 = vrot.lane.b32.xlu1 %v7517_v7, %s7210_s27 }
 0x3fa   :  { %v629_v19 = vpop.permute.xlu1 %628 }
 0x3fb   :  { %v635_v20 = vsel %vm630_vm12, %v629_v19, 0 }
 0x3fc   :  { %6385 = vmatpush3.bf16.xpose.msra.mxu1 %v635_v20  ;;  %v679_v23 = vpop.permute.xlu0 %678  ;;  %v7619_v20 = vrot.slane %v473_v12, %v7603_v57 }
 0x3fd   :  { %6390 = vmatprep.subr.bf16.mxu1 %v7207_v17  ;;  %v684_v25 = vsel %vm630_vm12, %v679_v23, 0  ;;  %v442_v23 = vcombine.high %v440_v55, %v440_v55 }
 0x3fe   :  { %v728_v22 = vpop.permute.xlu1 %727 }
 0x3ff   :  { %v733_v28 = vsel %vm630_vm12, %v728_v22, 0  ;;  %v7622_v22 = vrot.slane %v463_v18, %v7603_v57 }
 0x402   :  { %v777_v24 = vpop.permute.xlu1 %776  ;;  %v826_v33 = vpop.permute.xlu0 %825 }
 0x403   :  { %v782_v26 = vsel %vm630_vm12, %v777_v24, 0  ;;  %6387 = vmatmul.mubr.msk.bf16.vlgmr.msra.gmra.mrb[8].mxu1 %vm630_vm12, %v7505_v61  ;;  %v831_v35 = vsel %vm630_vm12, %v826_v33, 0 }
 0x404   :  { %6391 = vmatpush3.bf16.xpose.msra.mxu1 %v684_v25  ;;  %6403 = vmatpush3.bf16.xpose.msra.mxu0 %v782_v26 }
 0x405   :  { %6392 = vmatprep.mubr.msk.bf16.mxu1 %vm7208_vm11, %v7207_v17  ;;  %6396 = vmatprep.subr.bf16.mxu1 %v7207_v17 }
 0x406   :  { %6414 = vmatprep.subr.bf16.mxu0 %v7207_v17  ;;  %v875_v27 = vpop.permute.xlu1 %874  ;;  %v924_v34 = vpop.permute.xlu0 %923 }
 0x407   :  { %v880_v32 = vsel %vm630_vm12, %v875_v27, 0  ;;  %v929_v38 = vsel %vm630_vm12, %v924_v34, 0 }
 0x40a   :  { %v973_v16 = vpop.permute.xlu1 %972  ;;  %v1183_v37 = vpop.permute.xlu0 %1182 }
 0x40b   :  { %6393 = vmatmul.mubr.msk.bf16.vlgmr.msra.gmra.mrb[12].mxu1 %vm630_vm12, %v7507_v63  ;;  %6405 = vmatmul.mubr.msk.bf16.vlgmr.msra.gmra.mrb[8].mxu0 %vm630_vm12, %v7517_v7  ;;  %v978_v36 = vsel %vm630_vm12, %v973_v16, 0  ;;  %v1188_v41 = vsel %vm1138_vm13, %v1183_v37, 0 }
 0x40c   :  { %6397 = vmatpush3.bf16.xpose.msra.mxu1 %v733_v28  ;;  %6415 = vmatpush3.bf16.xpose.msra.mxu0 %v880_v32 }
 0x40d   :  { %6416 = vmatprep.mubr.msk.bf16.mxu0 %vm7208_vm11, %v7207_v17  ;;  %6398 = vmatprep.mubr.msk.bf16.mxu1 %vm7208_vm11, %v7207_v17 }
 0x40e   :  { %6408 = vmatprep.subr.bf16.mxu1 %v7207_v17  ;;  %6426 = vmatprep.subr.bf16.mxu0 %v7207_v17  ;;  %v1134_v21 = vpop.permute.xlu1 %1133 }
 0x40f   :  { %v1140_v44 = vsel %vm1138_vm13, %v1134_v21, 0 }
 0x413   :  { %6399 = vmatmul.mubr.msk.bf16.vlgmr.msra.gmra.mrb[16].mxu1 %vm630_vm12, %v7511_v0  ;;  %6417 = vmatmul.mubr.msk.bf16.vlgmr.msra.gmra.mrb[12].mxu0 %vm630_vm12, %v7527_v14 }
 0x414   :  { %6409 = vmatpush3.bf16.xpose.msra.mxu1 %v831_v35  ;;  %6427 = vmatpush3.bf16.xpose.msra.mxu0 %v978_v36 }
 0x415   :  { %6410 = vmatprep.mubr.msk.bf16.mxu1 %vm7208_vm11, %v7207_v17  ;;  %6428 = vmatprep.mubr.msk.bf16.mxu0 %vm7208_vm11, %v7207_v17 }
 0x416   :  { %6420 = vmatprep.subr.bf16.mxu1 %v7207_v17  ;;  %6438 = vmatprep.subr.bf16.mxu0 %v7207_v17 }
 0x41b   :  { %6411 = vmatmul.mubr.msk.bf16.vlgmr.msra.gmra.mrb[20].mxu1 %vm630_vm12, %v7519_v9  ;;  %6429 = vmatmul.mubr.msk.bf16.vlgmr.msra.gmra.mrb[16].mxu0 %vm630_vm12, %v7533_v15 }
 0x41c   :  { %6421 = vmatpush3.bf16.xpose.msra.mxu1 %v929_v38  ;;  %6439 = vmatpush3.bf16.msra.mxu0 %v1188_v41  ;;  %v470_v38 = vrot.slane %v442_v23, %v432_v54 }
 0x41d   :  { %6422 = vmatprep.mubr.msk.bf16.mxu1 %vm7208_vm11, %v7207_v17  ;;  %6432 = vmatprep.subr.bf16.mxu1 %v7207_v17 }
 0x41e   :  { %6440 = vmatprep.mubr.msk.bf16.mxu0 %vm7208_vm11, %v7207_v17  ;;  %6450 = vmatprep.subr.bf16.mxu0 %v7207_v17  ;;  %v7635_v45 = vrot.slane %v470_v38, %v7603_v57 }
 0x423   :  { %6423 = vmatmul.mubr.msk.bf16.vlgmr.msra.gmra.mrb[24].mxu1 %vm630_vm12, %v7525_v11 }
 0x424   :  { %6433 = vmatpush3.bf16.msra.mxu1 %v1140_v44  ;;  %6434 = vmatprep.mubr.msk.bf16.mxu1 %vm7208_vm11, %v7207_v17  ;;  %v471_v44 = vcombine.high %v449_v62, %v449_v62  ;;  %v474_v62 = vcombine.high %v470_v38, %v470_v38  ;;  %v7658_v38 = vrot.slane %v7601_v56, %v7603_v57 }
 0x425   :  { %6444 = vmatprep.subr.bf16.mxu1 %v7207_v17 }
 0x426   :  { %v7638_v52 = vrot.slane %v471_v44, %v7603_v57 }
 0x4d6   :  { %v671_v3 = vpop.f32.mrb[8].mxu1 }
 0x4d7   :  { %v1020_v4 = vmul.f32 0.25, %v671_v3  ;;  %v6388_v5 = vpop.f32.mrb[9].mxu1  ;;  %v7646_v3 = vrot.slane %v474_v62, %v7603_v57 }
 0x4d8   :  { %v674_v6 = vpop.f32.mrb[10].mxu1 }
 0x4d9   :  { %v6389_v8 = vpop.f32.mrb[11].mxu1  ;;  %v7614_v10 = vadd.f32 %v1020_v4, %v7611_v2 }
 0x4db   :  { %v1037_v19 = vsel %vm1036_vm14, %v7614_v10, -inf }
 0x4dc   :  { %1038 = vmax.xlane.f32.xlu0 %v1037_v19 }
 0x4de   :  { %v720_v24 = vpop.f32.mrb[12].mxu1  ;;  %v818_v25 = vpop.f32.mrb[8].mxu0 }
 0x4df   :  { %v1021_v26 = vmul.f32 0.25, %v720_v24  ;;  %v1023_v27 = vmul.f32 0.25, %v818_v25  ;;  %v6394_v28 = vpop.f32.mrb[13].mxu1  ;;  %v6406_v32 = vpop.f32.mrb[9].mxu0 }
 0x4e0   :  { %v723_v33 = vpop.f32.mrb[14].mxu1  ;;  %v821_v16 = vpop.f32.mrb[10].mxu0 }
 0x4e1   :  { %v6395_v34 = vpop.f32.mrb[15].mxu1  ;;  %v6407_v35 = vpop.f32.mrb[11].mxu0  ;;  %v7625_v36 = vadd.f32 %v1023_v27, %v7619_v20  ;;  %v7628_v37 = vadd.f32 %v1021_v26, %v7622_v22 }
 0x4e3   :  { %v1046_v41 = vsel %vm1036_vm14, %v7625_v36, -inf  ;;  %v1040_v21 = vsel %vm1036_vm14, %v7628_v37, -inf }
 0x4e4   :  { %1047 = vmax.xlane.f32.xlu0 %v1046_v41  ;;  %1041 = vmax.xlane.f32.xlu1 %v1040_v21 }
 0x4e6   :  { %v769_v46 = vpop.f32.mrb[16].mxu1  ;;  %v916_v31 = vpop.f32.mrb[12].mxu0 }
 0x4e7   :  { %v1022_v48 = vmul.f32 0.25, %v769_v46  ;;  %v1025_v30 = vmul.f32 0.25, %v916_v31  ;;  %v6400_v49 = vpop.f32.mrb[17].mxu1  ;;  %v6418_v51 = vpop.f32.mrb[13].mxu0 }
 0x4e8   :  { %v772_v47 = vpop.f32.mrb[18].mxu1  ;;  %v919_v54 = vpop.f32.mrb[14].mxu0 }
 0x4e9   :  { %v6401_v55 = vpop.f32.mrb[19].mxu1  ;;  %v6419_v58 = vpop.f32.mrb[15].mxu0  ;;  %v1033_v60 = vadd.f32 %v1025_v30, %v7635_v45  ;;  %v7643_v18 = vadd.f32 %v1022_v48, %v7638_v52 }
 0x4ea   :  { %v7667_v48 = vpop.permute.xlu1 %1230 }
 0x4eb   :  { %v1052_v1 = vsel %vm1036_vm14, %v1033_v60, -inf  ;;  %v1043_v19 = vsel %vm1036_vm14, %v7643_v18, -inf }
 0x4ec   :  { %1053 = vmax.xlane.f32.xlu0 %v1052_v1 }
 0x4ee   :  { %v867_v4 = vpop.f32.mrb[20].mxu1  ;;  %v1014_v5 = vpop.f32.mrb[16].mxu0 }
 0x4ef   :  { %v1027_v6 = vmul.f32 0.25, %v1014_v5  ;;  %v6412_v8 = vpop.f32.mrb[21].mxu1  ;;  %v6430_v12 = vpop.f32.mrb[17].mxu0  ;;  %v1024_v35 = vmul.f32 0.25, %v867_v4 }
 0x4f0   :  { %v1017_v23 = vpop.f32.mrb[18].mxu0  ;;  %1044 = vmax.xlane.f32.xlu0 %v1043_v19  ;;  %v870_v24 = vpop.f32.mrb[22].mxu1 }
 0x4f1   :  { %v6413_v25 = vpop.f32.mrb[23].mxu1  ;;  %v6431_v26 = vpop.f32.mrb[19].mxu0  ;;  %v1035_v27 = vadd.f32 %v1027_v6, %v7646_v3  ;;  %v1032_v21 = vadd.f32 %v1024_v35, %v7658_v38 }
 0x4f2   :  { %v7670_v57 = vpop.permute.xlu1 %1278 }
 0x4f3   :  { %v1058_v28 = vsel %vm1036_vm14, %v1035_v27, -inf  ;;  %v1049_v44 = vsel %vm1036_vm14, %v1032_v21, -inf }
 0x4f4   :  { %1059 = vmax.xlane.f32.xlu0 %v1058_v28 }
 0x4f5   :  { %1374 = vrot.lane.b32.xlu1 %v7527_v14, %s7210_s27 }
 0x4f6   :  { %v965_v32 = vpop.f32.mrb[24].mxu1 }
 0x4f7   :  { %v6424_v33 = vpop.f32.mrb[25].mxu1  ;;  %v1026_v41 = vmul.f32 0.25, %v965_v32 }
 0x4f8   :  { %v968_v16 = vpop.f32.mrb[26].mxu1 }
 0x4f9   :  { %v6425_v34 = vpop.f32.mrb[27].mxu1  ;;  %v7663_v46 = vadd.f32 %v1026_v41, %v7608_v59 }
 0x4fb   :  { %v1055_v31 = vsel %vm1036_vm14, %v7663_v46, -inf }
 0x50a   :  { %1326 = vrot.lane.b32.xlu0 %v7519_v9, %s7210_s27 }
 0x519   :  { %1050 = vmax.xlane.f32.xlu1 %v1049_v44 }
 0x51d   :  { %1056 = vmax.xlane.f32.xlu1 %v1055_v31 }
 0x569   :  { %v1039_v30 = vpop.xlane.xlu0 %1038 }
 0x56a   :  { %v1061_v49 = vsub.f32 %v7614_v10, %v1039_v30 }
 0x56c   :  { %v1069_v56 = vmul.f32 1.442695, %v1061_v49 }
 0x56e   :  { %6976 = vpow2.f32 %v1069_v56 }
 0x571   :  { %v1042_v51 = vpop.xlane.xlu1 %1041  ;;  %v1048_v47 = vpop.xlane.xlu0 %1047 }
 0x572   :  { %v1062_v54 = vsub.f32 %v7628_v37, %v1042_v51  ;;  %v1064_v55 = vsub.f32 %v7625_v36, %v1048_v47 }
 0x574   :  { %v1075_v58 = vmul.f32 1.442695, %v1064_v55  ;;  %v1071_v62 = vmul.f32 1.442695, %v1062_v54 }
 0x575   :  { %v7695_v26 = vpop.permute.xlu1 %1374 }
 0x576   :  { %6978 = vpow2.f32 %v1075_v58 }
 0x577   :  { %6980 = vpow2.f32 %v1071_v62 }
 0x578   :  { %v7674_v1 = vpop.eup %6976 }
 0x579   :  { %v1054_v4 = vpop.xlane.xlu0 %1053  ;;  %v1085_v10 = vsel %vm1036_vm14, %v7674_v1, 0.0 }
 0x57a   :  { %v1066_v5 = vsub.f32 %v1033_v60, %v1054_v4  ;;  %1086 = vadd.xlane.f32.xlu1 %v1085_v10 }
 0x57c   :  { %v1079_v6 = vmul.f32 1.442695, %v1066_v5  ;;  %v1236_v5 = vsel %vm1138_vm13, %v7667_v48, 0 }
 0x57d   :  { %v1045_v23 = vpop.xlane.xlu0 %1044 }
 0x57e   :  { %6982 = vpow2.f32 %v1079_v6  ;;  %v1063_v24 = vsub.f32 %v7643_v18, %v1045_v23 }
 0x580   :  { %v7678_v8 = vpop.eup %6978  ;;  %v1073_v25 = vmul.f32 1.442695, %v1063_v24 }
 0x581   :  { %v1094_v37 = vsel %vm1036_vm14, %v7678_v8, 0.0  ;;  %v7682_v36 = vpop.eup %6980  ;;  %v1060_v32 = vpop.xlane.xlu0 %1059 }
 0x582   :  { %1095 = vadd.xlane.f32.xlu0 %v1094_v37  ;;  %v1088_v12 = vsel %vm1036_vm14, %v7682_v36, 0.0  ;;  %6984 = vpow2.f32 %v1073_v25  ;;  %v1068_v34 = vsub.f32 %v1035_v27, %v1060_v32 }
 0x584   :  { %v1083_v41 = vmul.f32 1.442695, %v1068_v34 }
 0x585   :  { %v1327_v54 = vpop.permute.xlu0 %1326 }
 0x586   :  { %1089 = vadd.xlane.f32.xlu0 %v1088_v12 }
 0x588   :  { %v7686_v19 = vpop.eup %6982 }
 0x589   :  { %v1100_v60 = vsel %vm1036_vm14, %v7686_v19, 0.0 }
 0x58a   :  { %1101 = vadd.xlane.f32.xlu0 %v1100_v60  ;;  %v1284_v60 = vsel %vm1138_vm13, %v7670_v57, 0 }
 0x58b   :  { %1470 = vrot.lane.b32.xlu1 %v7533_v15, %s7210_s27 }
 0x58c   :  { %v7697_v35 = vpop.eup %6984 }
 0x58d   :  { %v1091_v44 = vsel %vm1036_vm14, %v7697_v35, 0.0 }
 0x5a0   :  { %1422 = vrot.lane.b32.xlu0 %v7525_v11, %s7210_s27 }
 0x5a6   :  { %v1051_v28 = vpop.xlane.xlu1 %1050 }
 0x5a7   :  { %v1065_v33 = vsub.f32 %v1032_v21, %v1051_v28 }
 0x5a9   :  { %v1077_v16 = vmul.f32 1.442695, %v1065_v33 }
 0x5aa   :  { %v1057_v21 = vpop.xlane.xlu1 %1056 }
 0x5ab   :  { %6986 = vpow2.f32 %v1077_v16  ;;  %v1067_v49 = vsub.f32 %v7663_v46, %v1057_v21 }
 0x5ac   :  { %6988 = vpow2.f32 %v1083_v41  ;;  %v1332_v41 = vsel %vm1138_vm13, %v1327_v54, 0 }
 0x5ad   :  { %v1081_v56 = vmul.f32 1.442695, %v1067_v49 }
 0x5af   :  { %1092 = vadd.xlane.f32.xlu1 %v1091_v44  ;;  %6990 = vpow2.f32 %v1081_v56 }
 0x5b5   :  { %v7701_v18 = vpop.eup %6986 }
 0x5b6   :  { %v1097_v31 = vsel %vm1036_vm14, %v7701_v18, 0.0  ;;  %v7705_v30 = vpop.eup %6988 }
 0x5b7   :  { %1098 = vadd.xlane.f32.xlu1 %v1097_v31  ;;  %v1106_v27 = vsel %vm1036_vm14, %v7705_v30, 0.0 }
 0x5b9   :  { %v7722_v51 = vpop.eup %6990 }
 0x5ba   :  { %v1103_v46 = vsel %vm1036_vm14, %v7722_v51, 0.0 }
 0x5bf   :  { %1107 = vadd.xlane.f32.xlu0 %v1106_v27 }
 0x5c8   :  { %1570 = vrot.lane.b32.xlu1 %v7507_v63, %s7212_s1 }
 0x5d5   :  { %1520 = vrot.lane.b32.xlu0 %v7505_v61, %s7212_s1 }
 0x5d9   :  { %1518 = vrot.lane.b32.xlu0 %v7505_v61, %s7213_s0 }
 0x5dd   :  { %1620 = vrot.lane.b32.xlu0 %v7511_v0, %s7212_s1 }
 0x5e1   :  { %1618 = vrot.lane.b32.xlu0 %v7511_v0, %s7213_s0 }
 0x5e5   :  { %1720 = vrot.lane.b32.xlu0 %v7519_v9, %s7212_s1 }
 0x5e9   :  { %1718 = vrot.lane.b32.xlu0 %v7519_v9, %s7213_s0 }
 0x5ec   :  { %1104 = vadd.xlane.f32.xlu1 %v1103_v46 }
 0x5ed   :  { %1820 = vrot.lane.b32.xlu0 %v7525_v11, %s7212_s1 }
 0x5f1   :  { %1818 = vrot.lane.b32.xlu0 %v7525_v11, %s7213_s0 }
 0x5fd   :  { %1568 = vrot.lane.b32.xlu1 %v7507_v63, %s7213_s0 }
 0x601   :  { %1670 = vrot.lane.b32.xlu1 %v7517_v7, %s7212_s1 }
 0x605   :  { %1668 = vrot.lane.b32.xlu1 %v7517_v7, %s7213_s0 }
 0x607   :  { %v1087_v47 = vpop.xlane.xlu1 %1086 }
 0x608   :  { %6992 = vrcp.f32 %v1087_v47 }
 0x609   :  { %1770 = vrot.lane.b32.xlu1 %v7527_v14, %s7212_s1 }
 0x60b   :  { %v1471_v25 = vpop.permute.xlu1 %1470 }
 0x60c   :  { %v1476_v32 = vsel %vm1138_vm13, %v1471_v25, 0 }
 0x60d   :  { %1768 = vrot.lane.b32.xlu1 %v7527_v14, %s7213_s0 }
 0x60f   :  { %v1096_v55 = vpop.xlane.xlu0 %1095 }
 0x611   :  { %1870 = vrot.lane.b32.xlu1 %v7533_v15, %s7212_s1 }
 0x612   :  { %v6993_v58 = vpop.eup %6992 }
 0x613   :  { %v1117_v62 = vmul.f32 %v6993_v58, %v7674_v1  ;;  %v1090_v4 = vpop.xlane.xlu0 %1089 }
 0x614   :  { %6994 = vrcp.f32 %v1090_v4 }
 0x615   :  { %1868 = vrot.lane.b32.xlu1 %v7533_v15, %s7213_s0  ;;  %v1125_v10 = vpack.c.bf16 %v1117_v62, %v1117_v62  ;;  %6996 = vrcp.f32 %v1096_v55 }
 0x617   :  { %6435 = vmatmul.mubr.msk.bf16.vlgmr.msra.gmra.mrb[28].mxu1 %vm1036_vm14, %v1125_v10  ;;  %v1102_v1 = vpop.xlane.xlu0 %1101 }
 0x618   :  { %6445 = vmatpush3.bf16.msra.mxu1 %v1236_v5  ;;  %6446 = vmatprep.mubr.msk.bf16.mxu1 %vm7208_vm11, %v7207_v17  ;;  %6998 = vrcp.f32 %v1102_v1 }
 0x619   :  { %2030 = vrot.lane.b32.xlu1 %v7505_v61, %s7214_s7  ;;  %6456 = vmatprep.subr.bf16.mxu1 %v7207_v17 }
 0x61e   :  { %v6995_v6 = vpop.eup %6994 }
 0x61f   :  { %v1118_v37 = vmul.f32 %v6995_v6, %v7682_v36  ;;  %v6997_v48 = vpop.eup %6996  ;;  %v1380_v36 = vsel %vm1138_vm13, %v7695_v26, 0 }
 0x620   :  { %v1120_v61 = vmul.f32 %v6997_v48, %v7678_v8 }
 0x621   :  { %v1126_v12 = vpack.c.bf16 %v1118_v37, %v1118_v37 }
 0x622   :  { %v1128_v23 = vpack.c.bf16 %v1120_v61, %v1120_v61  ;;  %v6999_v24 = vpop.eup %6998 }
 0x623   :  { %6441 = vmatmul.mubr.msk.bf16.vlgmr.msra.gmra.mrb[20].mxu0 %vm1036_vm14, %v1126_v12  ;;  %v1122_v57 = vmul.f32 %v6999_v24, %v7686_v19  ;;  %v1423_v19 = vpop.permute.xlu0 %1422 }
 0x624   :  { %6451 = vmatpush3.bf16.msra.mxu0 %v1284_v60  ;;  %6452 = vmatprep.mubr.msk.bf16.mxu0 %vm7208_vm11, %v7207_v17 }
 0x625   :  { %6462 = vmatprep.subr.bf16.mxu0 %v7207_v17  ;;  %v1130_v28 = vpack.c.bf16 %v1122_v57, %v1122_v57 }
 0x62b   :  { %6453 = vmatmul.mubr.msk.bf16.vlgmr.msra.gmra.mrb[24].mxu0 %vm1036_vm14, %v1128_v23 }
 0x62c   :  { %6463 = vmatpush3.bf16.msra.mxu0 %v1380_v36  ;;  %6464 = vmatprep.mubr.msk.bf16.mxu0 %vm7208_vm11, %v7207_v17 }
 0x62d   :  { %6474 = vmatprep.subr.bf16.mxu0 %v7207_v17 }
 0x633   :  { %6465 = vmatmul.mubr.msk.bf16.vlgmr.msra.gmra.mrb[28].mxu0 %vm1036_vm14, %v1130_v28 }
 0x634   :  { %6475 = vmatpush3.bf16.msra.mxu0 %v1476_v32  ;;  %6476 = vmatprep.mubr.msk.bf16.mxu0 %vm7208_vm11, %v7207_v17 }
 0x635   :  { %6486 = vmatprep.subr.bf16.mxu0 %v7207_v17 }
 0x63c   :  { %v1093_v8 = vpop.xlane.xlu1 %1092 }
 0x63d   :  { %7000 = vrcp.f32 %v1093_v8 }
 0x644   :  { %v1099_v26 = vpop.xlane.xlu1 %1098 }
 0x645   :  { %7002 = vrcp.f32 %v1099_v26 }
 0x647   :  { %v7001_v33 = vpop.eup %7000 }
 0x648   :  { %v1119_v16 = vmul.f32 %v7001_v33, %v7697_v35  ;;  %v1428_v35 = vsel %vm1138_vm13, %v1423_v19, 0  ;;  %v1571_v46 = vpop.permute.xlu1 %1570 }
 0x649   :  { %v1576_v54 = vsel %vm630_vm12, %v1571_v46, 0 }
 0x64a   :  { %v1127_v34 = vpack.c.bf16 %v1119_v16, %v1119_v16 }
 0x64c   :  { %6447 = vmatmul.mubr.msk.bf16.vlgmr.msra.gmra.mrb[32].mxu1 %vm1036_vm14, %v1127_v34  ;;  %v1108_v44 = vpop.xlane.xlu0 %1107 }
 0x64d   :  { %6457 = vmatpush3.bf16.msra.mxu1 %v1332_v41  ;;  %6458 = vmatprep.mubr.msk.bf16.mxu1 %vm7208_vm11, %v7207_v17  ;;  %7004 = vrcp.f32 %v1108_v44 }
 0x64e   :  { %6468 = vmatprep.subr.bf16.mxu1 %v7207_v17 }
 0x64f   :  { %v7003_v31 = vpop.eup %7002 }
 0x650   :  { %v1121_v27 = vmul.f32 %v7003_v31, %v7701_v18  ;;  %v1521_v55 = vpop.permute.xlu0 %1520 }
 0x651   :  { %v1526_v12 = vsel %vm630_vm12, %v1521_v55, 0 }
 0x652   :  { %v1129_v21 = vpack.c.bf16 %v1121_v27, %v1121_v27 }
 0x654   :  { %6459 = vmatmul.mubr.msk.bf16.vlgmr.msra.gmra.mrb[36].mxu1 %vm1036_vm14, %v1129_v21 }
 0x655   :  { %6469 = vmatpush3.bf16.msra.mxu1 %v1428_v35  ;;  %6470 = vmatprep.mubr.msk.bf16.mxu1 %vm7208_vm11, %v7207_v17 }
 0x656   :  { %6480 = vmatprep.subr.bf16.mxu1 %v7207_v17 }
 0x657   :  { %v7005_v49 = vpop.eup %7004 }
 0x658   :  { %v1124_v56 = vmul.f32 %v7005_v49, %v7705_v30  ;;  %v1519_v30 = vpop.permute.xlu0 %1518 }
 0x65a   :  { %v1132_v47 = vpack.c.bf16 %v1124_v56, %v1124_v56 }
 0x65c   :  { %6477 = vmatmul.mubr.msk.bf16.vlgmr.msra.gmra.mrb[32].mxu0 %vm1036_vm14, %v1132_v47  ;;  %v1621_v6 = vpop.permute.xlu0 %1620 }
 0x65d   :  { %6487 = vmatpush3.bf16.xpose.msra.mxu0 %v1576_v54  ;;  %6488 = vmatprep.mubr.msk.bf16.mxu0 %vm7208_vm11, %v7207_v17  ;;  %v1626_v23 = vsel %vm630_vm12, %v1621_v6, 0 }
 0x65e   :  { %6498 = vmatprep.subr.bf16.mxu0 %v7207_v17 }
 0x660   :  { %v1619_v61 = vpop.permute.xlu0 %1618 }
 0x664   :  { %v1721_v36 = vpop.permute.xlu0 %1720 }
 0x665   :  { %v1726_v28 = vsel %vm630_vm12, %v1721_v36, 0 }
 0x668   :  { %v1719_v25 = vpop.permute.xlu0 %1718 }
 0x66c   :  { %v1821_v8 = vpop.permute.xlu0 %1820 }
 0x66d   :  { %v1826_v26 = vsel %vm630_vm12, %v1821_v8, 0 }
 0x670   :  { %v1819_v16 = vpop.permute.xlu0 %1818 }
 0x679   :  { %v1105_v18 = vpop.xlane.xlu1 %1104 }
 0x67a   :  { %7006 = vrcp.f32 %v1105_v18 }
 0x67d   :  { %v1569_v58 = vpop.permute.xlu1 %1568 }
 0x67e   :  { %6489 = vmatmul.mubr.msk.bf16.vlgmr.msra.gmra.mrb[36].mxu0 %vm630_vm12, %v1569_v58 }
 0x67f   :  { %6500 = vmatprep.mubr.msk.bf16.mxu0 %vm7208_vm11, %v7207_v17 }
 0x681   :  { %v1671_v62 = vpop.permute.xlu1 %1670 }
 0x682   :  { %v1676_v4 = vsel %vm630_vm12, %v1671_v62, 0 }
 0x683   :  { %6499 = vmatpush3.bf16.xpose.msra.mxu0 %v1676_v4 }
 0x684   :  { %v7007_v10 = vpop.eup %7006  ;;  %6510 = vmatprep.subr.bf16.mxu0 %v7207_v17 }
 0x685   :  { %v1669_v5 = vpop.permute.xlu1 %1668  ;;  %v1123_v1 = vmul.f32 %v7007_v10, %v7722_v51 }
 0x687   :  { %v1131_v37 = vpack.c.bf16 %v1123_v1, %v1123_v1 }
 0x689   :  { %v1771_v48 = vpop.permute.xlu1 %1770  ;;  %6471 = vmatmul.mubr.msk.bf16.vlgmr.msra.gmra.mrb[40].mxu1 %vm1036_vm14, %v1131_v37 }
 0x68a   :  { %v1776_v60 = vsel %vm630_vm12, %v1771_v48, 0  ;;  %6481 = vmatpush3.bf16.xpose.msra.mxu1 %v1526_v12  ;;  %6501 = vmatmul.mubr.msk.bf16.vlgmr.msra.gmra.mrb[40].mxu0 %vm630_vm12, %v1669_v5 }
 0x68b   :  { %6511 = vmatpush3.bf16.xpose.msra.mxu0 %v1776_v60  ;;  %6482 = vmatprep.mubr.msk.bf16.mxu1 %vm7208_vm11, %v7207_v17 }
 0x68c   :  { %6492 = vmatprep.subr.bf16.mxu1 %v7207_v17  ;;  %6512 = vmatprep.mubr.msk.bf16.mxu0 %vm7208_vm11, %v7207_v17 }
 0x68d   :  { %v1769_v51 = vpop.permute.xlu1 %1768  ;;  %6522 = vmatprep.subr.bf16.mxu0 %v7207_v17 }
 0x691   :  { %v1871_v24 = vpop.permute.xlu1 %1870  ;;  %6483 = vmatmul.mubr.msk.bf16.vlgmr.msra.gmra.mrb[44].mxu1 %vm630_vm12, %v1519_v30 }
 0x692   :  { %v1876_v57 = vsel %vm630_vm12, %v1871_v24, 0  ;;  %6493 = vmatpush3.bf16.xpose.msra.mxu1 %v1626_v23  ;;  %6513 = vmatmul.mubr.msk.bf16.vlgmr.msra.gmra.mrb[44].mxu0 %vm630_vm12, %v1769_v51 }
 0x693   :  { %6523 = vmatpush3.bf16.xpose.msra.mxu0 %v1876_v57  ;;  %6494 = vmatprep.mubr.msk.bf16.mxu1 %vm7208_vm11, %v7207_v17 }
 0x694   :  { %6504 = vmatprep.subr.bf16.mxu1 %v7207_v17  ;;  %6524 = vmatprep.mubr.msk.bf16.mxu0 %vm7208_vm11, %v7207_v17 }
 0x695   :  { %6534 = vmatprep.subr.bf16.mxu0 %v7207_v17  ;;  %v1869_v32 = vpop.permute.xlu1 %1868 }
 0x699   :  { %6495 = vmatmul.mubr.msk.bf16.vlgmr.msra.gmra.mrb[48].mxu1 %vm630_vm12, %v1619_v61  ;;  %v2031_v33 = vpop.permute.xlu1 %2030 }
 0x69a   :  { %6505 = vmatpush3.bf16.xpose.msra.mxu1 %v1726_v28  ;;  %6525 = vmatmul.mubr.msk.bf16.vlgmr.msra.gmra.mrb[48].mxu0 %vm630_vm12, %v1869_v32  ;;  %v2036_v19 = vsel %vm1138_vm13, %v2031_v33, 0 }
 0x69b   :  { %6506 = vmatprep.mubr.msk.bf16.mxu1 %vm7208_vm11, %v7207_v17  ;;  %6516 = vmatprep.subr.bf16.mxu1 %v7207_v17 }
 0x69c   :  { %6536 = vmatprep.mubr.msk.bf16.mxu0 %vm7208_vm11, %v7207_v17 }
 0x6a1   :  { %6507 = vmatmul.mubr.msk.bf16.vlgmr.msra.gmra.mrb[52].mxu1 %vm630_vm12, %v1719_v25 }
 0x6a2   :  { %6517 = vmatpush3.bf16.xpose.msra.mxu1 %v1826_v26  ;;  %6518 = vmatprep.mubr.msk.bf16.mxu1 %vm7208_vm11, %v7207_v17 }
 0x6a3   :  { %6528 = vmatprep.subr.bf16.mxu1 %v7207_v17 }
 0x6a9   :  { %6519 = vmatmul.mubr.msk.bf16.vlgmr.msra.gmra.mrb[56].mxu1 %vm630_vm12, %v1819_v16 }
 0x6aa   :  { %6529 = vmatpush3.bf16.msra.mxu1 %v2036_v19  ;;  %6530 = vmatprep.mubr.msk.bf16.mxu1 %vm7208_vm11, %v7207_v17 }
 0x6ab   :  { %6540 = vmatprep.subr.bf16.mxu1 %v7207_v17 }
 0x6ea   :  { %v7837_v34 = vpop.f32.mrb[28].mxu1 }
 0x6eb   :  { %v6436_v41 = vpop.f32.mrb[29].mxu1 }
 0x6ec   :  { %v1179_v44 = vpop.f32.mrb[30].mxu1 }
 0x6ed   :  { %v6437_v31 = vpop.f32.mrb[31].mxu1 }
 0x6f6   :  { %v7839_v27 = vpop.f32.mrb[20].mxu0 }
 0x6f7   :  { %v6442_v21 = vpop.f32.mrb[21].mxu0 }
 0x6f8   :  { %v1227_v35 = vpop.f32.mrb[22].mxu0 }
 0x6f9   :  { %v6443_v49 = vpop.f32.mrb[23].mxu0 }
 0x6fe   :  { %v7841_v56 = vpop.f32.mrb[24].mxu0 }
 0x6ff   :  { %v6454_v46 = vpop.f32.mrb[25].mxu0 }
 0x700   :  { %v1323_v47 = vpop.f32.mrb[26].mxu0 }
 0x701   :  { %v6455_v54 = vpop.f32.mrb[27].mxu0 }
 0x706   :  { %v7843_v18 = vpop.f32.mrb[28].mxu0 }
 0x707   :  { %v6466_v55 = vpop.f32.mrb[29].mxu0 }
 0x708   :  { %v1419_v58 = vpop.f32.mrb[30].mxu0 }
 0x709   :  { %v6467_v30 = vpop.f32.mrb[31].mxu0 }
 0x71f   :  { %v7845_v62 = vpop.f32.mrb[32].mxu1 }
 0x720   :  { %v6448_v4 = vpop.f32.mrb[33].mxu1 }
 0x721   :  { %v1275_v10 = vpop.f32.mrb[34].mxu1 }
 0x722   :  { %v6449_v5 = vpop.f32.mrb[35].mxu1 }
 0x727   :  { %v7847_v1 = vpop.f32.mrb[36].mxu1 }
 0x728   :  { %v6460_v6 = vpop.f32.mrb[37].mxu1 }
 0x729   :  { %v1371_v37 = vpop.f32.mrb[38].mxu1 }
 0x72a   :  { %v6461_v12 = vpop.f32.mrb[39].mxu1 }
 0x72f   :  { %v7849_v48 = vpop.f32.mrb[32].mxu0 }
 0x730   :  { %v6478_v60 = vpop.f32.mrb[33].mxu0 }
 0x731   :  { %v1515_v61 = vpop.f32.mrb[34].mxu0 }
 0x732   :  { %v6479_v51 = vpop.f32.mrb[35].mxu0 }
 0x751   :  { %v1612_v23 = vpop.f32.mrb[36].mxu0 }
 0x752   :  { %v1919_v24 = vmul.f32 0.25, %v1612_v23  ;;  %v6490_v36 = vpop.f32.mrb[37].mxu0 }
 0x753   :  { %v1615_v57 = vpop.f32.mrb[38].mxu0 }
 0x754   :  { %v6491_v25 = vpop.f32.mrb[39].mxu0  ;;  %v7852_v28 = vadd.f32 %v1919_v24, %v7622_v22 }
 0x756   :  { %v1937_v32 = vsel %vm1036_vm14, %v7852_v28, -inf }
 0x757   :  { %1938 = vmax.xlane.f32.xlu1 %v1937_v32 }
 0x75c   :  { %v7856_v8 = vpop.f32.mrb[40].mxu1 }
 0x75d   :  { %v6472_v26 = vpop.f32.mrb[41].mxu1  ;;  %v1712_v33 = vpop.f32.mrb[40].mxu0 }
 0x75e   :  { %v1467_v16 = vpop.f32.mrb[42].mxu1  ;;  %v6502_v19 = vpop.f32.mrb[41].mxu0  ;;  %v1921_v6 = vmul.f32 0.25, %v1712_v33 }
 0x75f   :  { %v6473_v41 = vpop.f32.mrb[43].mxu1  ;;  %v1715_v44 = vpop.f32.mrb[42].mxu0 }
 0x760   :  { %v6503_v31 = vpop.f32.mrb[43].mxu0  ;;  %v1929_v26 = vadd.f32 %v1921_v6, %v7619_v20 }
 0x762   :  { %v1943_v44 = vsel %vm1036_vm14, %v1929_v26, -inf }
 0x764   :  { %v1562_v21 = vpop.f32.mrb[44].mxu1 }
 0x765   :  { %v1918_v35 = vmul.f32 0.25, %v1562_v21  ;;  %v6484_v49 = vpop.f32.mrb[45].mxu1  ;;  %v1812_v46 = vpop.f32.mrb[44].mxu0 }
 0x766   :  { %v1565_v47 = vpop.f32.mrb[46].mxu1  ;;  %v6514_v54 = vpop.f32.mrb[45].mxu0  ;;  %v1923_v25 = vmul.f32 0.25, %v1812_v46 }
 0x767   :  { %v6485_v55 = vpop.f32.mrb[47].mxu1  ;;  %v1815_v58 = vpop.f32.mrb[46].mxu0  ;;  %v1926_v30 = vadd.f32 %v1918_v35, %v7611_v2 }
 0x768   :  { %v6515_v4 = vpop.f32.mrb[47].mxu0  ;;  %v7865_v31 = vadd.f32 %v1923_v25, %v7635_v45 }
 0x769   :  { %v1934_v10 = vsel %vm1036_vm14, %v1926_v30, -inf }
 0x76a   :  { %1935 = vmax.xlane.f32.xlu0 %v1934_v10  ;;  %v1949_v46 = vsel %vm1036_vm14, %v7865_v31, -inf }
 0x76c   :  { %v1662_v5 = vpop.f32.mrb[48].mxu1 }
 0x76d   :  { %v1920_v37 = vmul.f32 0.25, %v1662_v5  ;;  %v6496_v12 = vpop.f32.mrb[49].mxu1  ;;  %v1912_v60 = vpop.f32.mrb[48].mxu0 }
 0x76e   :  { %v1665_v61 = vpop.f32.mrb[50].mxu1  ;;  %v6526_v51 = vpop.f32.mrb[49].mxu0  ;;  %v1925_v19 = vmul.f32 0.25, %v1912_v60 }
 0x76f   :  { %v6497_v23 = vpop.f32.mrb[51].mxu1  ;;  %v1915_v24 = vpop.f32.mrb[50].mxu0  ;;  %v1928_v36 = vadd.f32 %v1920_v37, %v7638_v52 }
 0x770   :  { %v6527_v57 = vpop.f32.mrb[51].mxu0  ;;  %v7872_v54 = vadd.f32 %v1925_v19, %v7646_v3 }
 0x771   :  { %v1940_v32 = vsel %vm1036_vm14, %v1928_v36, -inf }
 0x772   :  { %1941 = vmax.xlane.f32.xlu0 %v1940_v32  ;;  %v1955_v10 = vsel %vm1036_vm14, %v7872_v54, -inf }
 0x774   :  { %v1762_v16 = vpop.f32.mrb[52].mxu1 }
 0x775   :  { %v1922_v41 = vmul.f32 0.25, %v1762_v16  ;;  %v6508_v33 = vpop.f32.mrb[53].mxu1 }
 0x776   :  { %1944 = vmax.xlane.f32.xlu0 %v1943_v44  ;;  %v1765_v21 = vpop.f32.mrb[54].mxu1 }
 0x777   :  { %v6509_v35 = vpop.f32.mrb[55].mxu1  ;;  %v1930_v49 = vadd.f32 %v1922_v41, %v7658_v38 }
 0x779   :  { %v1946_v47 = vsel %vm1036_vm14, %v1930_v49, -inf }
 0x77a   :  { %1950 = vmax.xlane.f32.xlu0 %v1949_v46  ;;  %1947 = vmax.xlane.f32.xlu1 %v1946_v47 }
 0x77c   :  { %v1862_v55 = vpop.f32.mrb[56].mxu1 }
 0x77d   :  { %v1924_v58 = vmul.f32 0.25, %v1862_v55  ;;  %v6520_v4 = vpop.f32.mrb[57].mxu1 }
 0x77e   :  { %1956 = vmax.xlane.f32.xlu0 %v1955_v10  ;;  %v1865_v5 = vpop.f32.mrb[58].mxu1 }
 0x77f   :  { %v6521_v6 = vpop.f32.mrb[59].mxu1  ;;  %v1932_v37 = vadd.f32 %v1924_v58, %v7608_v59 }
 0x781   :  { %v1952_v12 = vsel %vm1036_vm14, %v1932_v37, -inf }
 0x782   :  { %1953 = vmax.xlane.f32.xlu1 %v1952_v12 }
 0x793   :  { %2126 = vrot.lane.b32.xlu1 %v7511_v0, %s7214_s7 }
 0x794   :  { %2078 = vrot.lane.b32.xlu0 %v7507_v63, %s7214_s7 }
 0x797   :  { %2174 = vrot.lane.b32.xlu1 %v7517_v7, %s7214_s7 }
 0x7e4   :  { %v1939_v60 = vpop.xlane.xlu1 %1938 }
 0x7e5   :  { %v1959_v61 = vsub.f32 %v7852_v28, %v1939_v60 }
 0x7e7   :  { %v1968_v51 = vmul.f32 1.442695, %v1959_v61 }
 0x7e9   :  { %7008 = vpow2.f32 %v1968_v51 }
 0x7f3   :  { %v7885_v23 = vpop.eup %7008 }
 0x7f4   :  { %v1985_v24 = vsel %vm1036_vm14, %v7885_v23, 0.0 }
 0x7f5   :  { %1986 = vadd.xlane.f32.xlu0 %v1985_v24 }
 0x7f7   :  { %v1936_v57 = vpop.xlane.xlu0 %1935 }
 0x7f8   :  { %v1958_v25 = vsub.f32 %v1926_v30, %v1936_v57 }
 0x7fa   :  { %v1966_v0 = vmul.f32 1.442695, %v1958_v25 }
 0x7fc   :  { %7010 = vpow2.f32 %v1966_v0 }
 0x7ff   :  { %v1942_v32 = vpop.xlane.xlu0 %1941 }
 0x800   :  { %v1960_v63 = vsub.f32 %v1928_v36, %v1942_v32 }
 0x802   :  { %v1970_v16 = vmul.f32 1.442695, %v1960_v63 }
 0x803   :  { %v1945_v19 = vpop.xlane.xlu0 %1944 }
 0x804   :  { %7012 = vpow2.f32 %v1970_v16  ;;  %v1961_v7 = vsub.f32 %v1929_v26, %v1945_v19 }
 0x806   :  { %v7889_v41 = vpop.eup %7010  ;;  %v1972_v28 = vmul.f32 1.442695, %v1961_v7 }
 0x807   :  { %v1951_v33 = vpop.xlane.xlu0 %1950  ;;  %v1982_v44 = vsel %vm1036_vm14, %v7889_v41, 0.0  ;;  %v1948_v55 = vpop.xlane.xlu1 %1947 }
 0x808   :  { %7014 = vpow2.f32 %v1972_v28  ;;  %1983 = vadd.xlane.f32.xlu1 %v1982_v44  ;;  %v1962_v58 = vsub.f32 %v1930_v49, %v1948_v55  ;;  %v1963_v10 = vsub.f32 %v7865_v31, %v1951_v33 }
 0x80a   :  { %v1974_v5 = vmul.f32 1.442695, %v1962_v58  ;;  %v1976_v12 = vmul.f32 1.442695, %v1963_v10 }
 0x80b   :  { %v1957_v21 = vpop.xlane.xlu0 %1956 }
 0x80c   :  { %7016 = vpow2.f32 %v1974_v5  ;;  %v1965_v60 = vsub.f32 %v7872_v54, %v1957_v21 }
 0x80d   :  { %7018 = vpow2.f32 %v1976_v12 }
 0x80e   :  { %v7893_v35 = vpop.eup %7012  ;;  %v1980_v51 = vmul.f32 1.442695, %v1965_v60 }
 0x80f   :  { %v2079_v30 = vpop.permute.xlu0 %2078  ;;  %v1988_v36 = vsel %vm1036_vm14, %v7893_v35, 0.0  ;;  %v1954_v4 = vpop.xlane.xlu1 %1953 }
 0x810   :  { %v2084_v46 = vsel %vm1138_vm13, %v2079_v30, 0  ;;  %1989 = vadd.xlane.f32.xlu1 %v1988_v36  ;;  %v1964_v6 = vsub.f32 %v1932_v37, %v1954_v4 }
 0x811   :  { %6535 = vmatpush3.bf16.msra.mxu0 %v2084_v46 }
 0x812   :  { %v7898_v26 = vpop.eup %7014  ;;  %6546 = vmatprep.subr.bf16.mxu0 %v7207_v17  ;;  %v1978_v61 = vmul.f32 1.442695, %v1964_v6 }
 0x813   :  { %v1991_v47 = vsel %vm1036_vm14, %v7898_v26, 0.0  ;;  %v2127_v0 = vpop.permute.xlu1 %2126 }
 0x814   :  { %1992 = vadd.xlane.f32.xlu0 %v1991_v47  ;;  %7020 = vpow2.f32 %v1978_v61  ;;  %v2132_v21 = vsel %vm1138_vm13, %v2127_v0, 0 }
 0x815   :  { %7022 = vpow2.f32 %v1980_v51 }
 0x817   :  { %v2175_v16 = vpop.permute.xlu1 %2174 }
 0x818   :  { %v2180_v7 = vsel %vm1138_vm13, %v2175_v16, 0 }
 0x821   :  { %2270 = vrot.lane.b32.xlu1 %v7527_v14, %s7214_s7  ;;  %v7909_v14 = vpop.eup %7016 }
 0x822   :  { %v7911_v24 = vpop.eup %7018 }
 0x823   :  { %v7915_v49 = vpop.eup %7020  ;;  %v1997_v54 = vsel %vm1036_vm14, %v7911_v24, 0.0 }
 0x824   :  { %v2000_v31 = vsel %vm1036_vm14, %v7915_v49, 0.0  ;;  %v7921_v37 = vpop.eup %7022 }
 0x825   :  { %v2003_v57 = vsel %vm1036_vm14, %v7921_v37, 0.0 }
 0x82a   :  { %2222 = vrot.lane.b32.xlu0 %v7519_v9, %s7214_s7  ;;  %v1994_v9 = vsel %vm1036_vm14, %v7909_v14, 0.0 }
 0x845   :  { %1995 = vadd.xlane.f32.xlu1 %v1994_v9 }
 0x849   :  { %2001 = vadd.xlane.f32.xlu1 %v2000_v31  ;;  %1998 = vadd.xlane.f32.xlu0 %v1997_v54 }
 0x84d   :  { %2004 = vadd.xlane.f32.xlu0 %v2003_v57 }
 0x85a   :  { %2366 = vrot.lane.b32.xlu1 %v7533_v15, %s7214_s7 }
 0x863   :  { %2318 = vrot.lane.b32.xlu0 %v7525_v11, %s7214_s7 }
 0x882   :  { %v1987_v25 = vpop.xlane.xlu0 %1986 }
 0x883   :  { %7024 = vrcp.f32 %v1987_v25 }
 0x88d   :  { %v7025_v32 = vpop.eup %7024 }
 0x88e   :  { %v2015_v63 = vmul.f32 %v7025_v32, %v7885_v23 }
 0x890   :  { %v2023_v19 = vpack.c.bf16 %v2015_v63, %v2015_v63 }
 0x892   :  { %6537 = vmatmul.mubr.msk.bf16.vlgmr.msra.gmra.mrb[52].mxu0 %vm1036_vm14, %v2023_v19 }
 0x893   :  { %6547 = vmatpush3.bf16.msra.mxu0 %v2180_v7  ;;  %6548 = vmatprep.mubr.msk.bf16.mxu0 %vm7208_vm11, %v7207_v17 }
 0x894   :  { %6558 = vmatprep.subr.bf16.mxu0 %v7207_v17 }
 0x895   :  { %v1984_v15 = vpop.xlane.xlu1 %1983 }
 0x896   :  { %7026 = vrcp.f32 %v1984_v15 }
 0x89d   :  { %v1990_v11 = vpop.xlane.xlu1 %1989 }
 0x89e   :  { %7028 = vrcp.f32 %v1990_v11 }
 0x8a0   :  { %v7027_v28 = vpop.eup %7026 }
 0x8a1   :  { %v1993_v33 = vpop.xlane.xlu0 %1992  ;;  %v2014_v23 = vmul.f32 %v7027_v28, %v7889_v41  ;;  %v2271_v4 = vpop.permute.xlu1 %2270 }
 0x8a2   :  { %7030 = vrcp.f32 %v1993_v33  ;;  %v2276_v5 = vsel %vm1138_vm13, %v2271_v4, 0  ;;  %v6938_v33 = vld [vmem:[%s8925_s9] sm:$0xff]  }
 0x8a3   :  { %v2022_v44 = vpack.c.bf16 %v2014_v23, %v2014_v23 }
 0x8a5   :  { %6531 = vmatmul.mubr.msk.bf16.vlgmr.msra.gmra.mrb[60].mxu1 %vm1036_vm14, %v2022_v44  ;;  %v2223_v46 = vpop.permute.xlu0 %2222 }
 0x8a6   :  { %6541 = vmatpush3.bf16.msra.mxu1 %v2132_v21  ;;  %6542 = vmatprep.mubr.msk.bf16.mxu1 %vm7208_vm11, %v7207_v17  ;;  %v2228_v41 = vsel %vm1138_vm13, %v2223_v46, 0 }
 0x8a7   :  { %6552 = vmatprep.subr.bf16.mxu1 %v7207_v17 }
 0x8a8   :  { %v7029_v30 = vpop.eup %7028 }
 0x8a9   :  { %v2016_v36 = vmul.f32 %v7029_v30, %v7893_v35 }
 0x8ab   :  { %v2024_v47 = vpack.c.bf16 %v2016_v36, %v2016_v36  ;;  %v6939_v36 = vld [vmem:[%s8925_s9 + $0x8] sm:$0xff]  }
 0x8ac   :  { %v7031_v55 = vpop.eup %7030 }
 0x8ad   :  { %6543 = vmatmul.mubr.msk.bf16.vlgmr.msra.gmra.mrb[64].mxu1 %vm1036_vm14, %v2024_v47  ;;  %v2017_v58 = vmul.f32 %v7031_v55, %v7898_v26 }
 0x8ae   :  { %6553 = vmatpush3.bf16.msra.mxu1 %v2228_v41  ;;  %6554 = vmatprep.mubr.msk.bf16.mxu1 %vm7208_vm11, %v7207_v17 }
 0x8af   :  { %v2025_v10 = vpack.c.bf16 %v2017_v58, %v2017_v58  ;;  %6564 = vmatprep.subr.bf16.mxu1 %v7207_v17 }
 0x8b1   :  { %6549 = vmatmul.mubr.msk.bf16.vlgmr.msra.gmra.mrb[56].mxu0 %vm1036_vm14, %v2025_v10 }
 0x8b2   :  { %6559 = vmatpush3.bf16.msra.mxu0 %v2276_v5  ;;  %6560 = vmatprep.mubr.msk.bf16.mxu0 %vm7208_vm11, %v7207_v17 }
 0x8b3   :  { %6570 = vmatprep.subr.bf16.mxu0 %v7207_v17 }
 0x8d2   :  { %v1996_v35 = vpop.xlane.xlu1 %1995 }
 0x8d3   :  { %7032 = vrcp.f32 %v1996_v35 }
 0x8d6   :  { %v2002_v26 = vpop.xlane.xlu1 %2001  ;;  %v1999_v6 = vpop.xlane.xlu0 %1998 }
 0x8d7   :  { %7034 = vrcp.f32 %v2002_v26 }
 0x8d8   :  { %7036 = vrcp.f32 %v1999_v6 }
 0x8da   :  { %v2005_v12 = vpop.xlane.xlu0 %2004  ;;  %v2367_v0 = vpop.permute.xlu1 %2366 }
 0x8db   :  { %7038 = vrcp.f32 %v2005_v12 }
 0x8dd   :  { %v7033_v60 = vpop.eup %7032 }
 0x8de   :  { %v2018_v61 = vmul.f32 %v7033_v60, %v7909_v14  ;;  %v2319_v51 = vpop.permute.xlu0 %2318  ;;  %v2372_v14 = vsel %vm1138_vm13, %v2367_v0, 0 }
 0x8df   :  { %v2324_v57 = vsel %vm1138_vm13, %v2319_v51, 0 }
 0x8e0   :  { %v2026_v9 = vpack.c.bf16 %v2018_v61, %v2018_v61 }
 0x8e1   :  { %v7035_v31 = vpop.eup %7034 }
 0x8e2   :  { %v7037_v54 = vpop.eup %7036  ;;  %6555 = vmatmul.mubr.msk.bf16.vlgmr.msra.gmra.mrb[68].mxu1 %vm1036_vm14, %v2026_v9  ;;  %v2020_v32 = vmul.f32 %v7035_v31, %v7915_v49 }
 0x8e3   :  { %6565 = vmatpush3.bf16.msra.mxu1 %v2324_v57  ;;  %v2019_v25 = vmul.f32 %v7037_v54, %v7911_v24  ;;  %6566 = vmatprep.mubr.msk.bf16.mxu1 %vm7208_vm11, %v7207_v17 }
 0x8e4   :  { %v2028_v19 = vpack.c.bf16 %v2020_v32, %v2020_v32  ;;  %6576 = vmatprep.subr.bf16.mxu1 %v6938_v33 }
 0x8e5   :  { %v2027_v63 = vpack.c.bf16 %v2019_v25, %v2019_v25  ;;  %v7039_v16 = vpop.eup %7038 }
 0x8e6   :  { %v2021_v7 = vmul.f32 %v7039_v16, %v7921_v37 }
 0x8e7   :  { %6561 = vmatmul.mubr.msk.bf16.vlgmr.msra.gmra.mrb[60].mxu0 %vm1036_vm14, %v2027_v63 }
 0x8e8   :  { %6571 = vmatpush3.bf16.msra.mxu0 %v2372_v14  ;;  %6572 = vmatprep.mubr.msk.bf16.mxu0 %vm7208_vm11, %v7207_v17  ;;  %v2029_v24 = vpack.c.bf16 %v2021_v7, %v2021_v7 }
 0x8ea   :  { %6567 = vmatmul.mubr.msk.bf16.vlgmr.msra.gmra.mrb[72].mxu1 %vm1036_vm14, %v2028_v19 }
 0x8eb   :  { %6577 = vmatpush3.bf16.msra.mxu1 %v6938_v33 }
 0x8ec   :  { %6578 = vmatprep.subr.bf16.mxu1 %v6939_v36 }
 0x8ef   :  { %6573 = vmatmul.mubr.msk.bf16.vlgmr.msra.gmra.mrb[64].mxu0 %vm1036_vm14, %v2029_v24  ;;  %6579 = vmatpush3.bf16.msra.mxu1 %v6939_v36 }
 0x965   :  { %v2120_v15 = vpop.f32.mrb[52].mxu0 }
 0x966   :  { %v6538_v49 = vpop.f32.mrb[53].mxu0 }
 0x967   :  { %v2123_v11 = vpop.f32.mrb[54].mxu0 }
 0x968   :  { %v6539_v28 = vpop.f32.mrb[55].mxu0 }
 0x978   :  { %v2072_v23 = vpop.f32.mrb[60].mxu1 }
 0x979   :  { %v6889_v44 = vpack.i.bf16 %v2120_v15, %v2072_v23  ;;  %v6532_v21 = vpop.f32.mrb[61].mxu1 }
 0x97a   :  { %v2075_v30 = vpop.f32.mrb[62].mxu1 }
 0x97b   :  { %v6533_v37 = vpop.f32.mrb[63].mxu1  ;;  %6890 = vrot.lane.b32.xlu0 %v6889_v44, %s7215_s25 }
 0x980   :  { %v2168_v46 = vpop.f32.mrb[64].mxu1 }
 0x981   :  { %v6544_v47 = vpop.f32.mrb[65].mxu1 }
 0x982   :  { %v2171_v55 = vpop.f32.mrb[66].mxu1 }
 0x983   :  { %v6545_v41 = vpop.f32.mrb[67].mxu1 }
 0x984   :  { %v2216_v58 = vpop.f32.mrb[56].mxu0 }
 0x985   :  { %v6894_v4 = vpack.i.bf16 %v2216_v58, %v2168_v46  ;;  %v6550_v10 = vpop.f32.mrb[57].mxu0 }
 0x986   :  { %v2219_v5 = vpop.f32.mrb[58].mxu0 }
 0x987   :  { %6895 = vrot.lane.b32.xlu1 %v6894_v4, %s7215_s25  ;;  %v6551_v35 = vpop.f32.mrb[59].mxu0 }
 0x9b5   :  { %v2264_v26 = vpop.f32.mrb[68].mxu1 }
 0x9b6   :  { %v6556_v6 = vpop.f32.mrb[69].mxu1 }
 0x9b7   :  { %v2267_v12 = vpop.f32.mrb[70].mxu1 }
 0x9b8   :  { %v6557_v60 = vpop.f32.mrb[71].mxu1 }
 0x9ba   :  { %v2312_v61 = vpop.f32.mrb[60].mxu0 }
 0x9bb   :  { %v6899_v51 = vpack.i.bf16 %v2312_v61, %v2264_v26  ;;  %v6562_v9 = vpop.f32.mrb[61].mxu0 }
 0x9bc   :  { %v2315_v31 = vpop.f32.mrb[62].mxu0 }
 0x9bd   :  { %6900 = vrot.lane.b32.xlu0 %v6899_v51, %s7215_s25  ;;  %v6563_v54 = vpop.f32.mrb[63].mxu0  ;;  %v2360_v57 = vpop.f32.mrb[72].mxu1 }
 0x9be   :  { %v6568_v25 = vpop.f32.mrb[73].mxu1 }
 0x9bf   :  { %v2363_v0 = vpop.f32.mrb[74].mxu1 }
 0x9c0   :  { %v6569_v32 = vpop.f32.mrb[75].mxu1 }
 0x9c2   :  { %v2408_v63 = vpop.f32.mrb[64].mxu0 }
 0x9c3   :  { %v6904_v16 = vpack.i.bf16 %v2408_v63, %v2360_v57  ;;  %v6574_v14 = vpop.f32.mrb[65].mxu0 }
 0x9c4   :  { %v2411_v19 = vpop.f32.mrb[66].mxu0 }
 0x9c5   :  { %v6575_v7 = vpop.f32.mrb[67].mxu0  ;;  %6905 = vrot.lane.b32.xlu1 %v6904_v16, %s7215_s25 }
 0x9ed   :  { %v6891_v24 = vpop.permute.xlu0 %6890 }
 0x9ee   :  { %v6893_v15 = vunpack.i.h.bf16 %v6891_v24  ;;  %v6892_v49 = vunpack.i.l.bf16 %v6891_v24 }
 0x9f0   :  { %v2447_v11 = vsel %vm630_vm12, %v7839_v27, %v6893_v15  ;;  %v2446_v28 = vsel %vm630_vm12, %v7837_v34, %v6892_v49 }
 0x9f1   :  { %v2458_v33 = vpack.c.bf16 %v2447_v11, %v2446_v28 }
 0x9f3   :  { %6580 = vmatprep.mubr.msk.bf16.mxu1 %vm287_vm10, %v2458_v33 }
 0x9f9   :  { %v6896_v23 = vpop.permute.xlu1 %6895 }
 0x9fa   :  { %v6898_v44 = vunpack.i.h.bf16 %v6896_v23  ;;  %v6897_v21 = vunpack.i.l.bf16 %v6896_v23 }
 0x9fc   :  { %v2449_v30 = vsel %vm630_vm12, %v7841_v56, %v6898_v44  ;;  %v2448_v37 = vsel %vm630_vm12, %v7845_v62, %v6897_v21 }
 0x9fd   :  { %v2459_v36 = vpack.c.bf16 %v2449_v30, %v2448_v37 }
 0x9ff   :  { %6581 = vmatmul.mubr.msk.bf16.vlgmr.msra.gmra.mrb[76].mxu1 %vm287_vm10, %v2459_v36 }
 0xa2f   :  { %v6901_v46 = vpop.permute.xlu0 %6900 }
 0xa30   :  { %v6903_v27 = vunpack.i.h.bf16 %v6901_v46  ;;  %v6902_v47 = vunpack.i.l.bf16 %v6901_v46 }
 0xa32   :  { %v2451_v34 = vsel %vm630_vm12, %v7843_v18, %v6903_v27  ;;  %v2450_v55 = vsel %vm630_vm12, %v7847_v1, %v6902_v47  ;;  %v6023_v18 = vld [vmem:[%s8926_s10] ss:$0 sm:$0xff] }
 0xa33   :  { %v2460_v41 = vpack.c.bf16 %v2451_v34, %v2450_v55 }
 0xa35   :  { %6584 = vmatprep.mubr.msk.bf16.mxu1 %vm287_vm10, %v2460_v41 }
 0xa37   :  { %v6906_v58 = vpop.permute.xlu1 %6905 }
 0xa38   :  { %v6908_v56 = vunpack.i.h.bf16 %v6906_v58  ;;  %v6907_v4 = vunpack.i.l.bf16 %v6906_v58 }
 0xa3a   :  { %v2453_v62 = vsel %vm630_vm12, %v7849_v48, %v6908_v56  ;;  %v2452_v10 = vsel %vm630_vm12, %v7856_v8, %v6907_v4 }
 0xa3b   :  { %v2461_v5 = vpack.c.bf16 %v2453_v62, %v2452_v10  ;;  %v6940_v10 = vld [vmem:[%s8927_s13] sm:$0xff]  }
 0xa3c   :  { %6588 = vmatprep.subr.bf16.mxu0 %v6940_v10 }
 0xa3d   :  { %6585 = vmatmul.mubr.msk.bf16.gmra.mrb[80].mxu1 %vm287_vm10, %v2461_v5  ;;  %v6941_v5 = vld [vmem:[%s8927_s13 + $0x8] sm:$0xff]   ;;  %6589 = vmatpush3.bf16.msra.mxu0 %v6940_v10 }
 0xa3e   :  { %6590 = vmatprep.subr.bf16.mxu0 %v6941_v5 }
 0xa41   :  { %6591 = vmatpush3.bf16.msra.mxu0 %v6941_v5 }
 0xad2   :  { %v6582_v1 = vpop.f32.mrb[76].mxu1 }
 0xad3   :  { %v2527_v35 = vpop.f32.mrb[77].mxu1  ;;  %v2536_v26 = vadd.f32 %v6582_v1, %v6023_v18 }
 0xad4   :  { %v2528_v6 = vadd.f32 %v6023_v18, %v2527_v35  ;;  %v6583_v12 = vpop.f32.mrb[78].mxu1 }
 0xad5   :  { %v2530_v60 = vpop.f32.mrb[79].mxu1  ;;  %v2560_v48 = vadd.f32 %v2536_v26, %v7475_v42  ;;  %v2539_v9 = vadd.f32 %v6583_v12, %v6023_v18 }
 0xad6   :  { %v2558_v61 = vadd.f32 %v2528_v6, %v7465_v29  ;;  %v2531_v51 = vadd.f32 %v6023_v18, %v2530_v60 }
 0xad7   :  { %v2561_v57 = vadd.f32 %v2539_v9, %v7477_v43  ;;  %v2574_v25 = vsel %vm287_vm10, %v2560_v48, 0.0 }
 0xad8   :  { %v2559_v8 = vadd.f32 %v2531_v51, %v7467_v13  ;;  %v2568_v31 = vsel %vm287_vm10, %v2558_v61, 0.0 }
 0xad9   :  { %2569 = vadd.xlane.f32.xlu0 %v2568_v31  ;;  %v2577_v0 = vsel %vm287_vm10, %v2561_v57, 0.0 }
 0xada   :  { %v2571_v54 = vsel %vm287_vm10, %v2559_v8, 0.0 }
 0xadb   :  { %2572 = vadd.xlane.f32.xlu1 %v2571_v54 }
 0xadd   :  { %2575 = vadd.xlane.f32.xlu0 %v2574_v25 }
 0xae1   :  { %2578 = vadd.xlane.f32.xlu0 %v2577_v0 }
 0xb10   :  { %v6586_v29 = vpop.f32.mrb[80].mxu1 }
 0xb11   :  { %v2543_v32 = vpop.f32.mrb[81].mxu1  ;;  %v2552_v42 = vadd.f32 %v6586_v29, %v6023_v18 }
 0xb12   :  { %v2544_v63 = vadd.f32 %v6023_v18, %v2543_v32  ;;  %v6587_v16 = vpop.f32.mrb[82].mxu1 }
 0xb13   :  { %v2546_v13 = vpop.f32.mrb[83].mxu1  ;;  %v2555_v19 = vadd.f32 %v6587_v16, %v6023_v18  ;;  %v2564_v24 = vadd.f32 %v2552_v42, %v7490_v40 }
 0xb14   :  { %v2562_v14 = vadd.f32 %v2544_v63, %v7484_v50  ;;  %v2547_v7 = vadd.f32 %v6023_v18, %v2546_v13 }
 0xb15   :  { %v2565_v49 = vadd.f32 %v2555_v19, %v7492_v53  ;;  %v2586_v28 = vsel %vm287_vm10, %v2564_v24, 0.0 }
 0xb16   :  { %v2563_v43 = vadd.f32 %v2547_v7, %v7486_v39  ;;  %v2580_v15 = vsel %vm287_vm10, %v2562_v14, 0.0 }
 0xb17   :  { %2581 = vadd.xlane.f32.xlu1 %v2580_v15  ;;  %v2589_v33 = vsel %vm287_vm10, %v2565_v49, 0.0 }
 0xb18   :  { %v2583_v11 = vsel %vm287_vm10, %v2563_v43, 0.0 }
 0xb19   :  { %2584 = vadd.xlane.f32.xlu0 %v2583_v11 }
 0xb1b   :  { %2587 = vadd.xlane.f32.xlu1 %v2586_v28 }
 0xb1d   :  { %2590 = vadd.xlane.f32.xlu0 %v2589_v33 }
 0xb66   :  { %v2570_v50 = vpop.xlane.xlu0 %2569 }
 0xb67   :  { %v2592_v23 = vmul.f32 0.03125, %v2570_v50  ;;  %v6030_v50 = vld [vmem:[%s8928_s11] ss:$0 sm:$0xff] }
 0xb68   :  { %v2573_v44 = vpop.xlane.xlu1 %2572 }
 0xb69   :  { %v8016_v40 = vsub.f32 %v2558_v61, %v2592_v23  ;;  %v2593_v39 = vmul.f32 0.03125, %v2573_v44 }
 0xb6a   :  { %v2576_v21 = vpop.xlane.xlu0 %2575 }
 0xb6b   :  { %v8018_v30 = vsub.f32 %v2559_v8, %v2593_v39  ;;  %v2594_v37 = vmul.f32 0.03125, %v2576_v21  ;;  %v2608_v53 = vmul.f32 %v8016_v40, %v8016_v40 }
 0xb6d   :  { %v8022_v36 = vsub.f32 %v2560_v48, %v2594_v37  ;;  %v2616_v46 = vsel %vm287_vm10, %v2608_v53, 0.0  ;;  %v2609_v27 = vmul.f32 %v8018_v30, %v8018_v30  ;;  %v6031_v53 = vld [vmem:[%s8929_s12] ss:$0 sm:$0xff] }
 0xb6e   :  { %2617 = vadd.xlane.f32.xlu1 %v2616_v46  ;;  %v2579_v47 = vpop.xlane.xlu0 %2578 }
 0xb6f   :  { %v2595_v34 = vmul.f32 0.03125, %v2579_v47  ;;  %v2619_v55 = vsel %vm287_vm10, %v2609_v27, 0.0  ;;  %v2610_v41 = vmul.f32 %v8022_v36, %v8022_v36 }
 0xb70   :  { %2620 = vadd.xlane.f32.xlu0 %v2619_v55 }
 0xb71   :  { %v8030_v58 = vsub.f32 %v2561_v57, %v2595_v34  ;;  %v2622_v56 = vsel %vm287_vm10, %v2610_v41, 0.0 }
 0xb72   :  { %2623 = vadd.xlane.f32.xlu1 %v2622_v56 }
 0xb73   :  { %v2611_v4 = vmul.f32 %v8030_v58, %v8030_v58 }
 0xb75   :  { %v2625_v62 = vsel %vm287_vm10, %v2611_v4, 0.0 }
 0xb76   :  { %2626 = vadd.xlane.f32.xlu0 %v2625_v62 }
 0xba4   :  { %v2582_v18 = vpop.xlane.xlu1 %2581 }
 0xba5   :  { %v2596_v1 = vmul.f32 0.03125, %v2582_v18 }
 0xba6   :  { %v2585_v35 = vpop.xlane.xlu0 %2584 }
 0xba7   :  { %v8042_v26 = vsub.f32 %v2562_v14, %v2596_v1  ;;  %v2597_v6 = vmul.f32 0.03125, %v2585_v35 }
 0xba8   :  { %v2588_v12 = vpop.xlane.xlu1 %2587 }
 0xba9   :  { %v8044_v60 = vsub.f32 %v2563_v43, %v2597_v6  ;;  %v2598_v61 = vmul.f32 0.03125, %v2588_v12  ;;  %v2612_v51 = vmul.f32 %v8042_v26, %v8042_v26 }
 0xbaa   :  { %v2591_v48 = vpop.xlane.xlu0 %2590 }
 0xbab   :  { %v8048_v9 = vsub.f32 %v2564_v24, %v2598_v61  ;;  %v2599_v8 = vmul.f32 0.03125, %v2591_v48  ;;  %v2628_v31 = vsel %vm287_vm10, %v2612_v51, 0.0  ;;  %v2613_v54 = vmul.f32 %v8044_v60, %v8044_v60 }
 0xbac   :  { %2629 = vadd.xlane.f32.xlu1 %v2628_v31 }
 0xbad   :  { %v8053_v57 = vsub.f32 %v2565_v49, %v2599_v8  ;;  %v2631_v25 = vsel %vm287_vm10, %v2613_v54, 0.0  ;;  %v2614_v0 = vmul.f32 %v8048_v9, %v8048_v9 }
 0xbae   :  { %2632 = vadd.xlane.f32.xlu0 %v2631_v25 }
 0xbaf   :  { %v2634_v29 = vsel %vm287_vm10, %v2614_v0, 0.0  ;;  %v2615_v32 = vmul.f32 %v8053_v57, %v8053_v57 }
 0xbb0   :  { %2635 = vadd.xlane.f32.xlu1 %v2634_v29 }
 0xbb1   :  { %v2637_v42 = vsel %vm287_vm10, %v2615_v32, 0.0 }
 0xbb2   :  { %2638 = vadd.xlane.f32.xlu0 %v2637_v42 }
 0xbfb   :  { %v2618_v63 = vpop.xlane.xlu1 %2617 }
 0xbfc   :  { %v2640_v16 = vmul.f32 0.03125, %v2618_v63 }
 0xbfd   :  { %v2621_v13 = vpop.xlane.xlu0 %2620 }
 0xbfe   :  { %v2648_v14 = vadd.f32 1e-12, %v2640_v16  ;;  %v2641_v19 = vmul.f32 0.03125, %v2621_v13 }
 0xbff   :  { %v2624_v7 = vpop.xlane.xlu1 %2623 }
 0xc00   :  { %7040 = vrsqrt.f32 %v2648_v14  ;;  %v2649_v24 = vadd.f32 1e-12, %v2641_v19  ;;  %v2642_v43 = vmul.f32 0.03125, %v2624_v7 }
 0xc02   :  { %7042 = vrsqrt.f32 %v2649_v24  ;;  %v2650_v15 = vadd.f32 1e-12, %v2642_v43 }
 0xc03   :  { %v2627_v49 = vpop.xlane.xlu0 %2626 }
 0xc04   :  { %7044 = vrsqrt.f32 %v2650_v15  ;;  %v2643_v11 = vmul.f32 0.03125, %v2627_v49  ;;  %v6943_v15 = vld [vmem:[%s8930_s15 + $0x8] sm:$0xff]   ;;  %v6944_v49 = vld [vmem:[%s8930_s15 + $0x10] sm:$0xff]  }
 0xc06   :  { %v2651_v28 = vadd.f32 1e-12, %v2643_v11  ;;  %v6945_v11 = vld [vmem:[%s8930_s15 + $0x18] sm:$0xff]  }
 0xc08   :  { %7046 = vrsqrt.f32 %v2651_v28  ;;  %v8120_v28 = vld [vmem:[%s8931_s14] ss:$0 sm:$0xff] }
 0xc0a   :  { %v7041_v33 = vpop.eup %7040 }
 0xc0b   :  { %v2664_v23 = vmul.f32 %v7041_v33, %v8016_v40 }
 0xc0c   :  { %v7043_v44 = vpop.eup %7042 }
 0xc0d   :  { %v2665_v39 = vmul.f32 %v7043_v44, %v8018_v30  ;;  %v2678_v21 = vmul.f32 %v6030_v50, %v2664_v23 }
 0xc0e   :  { %v7045_v37 = vpop.eup %7044 }
 0xc0f   :  { %v2666_v46 = vmul.f32 %v7045_v37, %v8022_v36  ;;  %v2679_v27 = vmul.f32 %v6030_v50, %v2665_v39  ;;  %v8071_v47 = vadd.f32 %v6031_v53, %v2678_v21 }
 0xc11   :  { %v8073_v34 = vadd.f32 %v6031_v53, %v2679_v27  ;;  %v2680_v41 = vmul.f32 %v6030_v50, %v2666_v46 }
 0xc12   :  { %v7047_v55 = vpop.eup %7046 }
 0xc13   :  { %v2667_v40 = vmul.f32 %v7047_v55, %v8030_v58  ;;  %v2704_v30 = vpack.c.bf16 %v8073_v34, %v8071_v47  ;;  %v8079_v4 = vadd.f32 %v6031_v53, %v2680_v41 }
 0xc15   :  { %v2681_v56 = vmul.f32 %v6030_v50, %v2667_v40  ;;  %6592 = vmatprep.mubr.msk.bf16.mxu0 %vm287_vm10, %v2704_v30 }
 0xc17   :  { %v8081_v62 = vadd.f32 %v6031_v53, %v2681_v56 }
 0xc19   :  { %v2705_v36 = vpack.c.bf16 %v8081_v62, %v8079_v4 }
 0xc1b   :  { %6593 = vmatmul.mubr.msk.bf16.vlgmr.msra.gmra.mrb[68].mxu0 %vm287_vm10, %v2705_v36 }
 0xc39   :  { %v2630_v10 = vpop.xlane.xlu1 %2629 }
 0xc3a   :  { %v2644_v5 = vmul.f32 0.03125, %v2630_v10 }
 0xc3b   :  { %v2633_v18 = vpop.xlane.xlu0 %2632 }
 0xc3c   :  { %v2652_v1 = vadd.f32 1e-12, %v2644_v5  ;;  %v2645_v58 = vmul.f32 0.03125, %v2633_v18 }
 0xc3d   :  { %v2636_v35 = vpop.xlane.xlu1 %2635 }
 0xc3e   :  { %7048 = vrsqrt.f32 %v2652_v1  ;;  %v2653_v6 = vadd.f32 1e-12, %v2645_v58  ;;  %v2646_v12 = vmul.f32 0.03125, %v2636_v35 }
 0xc3f   :  { %v2639_v61 = vpop.xlane.xlu0 %2638 }
 0xc40   :  { %7050 = vrsqrt.f32 %v2653_v6  ;;  %v2654_v51 = vadd.f32 1e-12, %v2646_v12  ;;  %v2647_v48 = vmul.f32 0.03125, %v2639_v61 }
 0xc42   :  { %7052 = vrsqrt.f32 %v2654_v51  ;;  %v2655_v8 = vadd.f32 1e-12, %v2647_v48 }
 0xc44   :  { %7054 = vrsqrt.f32 %v2655_v8 }
 0xc48   :  { %v7049_v31 = vpop.eup %7048 }
 0xc49   :  { %v2668_v54 = vmul.f32 %v7049_v31, %v8042_v26 }
 0xc4a   :  { %v7051_v25 = vpop.eup %7050 }
 0xc4b   :  { %v2669_v0 = vmul.f32 %v7051_v25, %v8044_v60  ;;  %v2682_v29 = vmul.f32 %v6030_v50, %v2668_v54 }
 0xc4c   :  { %v7053_v32 = vpop.eup %7052 }
 0xc4d   :  { %v2683_v42 = vmul.f32 %v6030_v50, %v2669_v0  ;;  %v2670_v63 = vmul.f32 %v7053_v32, %v8048_v9  ;;  %v8089_v13 = vadd.f32 %v6031_v53, %v2682_v29 }
 0xc4e   :  { %v7055_v16 = vpop.eup %7054 }
 0xc4f   :  { %v8091_v14 = vadd.f32 %v6031_v53, %v2683_v42  ;;  %v2671_v19 = vmul.f32 %v7055_v16, %v8053_v57  ;;  %v2684_v7 = vmul.f32 %v6030_v50, %v2670_v63  ;;  %v6942_v57 = vld [vmem:[%s8930_s15] sm:$0xff]  }
 0xc50   :  { %6600 = vmatprep.subr.bf16.mxu1 %v6942_v57 }
 0xc51   :  { %v2706_v24 = vpack.c.bf16 %v8091_v14, %v8089_v13  ;;  %v2685_v26 = vmul.f32 %v6030_v50, %v2671_v19  ;;  %v8097_v60 = vadd.f32 %v6031_v53, %v2684_v7  ;;  %6601 = vmatpush3.bf16.msra.mxu1 %v6942_v57 }
 0xc52   :  { %6602 = vmatprep.subr.bf16.mxu1 %v6943_v15 }
 0xc53   :  { %6596 = vmatprep.mubr.msk.bf16.mxu0 %vm287_vm10, %v2706_v24  ;;  %v8099_v43 = vadd.f32 %v6031_v53, %v2685_v26 }
 0xc55   :  { %v2707_v9 = vpack.c.bf16 %v8099_v43, %v8097_v60  ;;  %6603 = vmatpush3.bf16.msra.mxu1 %v6943_v15 }
 0xc56   :  { %6604 = vmatprep.subr.bf16.mxu1 %v6944_v49 }
 0xc57   :  { %6597 = vmatmul.mubr.msk.bf16.gmra.mrb[72].mxu0 %vm287_vm10, %v2707_v9 }
 0xc59   :  { %6605 = vmatpush3.bf16.msra.mxu1 %v6944_v49 }
 0xc5a   :  { %6606 = vmatprep.subr.bf16.mxu1 %v6945_v11 }
 0xc5d   :  { %6607 = vmatpush3.bf16.msra.mxu1 %v6945_v11 }
 0xc5e   :  { %6628 = vmatprep.subr.bf16.mxu1 %v7207_v17 }
 0xcee   :  { %v6594_v33 = vpop.f32.mrb[68].mxu0 }
 0xcef   :  { %v2782_v50 = vadd.f32 %v6594_v33, %v8120_v28  ;;  %v2773_v23 = vpop.f32.mrb[69].mxu0 }
 0xcf0   :  { %v2774_v44 = vadd.f32 %v8120_v28, %v2773_v23  ;;  %v6595_v39 = vpop.f32.mrb[70].mxu0 }
 0xcf1   :  { %v2806_v21 = vmul.f32 %v2782_v50, %v2782_v50  ;;  %v2785_v37 = vadd.f32 %v6595_v39, %v8120_v28  ;;  %v2776_v53 = vpop.f32.mrb[71].mxu0 }
 0xcf2   :  { %v2804_v46 = vmul.f32 %v2774_v44, %v2774_v44  ;;  %v2777_v27 = vadd.f32 %v8120_v28, %v2776_v53 }
 0xcf3   :  { %v2814_v55 = vmul.f32 %v2806_v21, %v2782_v50  ;;  %v2807_v41 = vmul.f32 %v2785_v37, %v2785_v37 }
 0xcf4   :  { %v2812_v40 = vmul.f32 %v2804_v46, %v2774_v44  ;;  %v2805_v30 = vmul.f32 %v2777_v27, %v2777_v27 }
 0xcf5   :  { %v2822_v56 = vmul.f32 0.044715, %v2814_v55  ;;  %v2815_v36 = vmul.f32 %v2807_v41, %v2785_v37 }
 0xcf6   :  { %v2820_v10 = vmul.f32 0.044715, %v2812_v40  ;;  %v2813_v5 = vmul.f32 %v2805_v30, %v2777_v27 }
 0xcf7   :  { %v2830_v18 = vadd.f32 %v2822_v56, %v2782_v50  ;;  %v2823_v1 = vmul.f32 0.044715, %v2815_v36 }
 0xcf8   :  { %v2828_v58 = vadd.f32 %v2820_v10, %v2774_v44  ;;  %v2821_v35 = vmul.f32 0.044715, %v2813_v5 }
 0xcf9   :  { %v2838_v6 = vmul.f32 0.7978846, %v2830_v18  ;;  %v2831_v12 = vadd.f32 %v2823_v1, %v2785_v37 }
 0xcfa   :  { %v2836_v61 = vmul.f32 0.7978846, %v2828_v58  ;;  %v2829_v51 = vadd.f32 %v2821_v35, %v2777_v27 }
 0xcfb   :  { %7056 = vtanh.f32 %v2838_v6  ;;  %v2839_v48 = vmul.f32 0.7978846, %v2831_v12 }
 0xcfc   :  { %7058 = vtanh.f32 %v2836_v61  ;;  %v2837_v8 = vmul.f32 0.7978846, %v2829_v51 }
 0xcfd   :  { %7060 = vtanh.f32 %v2839_v48 }
 0xcfe   :  { %7062 = vtanh.f32 %v2837_v8 }
 0xd05   :  { %v7057_v31 = vpop.eup %7056 }
 0xd06   :  { %v7059_v54 = vpop.eup %7058  ;;  %v2854_v25 = vadd.f32 1.0, %v7057_v31 }
 0xd07   :  { %v7061_v0 = vpop.eup %7060  ;;  %v2852_v29 = vadd.f32 1.0, %v7059_v54 }
 0xd08   :  { %v7063_v32 = vpop.eup %7062  ;;  %v2862_v42 = vmul.f32 0.5, %v2854_v25  ;;  %v2855_v63 = vadd.f32 1.0, %v7061_v0 }
 0xd09   :  { %v2860_v16 = vmul.f32 0.5, %v2852_v29  ;;  %v2853_v19 = vadd.f32 1.0, %v7063_v32 }
 0xd0a   :  { %v2863_v7 = vmul.f32 0.5, %v2855_v63  ;;  %v2870_v26 = vmul.f32 %v2862_v42, %v2782_v50 }
 0xd0b   :  { %v2861_v24 = vmul.f32 0.5, %v2853_v19  ;;  %v2868_v57 = vmul.f32 %v2860_v16, %v2774_v44 }
 0xd0c   :  { %v2871_v9 = vmul.f32 %v2863_v7, %v2785_v37 }
 0xd0d   :  { %v2869_v15 = vmul.f32 %v2861_v24, %v2777_v27 }
 0xd0e   :  { %v2885_v49 = vpack.c.bf16 %v2871_v9, %v2870_v26 }
 0xd0f   :  { %v2884_v11 = vpack.c.bf16 %v2869_v15, %v2868_v57 }
 0xd11   :  { %6608 = vmatprep.mubr.msk.bf16.mxu1 %vm2919_vm15, %v2884_v11  ;;  %v6039_v11 = vld [vmem:[%s8932_s16] ss:$0 sm:$0xff] }
 0xd12   :  { %6609 = vmatmul.mubr.msk.bf16.vlgmr.msra.gmra.mrb[84].mxu1 %vm2919_vm15, %v2885_v49 }
 0xd2a   :  { %v6598_v33 = vpop.f32.mrb[72].mxu0 }
 0xd2b   :  { %v2798_v23 = vadd.f32 %v6598_v33, %v8120_v28  ;;  %v2789_v39 = vpop.f32.mrb[73].mxu0 }
 0xd2c   :  { %v2790_v21 = vadd.f32 %v8120_v28, %v2789_v39  ;;  %v6599_v53 = vpop.f32.mrb[74].mxu0 }
 0xd2d   :  { %v2810_v46 = vmul.f32 %v2798_v23, %v2798_v23  ;;  %v2801_v50 = vadd.f32 %v6599_v53, %v8120_v28  ;;  %v2792_v37 = vpop.f32.mrb[75].mxu0 }
 0xd2e   :  { %v2808_v44 = vmul.f32 %v2790_v21, %v2790_v21  ;;  %v2793_v27 = vadd.f32 %v8120_v28, %v2792_v37 }
 0xd2f   :  { %v2818_v55 = vmul.f32 %v2810_v46, %v2798_v23  ;;  %v2811_v41 = vmul.f32 %v2801_v50, %v2801_v50 }
 0xd30   :  { %v2816_v40 = vmul.f32 %v2808_v44, %v2790_v21  ;;  %v2809_v30 = vmul.f32 %v2793_v27, %v2793_v27 }
 0xd31   :  { %v2826_v56 = vmul.f32 0.044715, %v2818_v55  ;;  %v2819_v36 = vmul.f32 %v2811_v41, %v2801_v50 }
 0xd32   :  { %v2824_v10 = vmul.f32 0.044715, %v2816_v40  ;;  %v2817_v5 = vmul.f32 %v2809_v30, %v2793_v27 }
 0xd33   :  { %v2834_v18 = vadd.f32 %v2826_v56, %v2798_v23  ;;  %v2827_v1 = vmul.f32 0.044715, %v2819_v36 }
 0xd34   :  { %v2832_v58 = vadd.f32 %v2824_v10, %v2790_v21  ;;  %v2825_v35 = vmul.f32 0.044715, %v2817_v5 }
 0xd35   :  { %v2842_v6 = vmul.f32 0.7978846, %v2834_v18  ;;  %v2835_v12 = vadd.f32 %v2827_v1, %v2801_v50 }
 0xd36   :  { %v2840_v61 = vmul.f32 0.7978846, %v2832_v58  ;;  %v2833_v51 = vadd.f32 %v2825_v35, %v2793_v27 }
 0xd37   :  { %7064 = vtanh.f32 %v2842_v6  ;;  %v2843_v48 = vmul.f32 0.7978846, %v2835_v12 }
 0xd38   :  { %7066 = vtanh.f32 %v2840_v61  ;;  %v2841_v28 = vmul.f32 0.7978846, %v2833_v51 }
 0xd39   :  { %7068 = vtanh.f32 %v2843_v48 }
 0xd3a   :  { %7070 = vtanh.f32 %v2841_v28 }
 0xd41   :  { %v7065_v8 = vpop.eup %7064 }
 0xd42   :  { %v7067_v31 = vpop.eup %7066  ;;  %v2858_v54 = vadd.f32 1.0, %v7065_v8 }
 0xd43   :  { %v7069_v25 = vpop.eup %7068  ;;  %v2856_v0 = vadd.f32 1.0, %v7067_v31 }
 0xd44   :  { %v7071_v29 = vpop.eup %7070  ;;  %v2866_v32 = vmul.f32 0.5, %v2858_v54  ;;  %v2859_v42 = vadd.f32 1.0, %v7069_v25 }
 0xd45   :  { %v2864_v63 = vmul.f32 0.5, %v2856_v0  ;;  %v2857_v16 = vadd.f32 1.0, %v7071_v29 }
 0xd46   :  { %v2867_v19 = vmul.f32 0.5, %v2859_v42  ;;  %v2874_v24 = vmul.f32 %v2866_v32, %v2798_v23 }
 0xd47   :  { %v2865_v7 = vmul.f32 0.5, %v2857_v16  ;;  %v2872_v9 = vmul.f32 %v2864_v63, %v2790_v21 }
 0xd48   :  { %v2875_v26 = vmul.f32 %v2867_v19, %v2801_v50 }
 0xd49   :  { %v2873_v57 = vmul.f32 %v2865_v7, %v2793_v27 }
 0xd4a   :  { %v2887_v15 = vpack.c.bf16 %v2875_v26, %v2874_v24 }
 0xd4b   :  { %v2886_v49 = vpack.c.bf16 %v2873_v57, %v2872_v9 }
 0xd4d   :  { %6612 = vmatprep.mubr.msk.bf16.mxu1 %vm2919_vm15, %v2886_v49  ;;  %v6947_v49 = vld [vmem:[%s8956_s29 + $0x18] sm:$0xff]  }
 0xd4e   :  { %6613 = vmatmul.mubr.msk.bf16.gmra.mrb[88].mxu1 %vm2919_vm15, %v2887_v15  ;;  %v6946_v15 = vld [vmem:[%s8956_s29 + $0x10] sm:$0xff]  }
 0xd4f   :  { %6630 = vmatprep.mubr.msk.bf16.mxu1 %vm7208_vm11, %v7207_v17  ;;  %6616 = vmatprep.subr.bf16.mxu0 %v6946_v15 }
 0xd50   :  { %6617 = vmatpush3.bf16.msra.mxu0 %v6946_v15 }
 0xd51   :  { %6618 = vmatprep.subr.bf16.mxu0 %v6947_v49 }
 0xd54   :  { %6619 = vmatpush3.bf16.msra.mxu0 %v6947_v49 }
 0xd55   :  { %6634 = vmatprep.subr.bf16.mxu0 %v7207_v17 }
 0xde5   :  { %v6610_v33 = vpop.f32.mrb[84].mxu1 }
 0xde6   :  { %v2966_v39 = vpop.f32.mrb[85].mxu1  ;;  %v2975_v53 = vadd.f32 %v6610_v33, %v6039_v11 }
 0xde7   :  { %v2967_v23 = vadd.f32 %v6039_v11, %v2966_v39  ;;  %v6611_v46 = vpop.f32.mrb[86].mxu1 }
 0xde8   :  { %v2969_v21 = vpop.f32.mrb[87].mxu1  ;;  %v2978_v37 = vadd.f32 %v6611_v46, %v6039_v11  ;;  %v2999_v27 = vadd.f32 %v2975_v53, %v8079_v4 }
 0xde9   :  { %v2997_v50 = vadd.f32 %v2967_v23, %v8071_v47  ;;  %v2970_v44 = vadd.f32 %v6039_v11, %v2969_v21 }
 0xdea   :  { %v3000_v40 = vadd.f32 %v2978_v37, %v8081_v62  ;;  %v3013_v56 = vsel %vm287_vm10, %v2999_v27, 0.0 }
 0xdeb   :  { %v2998_v55 = vadd.f32 %v2970_v44, %v8073_v34  ;;  %v3007_v41 = vsel %vm287_vm10, %v2997_v50, 0.0 }
 0xdec   :  { %3008 = vadd.xlane.f32.xlu1 %v3007_v41  ;;  %v3016_v36 = vsel %vm287_vm10, %v3000_v40, 0.0 }
 0xded   :  { %v3010_v30 = vsel %vm287_vm10, %v2998_v55, 0.0 }
 0xdee   :  { %3011 = vadd.xlane.f32.xlu0 %v3010_v30 }
 0xdf0   :  { %3014 = vadd.xlane.f32.xlu1 %v3013_v56 }
 0xdf2   :  { %3017 = vadd.xlane.f32.xlu0 %v3016_v36 }
 0xe21   :  { %v6614_v47 = vpop.f32.mrb[88].mxu1 }
 0xe22   :  { %v2991_v10 = vadd.f32 %v6614_v47, %v6039_v11  ;;  %v2982_v5 = vpop.f32.mrb[89].mxu1 }
 0xe23   :  { %v2983_v4 = vadd.f32 %v6039_v11, %v2982_v5  ;;  %v6615_v18 = vpop.f32.mrb[90].mxu1 }
 0xe24   :  { %v2994_v34 = vadd.f32 %v6615_v18, %v6039_v11  ;;  %v2985_v1 = vpop.f32.mrb[91].mxu1  ;;  %v3003_v62 = vadd.f32 %v2991_v10, %v8097_v60 }
 0xe25   :  { %v3001_v58 = vadd.f32 %v2983_v4, %v8089_v13  ;;  %v2986_v35 = vadd.f32 %v6039_v11, %v2985_v1 }
 0xe26   :  { %v3004_v61 = vadd.f32 %v2994_v34, %v8099_v43  ;;  %v3025_v48 = vsel %vm287_vm10, %v3003_v62, 0.0 }
 0xe27   :  { %v3002_v6 = vadd.f32 %v2986_v35, %v8091_v14  ;;  %v3019_v12 = vsel %vm287_vm10, %v3001_v58, 0.0 }
 0xe28   :  { %3020 = vadd.xlane.f32.xlu1 %v3019_v12  ;;  %v3028_v28 = vsel %vm287_vm10, %v3004_v61, 0.0 }
 0xe29   :  { %v3022_v51 = vsel %vm287_vm10, %v3002_v6, 0.0 }
 0xe2a   :  { %3023 = vadd.xlane.f32.xlu0 %v3022_v51 }
 0xe2c   :  { %3026 = vadd.xlane.f32.xlu1 %v3025_v48 }
 0xe2e   :  { %3029 = vadd.xlane.f32.xlu0 %v3028_v28 }
 0xe79   :  { %v3009_v13 = vpop.xlane.xlu1 %3008 }
 0xe7a   :  { %v3031_v8 = vmul.f32 0.03125, %v3009_v13  ;;  %v6048_v13 = vld [vmem:[%s8933_s17] ss:$0 sm:$0xff] }
 0xe7b   :  { %v3012_v31 = vpop.xlane.xlu0 %3011 }
 0xe7c   :  { %v8155_v60 = vsub.f32 %v2997_v50, %v3031_v8  ;;  %v3032_v14 = vmul.f32 0.03125, %v3012_v31 }
 0xe7d   :  { %v3015_v54 = vpop.xlane.xlu1 %3014 }
 0xe7e   :  { %v8157_v25 = vsub.f32 %v2998_v55, %v3032_v14  ;;  %v3033_v0 = vmul.f32 0.03125, %v3015_v54  ;;  %v3047_v43 = vmul.f32 %v8155_v60, %v8155_v60 }
 0xe7f   :  { %v3018_v29 = vpop.xlane.xlu0 %3017 }
 0xe80   :  { %v8161_v32 = vsub.f32 %v2999_v27, %v3033_v0  ;;  %v3034_v42 = vmul.f32 0.03125, %v3018_v29  ;;  %v3055_v63 = vsel %vm287_vm10, %v3047_v43, 0.0  ;;  %v3048_v16 = vmul.f32 %v8157_v25, %v8157_v25  ;;  %v6049_v43 = vld [vmem:[%s8934_s18] ss:$0 sm:$0xff] }
 0xe81   :  { %3056 = vadd.xlane.f32.xlu1 %v3055_v63 }
 0xe82   :  { %v8166_v19 = vsub.f32 %v3000_v40, %v3034_v42  ;;  %v3058_v7 = vsel %vm287_vm10, %v3048_v16, 0.0  ;;  %v3049_v24 = vmul.f32 %v8161_v32, %v8161_v32 }
 0xe83   :  { %3059 = vadd.xlane.f32.xlu0 %v3058_v7 }
 0xe84   :  { %v3061_v26 = vsel %vm287_vm10, %v3049_v24, 0.0  ;;  %v3050_v9 = vmul.f32 %v8166_v19, %v8166_v19 }
 0xe85   :  { %3062 = vadd.xlane.f32.xlu1 %v3061_v26 }
 0xe86   :  { %v3064_v57 = vsel %vm287_vm10, %v3050_v9, 0.0 }
 0xe87   :  { %3065 = vadd.xlane.f32.xlu0 %v3064_v57 }
 0xeb5   :  { %v3021_v11 = vpop.xlane.xlu1 %3020 }
 0xeb6   :  { %v3035_v33 = vmul.f32 0.03125, %v3021_v11 }
 0xeb7   :  { %v3024_v39 = vpop.xlane.xlu0 %3023 }
 0xeb8   :  { %v8182_v53 = vsub.f32 %v3001_v58, %v3035_v33  ;;  %v3036_v23 = vmul.f32 0.03125, %v3024_v39 }
 0xeb9   :  { %v3027_v46 = vpop.xlane.xlu1 %3026 }
 0xeba   :  { %v8184_v21 = vsub.f32 %v3002_v6, %v3036_v23  ;;  %v3037_v50 = vmul.f32 0.03125, %v3027_v46  ;;  %v3051_v37 = vmul.f32 %v8182_v53, %v8182_v53 }
 0xebb   :  { %v3030_v44 = vpop.xlane.xlu0 %3029 }
 0xebc   :  { %v8188_v27 = vsub.f32 %v3003_v62, %v3037_v50  ;;  %v3038_v55 = vmul.f32 0.03125, %v3030_v44  ;;  %v3067_v41 = vsel %vm287_vm10, %v3051_v37, 0.0  ;;  %v3052_v40 = vmul.f32 %v8184_v21, %v8184_v21 }
 0xebd   :  { %3068 = vadd.xlane.f32.xlu1 %v3067_v41 }
 0xebe   :  { %v8193_v30 = vsub.f32 %v3004_v61, %v3038_v55  ;;  %v3070_v56 = vsel %vm287_vm10, %v3052_v40, 0.0  ;;  %v3053_v36 = vmul.f32 %v8188_v27, %v8188_v27 }
 0xebf   :  { %3071 = vadd.xlane.f32.xlu0 %v3070_v56 }
 0xec0   :  { %v3073_v47 = vsel %vm287_vm10, %v3053_v36, 0.0  ;;  %v3054_v10 = vmul.f32 %v8193_v30, %v8193_v30 }
 0xec1   :  { %3074 = vadd.xlane.f32.xlu1 %v3073_v47 }
 0xec2   :  { %v3076_v5 = vsel %vm287_vm10, %v3054_v10, 0.0 }
 0xec3   :  { %3077 = vadd.xlane.f32.xlu0 %v3076_v5 }
 0xf0e   :  { %v3057_v4 = vpop.xlane.xlu1 %3056 }
 0xf0f   :  { %v3079_v18 = vmul.f32 0.03125, %v3057_v4 }
 0xf10   :  { %v3060_v34 = vpop.xlane.xlu0 %3059 }
 0xf11   :  { %v3087_v1 = vadd.f32 1e-12, %v3079_v18  ;;  %v3080_v58 = vmul.f32 0.03125, %v3060_v34 }
 0xf12   :  { %v3063_v35 = vpop.xlane.xlu1 %3062 }
 0xf13   :  { %7072 = vrsqrt.f32 %v3087_v1  ;;  %v3088_v62 = vadd.f32 1e-12, %v3080_v58  ;;  %v3081_v6 = vmul.f32 0.03125, %v3063_v35 }
 0xf14   :  { %v3066_v12 = vpop.xlane.xlu0 %3065 }
 0xf15   :  { %7074 = vrsqrt.f32 %v3088_v62  ;;  %v3089_v61 = vadd.f32 1e-12, %v3081_v6  ;;  %v3082_v51 = vmul.f32 0.03125, %v3066_v12 }
 0xf17   :  { %7076 = vrsqrt.f32 %v3089_v61  ;;  %v3090_v48 = vadd.f32 1e-12, %v3082_v51 }
 0xf19   :  { %7078 = vrsqrt.f32 %v3090_v48 }
 0xf1d   :  { %v7073_v28 = vpop.eup %7072 }
 0xf1e   :  { %v3103_v8 = vmul.f32 %v7073_v28, %v8155_v60 }
 0xf1f   :  { %v7075_v31 = vpop.eup %7074 }
 0xf20   :  { %v3104_v14 = vmul.f32 %v7075_v31, %v8157_v25  ;;  %v3117_v54 = vmul.f32 %v6048_v13, %v3103_v8 }
 0xf21   :  { %v7077_v0 = vpop.eup %7076 }
 0xf22   :  { %v3105_v29 = vmul.f32 %v7077_v0, %v8161_v32  ;;  %v3118_v42 = vmul.f32 %v6048_v13, %v3104_v14  ;;  %v8212_v24 = vadd.f32 %v6049_v43, %v3117_v54 }
 0xf23   :  { %v7079_v63 = vpop.eup %7078 }
 0xf24   :  { %v3119_v16 = vmul.f32 %v6048_v13, %v3105_v29  ;;  %v3106_v7 = vmul.f32 %v7079_v63, %v8166_v19  ;;  %v8214_v26 = vadd.f32 %v6049_v43, %v3118_v42 }
 0xf26   :  { %v3120_v60 = vmul.f32 %v6048_v13, %v3106_v7  ;;  %v3144_v25 = vpack.c.bf16 %v8214_v26, %v8212_v24  ;;  %v8218_v9 = vadd.f32 %v6049_v43, %v3119_v16 }
 0xf28   :  { %v8220_v57 = vadd.f32 %v6049_v43, %v3120_v60  ;;  %6620 = vmatprep.mubr.msk.bf16.mxu0 %vm287_vm10, %v3144_v25 }
 0xf2a   :  { %v3145_v32 = vpack.c.bf16 %v8220_v57, %v8218_v9 }
 0xf2c   :  { %6621 = vmatmul.mubr.msk.bf16.vlgmr.msra.gmra.mrb[76].mxu0 %vm287_vm10, %v3145_v32 }
 0xf4a   :  { %v3069_v19 = vpop.xlane.xlu1 %3068 }
 0xf4b   :  { %v3083_v15 = vmul.f32 0.03125, %v3069_v19 }
 0xf4c   :  { %v3072_v49 = vpop.xlane.xlu0 %3071 }
 0xf4d   :  { %v3091_v11 = vadd.f32 1e-12, %v3083_v15  ;;  %v3084_v33 = vmul.f32 0.03125, %v3072_v49 }
 0xf4e   :  { %v3075_v39 = vpop.xlane.xlu1 %3074 }
 0xf4f   :  { %7080 = vrsqrt.f32 %v3091_v11  ;;  %v3092_v23 = vadd.f32 1e-12, %v3084_v33  ;;  %v3085_v46 = vmul.f32 0.03125, %v3075_v39 }
 0xf50   :  { %v3078_v50 = vpop.xlane.xlu0 %3077 }
 0xf51   :  { %7082 = vrsqrt.f32 %v3092_v23  ;;  %v3093_v37 = vadd.f32 1e-12, %v3085_v46  ;;  %v3086_v44 = vmul.f32 0.03125, %v3078_v50 }
 0xf53   :  { %7084 = vrsqrt.f32 %v3093_v37  ;;  %v3094_v55 = vadd.f32 1e-12, %v3086_v44 }
 0xf55   :  { %7086 = vrsqrt.f32 %v3094_v55 }
 0xf59   :  { %v7081_v41 = vpop.eup %7080 }
 0xf5a   :  { %v3107_v40 = vmul.f32 %v7081_v41, %v8182_v53 }
 0xf5b   :  { %v7083_v56 = vpop.eup %7082 }
 0xf5c   :  { %v3108_v36 = vmul.f32 %v7083_v56, %v8184_v21  ;;  %v3121_v47 = vmul.f32 %v6048_v13, %v3107_v40 }
 0xf5d   :  { %v7085_v10 = vpop.eup %7084 }
 0xf5e   :  { %v3122_v5 = vmul.f32 %v6048_v13, %v3108_v36  ;;  %v3109_v4 = vmul.f32 %v7085_v10, %v8188_v27  ;;  %v8229_v34 = vadd.f32 %v6049_v43, %v3121_v47 }
 0xf5f   :  { %v7087_v18 = vpop.eup %7086 }
 0xf60   :  { %v8231_v1 = vadd.f32 %v6049_v43, %v3122_v5  ;;  %v3110_v58 = vmul.f32 %v7087_v18, %v8193_v30  ;;  %v3123_v35 = vmul.f32 %v6048_v13, %v3109_v4  ;;  %v6055_v30 = vld [vmem:[%s8959_s3 + $0x1] ss:$0 sm:$0xff] }
 0xf62   :  { %v3146_v62 = vpack.c.bf16 %v8231_v1, %v8229_v34  ;;  %v3124_v53 = vmul.f32 %v6048_v13, %v3110_v58  ;;  %v8236_v6 = vadd.f32 %v6049_v43, %v3123_v35 }
 0xf64   :  { %6624 = vmatprep.mubr.msk.bf16.mxu0 %vm287_vm10, %v3146_v62  ;;  %v8239_v21 = vadd.f32 %v6049_v43, %v3124_v53 }
 0xf66   :  { %v3147_v27 = vpack.c.bf16 %v8239_v21, %v8236_v6 }
 0xf68   :  { %6625 = vmatmul.mubr.msk.bf16.gmra.mrb[80].mxu0 %vm287_vm10, %v3147_v27 }
 0xf69   :  { %6636 = vmatprep.mubr.msk.bf16.mxu0 %vm7208_vm11, %v7207_v17 }
 0xfff   :  { %v6622_v12 = vpop.f32.mrb[76].mxu0 }
0x1000   :  { %v3214_v61 = vpop.f32.mrb[77].mxu0  ;;  %v3223_v13 = vadd.f32 %v6622_v12, %v6055_v30 }
0x1001   :  { %v3215_v51 = vadd.f32 %v6055_v30, %v3214_v61  ;;  %v6623_v48 = vpop.f32.mrb[78].mxu0 }
0x1002   :  { %v3217_v28 = vpop.f32.mrb[79].mxu0  ;;  %v8255_v54 = vpack.c.bf16 %v3223_v13, %v3223_v13  ;;  %v3226_v0 = vadd.f32 %v6623_v48, %v6055_v30 }
0x1003   :  { %v8249_v8 = vpack.c.bf16 %v3215_v51, %v3215_v51  ;;  %v3218_v31 = vadd.f32 %v6055_v30, %v3217_v28 }
0x1004   :  { %v8261_v43 = vpack.c.bf16 %v3226_v0, %v3226_v0 }
0x1005   :  { %v8251_v14 = vpack.c.bf16 %v3218_v31, %v3218_v31  ;;  %3254 = vrot.lane.b32.xlu1 %v8249_v8, %s7209_s6 }
0x1007   :  { %3303 = vrot.lane.b32.xlu0 %v8251_v14, %s7209_s6 }
0x1009   :  { %3352 = vrot.lane.b32.xlu1 %v8255_v54, %s7209_s6 }
0x100d   :  { %3401 = vrot.lane.b32.xlu1 %v8261_v43, %s7209_s6 }
0x103b   :  { %v6626_v29 = vpop.f32.mrb[80].mxu0 }
0x103c   :  { %v3239_v42 = vadd.f32 %v6626_v29, %v6055_v30  ;;  %v3230_v63 = vpop.f32.mrb[81].mxu0 }
0x103d   :  { %v3231_v16 = vadd.f32 %v6055_v30, %v3230_v63  ;;  %v6627_v7 = vpop.f32.mrb[82].mxu0 }
0x103e   :  { %v3242_v60 = vadd.f32 %v6627_v7, %v6055_v30  ;;  %v3233_v25 = vpop.f32.mrb[83].mxu0  ;;  %v8271_v49 = vpack.c.bf16 %v3239_v42, %v3239_v42 }
0x103f   :  { %v8265_v32 = vpack.c.bf16 %v3231_v16, %v3231_v16  ;;  %v3234_v19 = vadd.f32 %v6055_v30, %v3233_v25 }
0x1040   :  { %v8275_v11 = vpack.c.bf16 %v3242_v60, %v3242_v60 }
0x1041   :  { %v8267_v15 = vpack.c.bf16 %v3234_v19, %v3234_v19  ;;  %3450 = vrot.lane.b32.xlu0 %v8265_v32, %s7209_s6 }
0x1043   :  { %3499 = vrot.lane.b32.xlu1 %v8267_v15, %s7209_s6 }
0x1045   :  { %3548 = vrot.lane.b32.xlu0 %v8271_v49, %s7209_s6 }
0x1047   :  { %3597 = vrot.lane.b32.xlu1 %v8275_v11, %s7209_s6 }
0x1049   :  { %3805 = vrot.lane.b32.xlu0 %v8251_v14, %s7210_s27 }
0x104b   :  { %3757 = vrot.lane.b32.xlu1 %v8249_v8, %s7210_s27 }
0x104f   :  { %3853 = vrot.lane.b32.xlu1 %v8255_v54, %s7210_s27 }
0x1053   :  { %3901 = vrot.lane.b32.xlu1 %v8261_v43, %s7210_s27 }
0x1077   :  { %v3255_v33 = vpop.permute.xlu1 %3254 }
0x1078   :  { %v3260_v39 = vsel %vm630_vm12, %v3255_v33, 0 }
0x1079   :  { %6629 = vmatpush3.bf16.xpose.msra.mxu1 %v3260_v39  ;;  %v3304_v23 = vpop.permute.xlu0 %3303 }
0x107a   :  { %v3309_v46 = vsel %vm630_vm12, %v3304_v23, 0  ;;  %6640 = vmatprep.subr.bf16.mxu1 %v7207_v17 }
0x107b   :  { %v3353_v50 = vpop.permute.xlu1 %3352  ;;  %6635 = vmatpush3.bf16.xpose.msra.mxu0 %v3309_v46 }
0x107c   :  { %6646 = vmatprep.subr.bf16.mxu0 %v7207_v17  ;;  %v3358_v44 = vsel %vm630_vm12, %v3353_v50, 0 }
0x107f   :  { %v3402_v37 = vpop.permute.xlu1 %3401 }
0x1080   :  { %6631 = vmatmul.mubr.msk.bf16.vlgmr.msra.gmra.mrb[92].mxu1 %vm630_vm12, %v8249_v8  ;;  %v3407_v55 = vsel %vm630_vm12, %v3402_v37, 0 }
0x1081   :  { %6641 = vmatpush3.bf16.xpose.msra.mxu1 %v3358_v44  ;;  %6642 = vmatprep.mubr.msk.bf16.mxu1 %vm7208_vm11, %v7207_v17 }
0x1082   :  { %6637 = vmatmul.mubr.msk.bf16.vlgmr.msra.gmra.mrb[84].mxu0 %vm630_vm12, %v8251_v14  ;;  %6652 = vmatprep.subr.bf16.mxu1 %v7207_v17 }
0x1083   :  { %6647 = vmatpush3.bf16.xpose.msra.mxu0 %v3407_v55  ;;  %6648 = vmatprep.mubr.msk.bf16.mxu0 %vm7208_vm11, %v7207_v17 }
0x1084   :  { %6658 = vmatprep.subr.bf16.mxu0 %v7207_v17 }
0x1088   :  { %6643 = vmatmul.mubr.msk.bf16.vlgmr.msra.gmra.mrb[96].mxu1 %vm630_vm12, %v8255_v54 }
0x1089   :  { %6654 = vmatprep.mubr.msk.bf16.mxu1 %vm7208_vm11, %v7207_v17 }
0x108a   :  { %6649 = vmatmul.mubr.msk.bf16.vlgmr.msra.gmra.mrb[88].mxu0 %vm630_vm12, %v8261_v43 }
0x108b   :  { %6660 = vmatprep.mubr.msk.bf16.mxu0 %vm7208_vm11, %v7207_v17 }
0x10b3   :  { %v3451_v41 = vpop.permute.xlu0 %3450 }
0x10b4   :  { %v3456_v40 = vsel %vm630_vm12, %v3451_v41, 0 }
0x10b5   :  { %v3500_v56 = vpop.permute.xlu1 %3499  ;;  %6653 = vmatpush3.bf16.xpose.msra.mxu1 %v3456_v40 }
0x10b6   :  { %v3505_v36 = vsel %vm630_vm12, %v3500_v56, 0  ;;  %6664 = vmatprep.subr.bf16.mxu1 %v7207_v17 }
0x10b7   :  { %6659 = vmatpush3.bf16.xpose.msra.mxu0 %v3505_v36  ;;  %v3549_v47 = vpop.permute.xlu0 %3548 }
0x10b8   :  { %6670 = vmatprep.subr.bf16.mxu0 %v7207_v17  ;;  %v3554_v5 = vsel %vm630_vm12, %v3549_v47, 0 }
0x10b9   :  { %v3598_v10 = vpop.permute.xlu1 %3597 }
0x10ba   :  { %v3603_v4 = vsel %vm630_vm12, %v3598_v10, 0 }
0x10bb   :  { %v3806_v58 = vpop.permute.xlu0 %3805 }
0x10bc   :  { %6655 = vmatmul.mubr.msk.bf16.vlgmr.msra.gmra.mrb[100].mxu1 %vm630_vm12, %v8265_v32  ;;  %v3811_v62 = vsel %vm1138_vm13, %v3806_v58, 0 }
0x10bd   :  { %6665 = vmatpush3.bf16.xpose.msra.mxu1 %v3554_v5  ;;  %6666 = vmatprep.mubr.msk.bf16.mxu1 %vm7208_vm11, %v7207_v17  ;;  %v3758_v18 = vpop.permute.xlu1 %3757 }
0x10be   :  { %6661 = vmatmul.mubr.msk.bf16.vlgmr.msra.gmra.mrb[92].mxu0 %vm630_vm12, %v8267_v15  ;;  %6676 = vmatprep.subr.bf16.mxu1 %v7207_v17  ;;  %v3763_v35 = vsel %vm1138_vm13, %v3758_v18, 0 }
0x10bf   :  { %6671 = vmatpush3.bf16.xpose.msra.mxu0 %v3603_v4  ;;  %6672 = vmatprep.mubr.msk.bf16.mxu0 %vm7208_vm11, %v7207_v17 }
0x10c0   :  { %6682 = vmatprep.subr.bf16.mxu0 %v7207_v17 }
0x10c4   :  { %6667 = vmatmul.mubr.msk.bf16.vlgmr.msra.gmra.mrb[104].mxu1 %vm630_vm12, %v8271_v49 }
0x10c5   :  { %6677 = vmatpush3.bf16.msra.mxu1 %v3763_v35  ;;  %6678 = vmatprep.mubr.msk.bf16.mxu1 %vm7208_vm11, %v7207_v17 }
0x10c6   :  { %6673 = vmatmul.mubr.msk.bf16.vlgmr.msra.gmra.mrb[96].mxu0 %vm630_vm12, %v8275_v11  ;;  %6688 = vmatprep.subr.bf16.mxu1 %v7207_v17 }
0x10c7   :  { %6683 = vmatpush3.bf16.msra.mxu0 %v3811_v62  ;;  %6684 = vmatprep.mubr.msk.bf16.mxu0 %vm7208_vm11, %v7207_v17 }
0x10c8   :  { %6694 = vmatprep.subr.bf16.mxu0 %v7207_v17 }
0x1153   :  { %v3296_v53 = vpop.f32.mrb[92].mxu1 }
0x1154   :  { %v3645_v27 = vmul.f32 0.25, %v3296_v53  ;;  %v6632_v30 = vpop.f32.mrb[93].mxu1 }
0x1155   :  { %v3299_v12 = vpop.f32.mrb[94].mxu1  ;;  %v3345_v61 = vpop.f32.mrb[84].mxu0 }
0x1156   :  { %v8342_v51 = vadd.f32 %v3645_v27, %v7611_v2  ;;  %v3646_v48 = vmul.f32 0.25, %v3345_v61  ;;  %v6633_v28 = vpop.f32.mrb[95].mxu1  ;;  %v6638_v13 = vpop.f32.mrb[85].mxu0 }
0x1157   :  { %v3348_v31 = vpop.f32.mrb[86].mxu0 }
0x1158   :  { %v8345_v0 = vadd.f32 %v3646_v48, %v7622_v22  ;;  %v6639_v29 = vpop.f32.mrb[87].mxu0  ;;  %v3661_v42 = vsel %vm1036_vm14, %v8342_v51, -inf }
0x1159   :  { %3662 = vmax.xlane.f32.xlu0 %v3661_v42 }
0x115a   :  { %v3664_v63 = vsel %vm1036_vm14, %v8345_v0, -inf }
0x115b   :  { %v3394_v16 = vpop.f32.mrb[96].mxu1  ;;  %3665 = vmax.xlane.f32.xlu1 %v3664_v63 }
0x115c   :  { %v3647_v7 = vmul.f32 0.25, %v3394_v16  ;;  %v6644_v60 = vpop.f32.mrb[97].mxu1 }
0x115d   :  { %v3397_v25 = vpop.f32.mrb[98].mxu1  ;;  %v3443_v19 = vpop.f32.mrb[88].mxu0 }
0x115e   :  { %v3655_v33 = vadd.f32 %v3647_v7, %v7638_v52  ;;  %v3648_v39 = vmul.f32 0.25, %v3443_v19  ;;  %v6645_v23 = vpop.f32.mrb[99].mxu1  ;;  %v6650_v46 = vpop.f32.mrb[89].mxu0 }
0x115f   :  { %v3446_v50 = vpop.f32.mrb[90].mxu0 }
0x1160   :  { %v3656_v37 = vadd.f32 %v3648_v39, %v7619_v20  ;;  %v6651_v44 = vpop.f32.mrb[91].mxu0  ;;  %v3667_v55 = vsel %vm1036_vm14, %v3655_v33, -inf  ;;  %v8370_v39 = vpop.permute.xlu1 %3853 }
0x1161   :  { %3668 = vmax.xlane.f32.xlu0 %v3667_v55 }
0x1162   :  { %v3670_v41 = vsel %vm1036_vm14, %v3656_v37, -inf }
0x1164   :  { %v8372_v23 = vpop.permute.xlu1 %3901 }
0x1165   :  { %3671 = vmax.xlane.f32.xlu0 %v3670_v41 }
0x118f   :  { %v3492_v40 = vpop.f32.mrb[100].mxu1 }
0x1190   :  { %v3649_v56 = vmul.f32 0.25, %v3492_v40  ;;  %v6656_v36 = vpop.f32.mrb[101].mxu1 }
0x1191   :  { %v3495_v47 = vpop.f32.mrb[102].mxu1  ;;  %v3541_v10 = vpop.f32.mrb[92].mxu0 }
0x1192   :  { %v3657_v5 = vadd.f32 %v3649_v56, %v7658_v38  ;;  %v3650_v4 = vmul.f32 0.25, %v3541_v10  ;;  %v6657_v18 = vpop.f32.mrb[103].mxu1  ;;  %v6662_v58 = vpop.f32.mrb[93].mxu0 }
0x1193   :  { %v3544_v35 = vpop.f32.mrb[94].mxu0 }
0x1194   :  { %v3658_v62 = vadd.f32 %v3650_v4, %v7635_v45  ;;  %v6663_v53 = vpop.f32.mrb[95].mxu0  ;;  %v3673_v27 = vsel %vm1036_vm14, %v3657_v5, -inf }
0x1195   :  { %3674 = vmax.xlane.f32.xlu1 %v3673_v27 }
0x1196   :  { %v3676_v30 = vsel %vm1036_vm14, %v3658_v62, -inf }
0x1197   :  { %3677 = vmax.xlane.f32.xlu0 %v3676_v30  ;;  %v3590_v12 = vpop.f32.mrb[104].mxu1 }
0x1198   :  { %v3651_v61 = vmul.f32 0.25, %v3590_v12  ;;  %v6668_v48 = vpop.f32.mrb[105].mxu1 }
0x1199   :  { %v3593_v28 = vpop.f32.mrb[106].mxu1  ;;  %v3639_v13 = vpop.f32.mrb[96].mxu0 }
0x119a   :  { %v8360_v31 = vadd.f32 %v3651_v61, %v7608_v59  ;;  %v3652_v29 = vmul.f32 0.25, %v3639_v13  ;;  %v6669_v42 = vpop.f32.mrb[107].mxu1  ;;  %v6674_v63 = vpop.f32.mrb[97].mxu0 }
0x119b   :  { %v3642_v16 = vpop.f32.mrb[98].mxu0 }
0x119c   :  { %v3660_v7 = vadd.f32 %v3652_v29, %v7646_v3  ;;  %v6675_v60 = vpop.f32.mrb[99].mxu0  ;;  %v3679_v25 = vsel %vm1036_vm14, %v8360_v31, -inf }
0x119d   :  { %3680 = vmax.xlane.f32.xlu1 %v3679_v25 }
0x119e   :  { %v3682_v19 = vsel %vm1036_vm14, %v3660_v7, -inf }
0x119f   :  { %3683 = vmax.xlane.f32.xlu0 %v3682_v19 }
0x11ae   :  { %3997 = vrot.lane.b32.xlu1 %v8267_v15, %s7210_s27 }
0x11b5   :  { %3949 = vrot.lane.b32.xlu0 %v8265_v32, %s7210_s27 }
0x11e6   :  { %v3663_v46 = vpop.xlane.xlu0 %3662 }
0x11e7   :  { %v3685_v50 = vsub.f32 %v8342_v51, %v3663_v46 }
0x11e8   :  { %v3666_v44 = vpop.xlane.xlu1 %3665 }
0x11e9   :  { %v3693_v55 = vmul.f32 1.442695, %v3685_v50  ;;  %v3686_v41 = vsub.f32 %v8345_v0, %v3666_v44 }
0x11eb   :  { %7088 = vpow2.f32 %v3693_v55  ;;  %v3695_v40 = vmul.f32 1.442695, %v3686_v41 }
0x11ed   :  { %7090 = vpow2.f32 %v3695_v40 }
0x11ee   :  { %v3669_v56 = vpop.xlane.xlu0 %3668 }
0x11ef   :  { %v3687_v36 = vsub.f32 %v3655_v33, %v3669_v56 }
0x11f1   :  { %v3697_v47 = vmul.f32 1.442695, %v3687_v36 }
0x11f2   :  { %v3672_v10 = vpop.xlane.xlu0 %3671 }
0x11f3   :  { %7092 = vpow2.f32 %v3697_v47  ;;  %v3688_v4 = vsub.f32 %v3656_v37, %v3672_v10 }
0x11f5   :  { %v8376_v18 = vpop.eup %7088  ;;  %v3699_v58 = vmul.f32 1.442695, %v3688_v4 }
0x11f6   :  { %v3709_v35 = vsel %vm1036_vm14, %v8376_v18, 0.0 }
0x11f7   :  { %v8380_v51 = vpop.eup %7090  ;;  %7094 = vpow2.f32 %v3699_v58  ;;  %3710 = vadd.xlane.f32.xlu1 %v3709_v35 }
0x11f8   :  { %v3712_v0 = vsel %vm1036_vm14, %v8380_v51, 0.0 }
0x11f9   :  { %3713 = vadd.xlane.f32.xlu0 %v3712_v0 }
0x11fd   :  { %v8384_v53 = vpop.eup %7092 }
0x11fe   :  { %v3715_v33 = vsel %vm1036_vm14, %v8384_v53, 0.0 }
0x11ff   :  { %3716 = vadd.xlane.f32.xlu1 %v3715_v33  ;;  %v3859_v33 = vsel %vm1138_vm13, %v8370_v39, 0 }
0x1201   :  { %v8388_v37 = vpop.eup %7094 }
0x1202   :  { %v3718_v27 = vsel %vm1036_vm14, %v8388_v37, 0.0 }
0x1203   :  { %3719 = vadd.xlane.f32.xlu0 %v3718_v27  ;;  %v3907_v27 = vsel %vm1138_vm13, %v8372_v23, 0 }
0x1222   :  { %v3675_v30 = vpop.xlane.xlu1 %3674 }
0x1223   :  { %v3689_v12 = vsub.f32 %v3657_v5, %v3675_v30 }
0x1224   :  { %v3678_v61 = vpop.xlane.xlu0 %3677 }
0x1225   :  { %v3701_v48 = vmul.f32 1.442695, %v3689_v12  ;;  %v3690_v28 = vsub.f32 %v3658_v62, %v3678_v61 }
0x1227   :  { %7096 = vpow2.f32 %v3701_v48  ;;  %v3703_v13 = vmul.f32 1.442695, %v3690_v28 }
0x1229   :  { %7098 = vpow2.f32 %v3703_v13 }
0x122a   :  { %v3681_v5 = vpop.xlane.xlu1 %3680 }
0x122b   :  { %v3691_v60 = vsub.f32 %v8360_v31, %v3681_v5 }
0x122c   :  { %v3684_v62 = vpop.xlane.xlu0 %3683 }
0x122d   :  { %v3692_v25 = vsub.f32 %v3660_v7, %v3684_v62  ;;  %v3705_v19 = vmul.f32 1.442695, %v3691_v60 }
0x122e   :  { %v3998_v31 = vpop.permute.xlu1 %3997 }
0x122f   :  { %v3707_v46 = vmul.f32 1.442695, %v3692_v25  ;;  %7100 = vpow2.f32 %v3705_v19 }
0x1230   :  { %v3950_v7 = vpop.permute.xlu0 %3949 }
0x1231   :  { %v8392_v29 = vpop.eup %7096  ;;  %7102 = vpow2.f32 %v3707_v46  ;;  %v3955_v12 = vsel %vm1138_vm13, %v3950_v7, 0 }
0x1232   :  { %v3721_v42 = vsel %vm1036_vm14, %v8392_v29, 0.0 }
0x1233   :  { %v8396_v63 = vpop.eup %7098  ;;  %3722 = vadd.xlane.f32.xlu1 %v3721_v42 }
0x1234   :  { %v3724_v16 = vsel %vm1036_vm14, %v8396_v63, 0.0 }
0x1235   :  { %3725 = vadd.xlane.f32.xlu0 %v3724_v16 }
0x1239   :  { %v8405_v50 = vpop.eup %7100 }
0x123a   :  { %v3727_v55 = vsel %vm1036_vm14, %v8405_v50, 0.0 }
0x123b   :  { %v8407_v44 = vpop.eup %7102 }
0x123c   :  { %v3730_v41 = vsel %vm1036_vm14, %v8407_v44, 0.0 }
0x1244   :  { %4093 = vrot.lane.b32.xlu1 %v8275_v11, %s7210_s27 }
0x124b   :  { %4045 = vrot.lane.b32.xlu0 %v8271_v49, %s7210_s27 }
0x1268   :  { %3728 = vadd.xlane.f32.xlu1 %v3727_v55 }
0x126a   :  { %3731 = vadd.xlane.f32.xlu0 %v3730_v41 }
0x1279   :  { %4193 = vrot.lane.b32.xlu1 %v8251_v14, %s7212_s1 }
0x127d   :  { %4191 = vrot.lane.b32.xlu1 %v8251_v14, %s7213_s0 }
0x1280   :  { %4143 = vrot.lane.b32.xlu0 %v8249_v8, %s7212_s1 }
0x1281   :  { %4293 = vrot.lane.b32.xlu1 %v8261_v43, %s7212_s1 }
0x1284   :  { %4141 = vrot.lane.b32.xlu0 %v8249_v8, %s7213_s0  ;;  %v3711_v40 = vpop.xlane.xlu1 %3710 }
0x1285   :  { %7104 = vrcp.f32 %v3711_v40  ;;  %4291 = vrot.lane.b32.xlu1 %v8261_v43, %s7213_s0 }
0x1286   :  { %v3714_v56 = vpop.xlane.xlu0 %3713 }
0x1287   :  { %7106 = vrcp.f32 %v3714_v56 }
0x1288   :  { %4243 = vrot.lane.b32.xlu0 %v8255_v54, %s7212_s1 }
0x1289   :  { %4393 = vrot.lane.b32.xlu1 %v8267_v15, %s7212_s1 }
0x128c   :  { %4241 = vrot.lane.b32.xlu0 %v8255_v54, %s7213_s0  ;;  %v3717_v36 = vpop.xlane.xlu1 %3716 }
0x128d   :  { %4391 = vrot.lane.b32.xlu1 %v8267_v15, %s7213_s0  ;;  %7108 = vrcp.f32 %v3717_v36 }
0x128f   :  { %v7105_v47 = vpop.eup %7104 }
0x1290   :  { %v3741_v10 = vmul.f32 %v7105_v47, %v8376_v18  ;;  %4343 = vrot.lane.b32.xlu0 %v8265_v32, %s7212_s1  ;;  %v3720_v4 = vpop.xlane.xlu0 %3719 }
0x1291   :  { %v7107_v58 = vpop.eup %7106  ;;  %4493 = vrot.lane.b32.xlu1 %v8275_v11, %s7212_s1  ;;  %7110 = vrcp.f32 %v3720_v4 }
0x1292   :  { %v3742_v35 = vmul.f32 %v7107_v58, %v8380_v51  ;;  %v3749_v0 = vpack.c.bf16 %v3741_v10, %v3741_v10 }
0x1294   :  { %4341 = vrot.lane.b32.xlu0 %v8265_v32, %s7213_s0  ;;  %6679 = vmatmul.mubr.msk.bf16.vlgmr.msra.gmra.mrb[108].mxu1 %vm1036_vm14, %v3749_v0  ;;  %v3750_v18 = vpack.c.bf16 %v3742_v35, %v3742_v35 }
0x1295   :  { %6689 = vmatpush3.bf16.msra.mxu1 %v3859_v33  ;;  %4491 = vrot.lane.b32.xlu1 %v8275_v11, %s7213_s0 }
0x1296   :  { %6685 = vmatmul.mubr.msk.bf16.vlgmr.msra.gmra.mrb[100].mxu0 %vm1036_vm14, %v3750_v18  ;;  %6690 = vmatprep.mubr.msk.bf16.mxu1 %vm7208_vm11, %v7207_v17 }
0x1297   :  { %v7109_v51 = vpop.eup %7108  ;;  %6695 = vmatpush3.bf16.msra.mxu0 %v3907_v27  ;;  %6700 = vmatprep.subr.bf16.mxu1 %v7207_v17 }
0x1298   :  { %v3743_v39 = vmul.f32 %v7109_v51, %v8384_v53  ;;  %4443 = vrot.lane.b32.xlu0 %v8271_v49, %s7212_s1  ;;  %6696 = vmatprep.mubr.msk.bf16.mxu0 %vm7208_vm11, %v7207_v17 }
0x1299   :  { %4653 = vrot.lane.b32.xlu1 %v8249_v8, %s7214_s7  ;;  %6706 = vmatprep.subr.bf16.mxu0 %v7207_v17  ;;  %v4003_v8 = vsel %vm1138_vm13, %v3998_v31, 0 }
0x129a   :  { %v3751_v23 = vpack.c.bf16 %v3743_v39, %v3743_v39 }
0x129b   :  { %v7111_v30 = vpop.eup %7110 }
0x129c   :  { %v3744_v61 = vmul.f32 %v7111_v30, %v8388_v37  ;;  %4441 = vrot.lane.b32.xlu0 %v8271_v49, %s7213_s0  ;;  %6691 = vmatmul.mubr.msk.bf16.vlgmr.msra.gmra.mrb[112].mxu1 %vm1036_vm14, %v3751_v23 }
0x129d   :  { %6701 = vmatpush3.bf16.msra.mxu1 %v3955_v12  ;;  %6702 = vmatprep.mubr.msk.bf16.mxu1 %vm7208_vm11, %v7207_v17 }
0x129e   :  { %v3752_v53 = vpack.c.bf16 %v3744_v61, %v3744_v61  ;;  %6712 = vmatprep.subr.bf16.mxu1 %v7207_v17 }
0x12a0   :  { %6697 = vmatmul.mubr.msk.bf16.vlgmr.msra.gmra.mrb[104].mxu0 %vm1036_vm14, %v3752_v53 }
0x12a1   :  { %6707 = vmatpush3.bf16.msra.mxu0 %v4003_v8  ;;  %6708 = vmatprep.mubr.msk.bf16.mxu0 %vm7208_vm11, %v7207_v17 }
0x12a2   :  { %6718 = vmatprep.subr.bf16.mxu0 %v7207_v17 }
0x12c0   :  { %v3723_v37 = vpop.xlane.xlu1 %3722 }
0x12c1   :  { %7112 = vrcp.f32 %v3723_v37 }
0x12c2   :  { %v3726_v48 = vpop.xlane.xlu0 %3725 }
0x12c3   :  { %7114 = vrcp.f32 %v3726_v48 }
0x12c4   :  { %v4094_v60 = vpop.permute.xlu1 %4093 }
0x12c5   :  { %v4099_v46 = vsel %vm1138_vm13, %v4094_v60, 0 }
0x12c6   :  { %v4046_v16 = vpop.permute.xlu0 %4045 }
0x12c7   :  { %v4051_v25 = vsel %vm1138_vm13, %v4046_v16, 0 }
0x12cb   :  { %v7113_v28 = vpop.eup %7112 }
0x12cc   :  { %v3745_v13 = vmul.f32 %v7113_v28, %v8392_v29 }
0x12cd   :  { %v7115_v42 = vpop.eup %7114 }
0x12ce   :  { %v3746_v5 = vmul.f32 %v7115_v42, %v8396_v63  ;;  %v3753_v62 = vpack.c.bf16 %v3745_v13, %v3745_v13 }
0x12d0   :  { %6703 = vmatmul.mubr.msk.bf16.vlgmr.msra.gmra.mrb[116].mxu1 %vm1036_vm14, %v3753_v62  ;;  %v3754_v19 = vpack.c.bf16 %v3746_v5, %v3746_v5 }
0x12d1   :  { %6713 = vmatpush3.bf16.msra.mxu1 %v4051_v25  ;;  %6714 = vmatprep.mubr.msk.bf16.mxu1 %vm7208_vm11, %v7207_v17 }
0x12d2   :  { %6709 = vmatmul.mubr.msk.bf16.vlgmr.msra.gmra.mrb[108].mxu0 %vm1036_vm14, %v3754_v19  ;;  %6724 = vmatprep.subr.bf16.mxu1 %v7207_v17 }
0x12d3   :  { %6719 = vmatpush3.bf16.msra.mxu0 %v4099_v46  ;;  %6720 = vmatprep.mubr.msk.bf16.mxu0 %vm7208_vm11, %v7207_v17 }
0x12d4   :  { %6730 = vmatprep.subr.bf16.mxu0 %v7207_v17 }
0x12f5   :  { %v3729_v29 = vpop.xlane.xlu1 %3728 }
0x12f6   :  { %7116 = vrcp.f32 %v3729_v29 }
0x12f7   :  { %v3732_v63 = vpop.xlane.xlu0 %3731 }
0x12f8   :  { %7118 = vrcp.f32 %v3732_v63 }
0x12f9   :  { %v4194_v55 = vpop.permute.xlu1 %4193 }
0x12fa   :  { %v4199_v18 = vsel %vm630_vm12, %v4194_v55, 0 }
0x12fb   :  { %v4144_v41 = vpop.permute.xlu0 %4143 }
0x12fc   :  { %v4149_v35 = vsel %vm630_vm12, %v4144_v41, 0 }
0x12fd   :  { %v4192_v31 = vpop.permute.xlu1 %4191 }
0x12ff   :  { %v4142_v7 = vpop.permute.xlu0 %4141 }
0x1300   :  { %v7117_v40 = vpop.eup %7116 }
0x1301   :  { %v3747_v56 = vmul.f32 %v7117_v40, %v8405_v50  ;;  %v4294_v36 = vpop.permute.xlu1 %4293 }
0x1302   :  { %v7119_v47 = vpop.eup %7118  ;;  %v4299_v39 = vsel %vm630_vm12, %v4294_v36, 0 }
0x1303   :  { %v3748_v10 = vmul.f32 %v7119_v47, %v8407_v44  ;;  %v4244_v4 = vpop.permute.xlu0 %4243  ;;  %v3755_v58 = vpack.c.bf16 %v3747_v56, %v3747_v56 }
0x1304   :  { %v4249_v27 = vsel %vm630_vm12, %v4244_v4, 0 }
0x1305   :  { %v4292_v0 = vpop.permute.xlu1 %4291  ;;  %6715 = vmatmul.mubr.msk.bf16.vlgmr.msra.gmra.mrb[120].mxu1 %vm1036_vm14, %v3755_v58  ;;  %v3756_v33 = vpack.c.bf16 %v3748_v10, %v3748_v10 }
0x1306   :  { %6725 = vmatpush3.bf16.xpose.msra.mxu1 %v4149_v35  ;;  %6726 = vmatprep.mubr.msk.bf16.mxu1 %vm7208_vm11, %v7207_v17 }
0x1307   :  { %6721 = vmatmul.mubr.msk.bf16.vlgmr.msra.gmra.mrb[112].mxu0 %vm1036_vm14, %v3756_v33  ;;  %6736 = vmatprep.subr.bf16.mxu1 %v7207_v17  ;;  %v4242_v50 = vpop.permute.xlu0 %4241 }
0x1308   :  { %6731 = vmatpush3.bf16.xpose.msra.mxu0 %v4199_v18  ;;  %6732 = vmatprep.mubr.msk.bf16.mxu0 %vm7208_vm11, %v7207_v17 }
0x1309   :  { %6742 = vmatprep.subr.bf16.mxu0 %v7207_v17  ;;  %v4394_v44 = vpop.permute.xlu1 %4393 }
0x130a   :  { %v4399_v53 = vsel %vm630_vm12, %v4394_v44, 0 }
0x130b   :  { %v4344_v51 = vpop.permute.xlu0 %4343 }
0x130c   :  { %v4349_v12 = vsel %vm630_vm12, %v4344_v51, 0 }
0x130d   :  { %6727 = vmatmul.mubr.msk.bf16.vlgmr.msra.gmra.mrb[124].mxu1 %vm630_vm12, %v4142_v7  ;;  %v4392_v23 = vpop.permute.xlu1 %4391 }
0x130e   :  { %6737 = vmatpush3.bf16.xpose.msra.mxu1 %v4249_v27  ;;  %6738 = vmatprep.mubr.msk.bf16.mxu1 %vm7208_vm11, %v7207_v17 }
0x130f   :  { %6733 = vmatmul.mubr.msk.bf16.vlgmr.msra.gmra.mrb[116].mxu0 %vm630_vm12, %v4192_v31  ;;  %6748 = vmatprep.subr.bf16.mxu1 %v7207_v17  ;;  %v4342_v30 = vpop.permute.xlu0 %4341 }
0x1310   :  { %6743 = vmatpush3.bf16.xpose.msra.mxu0 %v4299_v39  ;;  %6744 = vmatprep.mubr.msk.bf16.mxu0 %vm7208_vm11, %v7207_v17 }
0x1311   :  { %6754 = vmatprep.subr.bf16.mxu0 %v7207_v17  ;;  %v4494_v61 = vpop.permute.xlu1 %4493 }
0x1312   :  { %v4499_v28 = vsel %vm630_vm12, %v4494_v61, 0 }
0x1313   :  { %v4444_v8 = vpop.permute.xlu0 %4443 }
0x1314   :  { %v4449_v48 = vsel %vm630_vm12, %v4444_v8, 0 }
0x1315   :  { %6739 = vmatmul.mubr.msk.bf16.vlgmr.msra.gmra.mrb[128].mxu1 %vm630_vm12, %v4242_v50  ;;  %v4492_v37 = vpop.permute.xlu1 %4491 }
0x1316   :  { %6749 = vmatpush3.bf16.xpose.msra.mxu1 %v4349_v12  ;;  %6750 = vmatprep.mubr.msk.bf16.mxu1 %vm7208_vm11, %v7207_v17 }
0x1317   :  { %6745 = vmatmul.mubr.msk.bf16.vlgmr.msra.gmra.mrb[120].mxu0 %vm630_vm12, %v4292_v0  ;;  %6760 = vmatprep.subr.bf16.mxu1 %v7207_v17  ;;  %v4442_v42 = vpop.permute.xlu0 %4441 }
0x1318   :  { %6755 = vmatpush3.bf16.xpose.msra.mxu0 %v4399_v53  ;;  %6756 = vmatprep.mubr.msk.bf16.mxu0 %vm7208_vm11, %v7207_v17 }
0x1319   :  { %6766 = vmatprep.subr.bf16.mxu0 %v7207_v17  ;;  %v4654_v13 = vpop.permute.xlu1 %4653 }
0x131a   :  { %v4659_v16 = vsel %vm1138_vm13, %v4654_v13, 0 }
0x131d   :  { %6751 = vmatmul.mubr.msk.bf16.vlgmr.msra.gmra.mrb[132].mxu1 %vm630_vm12, %v4342_v30 }
0x131e   :  { %6761 = vmatpush3.bf16.xpose.msra.mxu1 %v4449_v48  ;;  %6762 = vmatprep.mubr.msk.bf16.mxu1 %vm7208_vm11, %v7207_v17 }
0x131f   :  { %6757 = vmatmul.mubr.msk.bf16.vlgmr.msra.gmra.mrb[124].mxu0 %vm630_vm12, %v4392_v23  ;;  %6772 = vmatprep.subr.bf16.mxu1 %v7207_v17 }
0x1320   :  { %6767 = vmatpush3.bf16.xpose.msra.mxu0 %v4499_v28  ;;  %6768 = vmatprep.mubr.msk.bf16.mxu0 %vm7208_vm11, %v7207_v17 }
0x1321   :  { %6778 = vmatprep.subr.bf16.mxu0 %v7207_v17 }
0x1325   :  { %6763 = vmatmul.mubr.msk.bf16.vlgmr.msra.gmra.mrb[136].mxu1 %vm630_vm12, %v4442_v42 }
0x1326   :  { %6773 = vmatpush3.bf16.msra.mxu1 %v4659_v16  ;;  %6774 = vmatprep.mubr.msk.bf16.mxu1 %vm7208_vm11, %v7207_v17 }
0x1327   :  { %6769 = vmatmul.mubr.msk.bf16.vlgmr.msra.gmra.mrb[128].mxu0 %vm630_vm12, %v4492_v37  ;;  %6784 = vmatprep.subr.bf16.mxu1 %v7207_v17 }
0x1328   :  { %6780 = vmatprep.mubr.msk.bf16.mxu0 %vm7208_vm11, %v7207_v17 }
0x1367   :  { %v8535_v5 = vpop.f32.mrb[108].mxu1 }
0x1368   :  { %v6680_v62 = vpop.f32.mrb[109].mxu1 }
0x1369   :  { %v3802_v60 = vpop.f32.mrb[110].mxu1  ;;  %v8537_v25 = vpop.f32.mrb[100].mxu0 }
0x136a   :  { %v6681_v19 = vpop.f32.mrb[111].mxu1  ;;  %v6686_v46 = vpop.f32.mrb[101].mxu0 }
0x136b   :  { %v3850_v29 = vpop.f32.mrb[102].mxu0 }
0x136c   :  { %v6687_v63 = vpop.f32.mrb[103].mxu0 }
0x136f   :  { %v8539_v55 = vpop.f32.mrb[112].mxu1 }
0x1370   :  { %v6692_v41 = vpop.f32.mrb[113].mxu1 }
0x1371   :  { %v3898_v31 = vpop.f32.mrb[114].mxu1 }
0x1372   :  { %v6693_v7 = vpop.f32.mrb[115].mxu1 }
0x1373   :  { %v8541_v40 = vpop.f32.mrb[104].mxu0 }
0x1374   :  { %v6698_v56 = vpop.f32.mrb[105].mxu0 }
0x1375   :  { %v3946_v36 = vpop.f32.mrb[106].mxu0 }
0x1376   :  { %v6699_v47 = vpop.f32.mrb[107].mxu0 }
0x13a3   :  { %v8543_v10 = vpop.f32.mrb[116].mxu1 }
0x13a4   :  { %v6704_v4 = vpop.f32.mrb[117].mxu1 }
0x13a5   :  { %v3994_v58 = vpop.f32.mrb[118].mxu1  ;;  %v8545_v35 = vpop.f32.mrb[108].mxu0 }
0x13a6   :  { %v6705_v0 = vpop.f32.mrb[119].mxu1  ;;  %v6710_v33 = vpop.f32.mrb[109].mxu0 }
0x13a7   :  { %v4042_v18 = vpop.f32.mrb[110].mxu0 }
0x13a8   :  { %v6711_v50 = vpop.f32.mrb[111].mxu0 }
0x13d8   :  { %v8547_v44 = vpop.f32.mrb[120].mxu1 }
0x13d9   :  { %v6716_v27 = vpop.f32.mrb[121].mxu1 }
0x13da   :  { %v4090_v51 = vpop.f32.mrb[122].mxu1  ;;  %v8549_v39 = vpop.f32.mrb[112].mxu0 }
0x13db   :  { %v6717_v23 = vpop.f32.mrb[123].mxu1  ;;  %v6722_v30 = vpop.f32.mrb[113].mxu0 }
0x13dc   :  { %v4138_v12 = vpop.f32.mrb[114].mxu0 }
0x13dd   :  { %v6723_v61 = vpop.f32.mrb[115].mxu0 }
0x13e0   :  { %v4185_v53 = vpop.f32.mrb[124].mxu1 }
0x13e1   :  { %v4541_v8 = vmul.f32 0.25, %v4185_v53  ;;  %v6728_v37 = vpop.f32.mrb[125].mxu1 }
0x13e2   :  { %v4188_v48 = vpop.f32.mrb[126].mxu1  ;;  %v4235_v28 = vpop.f32.mrb[116].mxu0 }
0x13e3   :  { %v8552_v13 = vadd.f32 %v4541_v8, %v7611_v2  ;;  %v4542_v42 = vmul.f32 0.25, %v4235_v28  ;;  %v6729_v16 = vpop.f32.mrb[127].mxu1  ;;  %v6734_v62 = vpop.f32.mrb[117].mxu0 }
0x13e4   :  { %v4238_v60 = vpop.f32.mrb[118].mxu0 }
0x13e5   :  { %v8555_v19 = vadd.f32 %v4542_v42, %v7622_v22  ;;  %v6735_v46 = vpop.f32.mrb[119].mxu0  ;;  %v4557_v29 = vsel %vm1036_vm14, %v8552_v13, -inf }
0x13e6   :  { %4558 = vmax.xlane.f32.xlu0 %v4557_v29 }
0x13e7   :  { %v4560_v63 = vsel %vm1036_vm14, %v8555_v19, -inf }
0x13e8   :  { %4561 = vmax.xlane.f32.xlu1 %v4560_v63  ;;  %v4285_v41 = vpop.f32.mrb[128].mxu1 }
0x13e9   :  { %v4543_v31 = vmul.f32 0.25, %v4285_v41  ;;  %v6740_v2 = vpop.f32.mrb[129].mxu1 }
0x13ea   :  { %v4288_v7 = vpop.f32.mrb[130].mxu1  ;;  %v4335_v56 = vpop.f32.mrb[120].mxu0 }
0x13eb   :  { %v4551_v36 = vadd.f32 %v4543_v31, %v7638_v52  ;;  %v4544_v47 = vmul.f32 0.25, %v4335_v56  ;;  %v6741_v4 = vpop.f32.mrb[131].mxu1  ;;  %v6746_v22 = vpop.f32.mrb[121].mxu0 }
0x13ec   :  { %v4338_v58 = vpop.f32.mrb[122].mxu0 }
0x13ed   :  { %v4552_v0 = vadd.f32 %v4544_v47, %v7619_v20  ;;  %v6747_v33 = vpop.f32.mrb[123].mxu0  ;;  %v4563_v18 = vsel %vm1036_vm14, %v4551_v36, -inf }
0x13ee   :  { %4564 = vmax.xlane.f32.xlu0 %v4563_v18 }
0x13ef   :  { %v4566_v23 = vsel %vm1036_vm14, %v4552_v0, -inf }
0x13f0   :  { %v4385_v50 = vpop.f32.mrb[132].mxu1 }
0x13f1   :  { %v4545_v27 = vmul.f32 0.25, %v4385_v50  ;;  %v6752_v51 = vpop.f32.mrb[133].mxu1 }
0x13f2   :  { %v4435_v30 = vpop.f32.mrb[124].mxu0  ;;  %4567 = vmax.xlane.f32.xlu0 %v4566_v23  ;;  %v4388_v12 = vpop.f32.mrb[134].mxu1 }
0x13f3   :  { %v8566_v52 = vadd.f32 %v4545_v27, %v7658_v38  ;;  %v4546_v61 = vmul.f32 0.25, %v4435_v30  ;;  %v6753_v53 = vpop.f32.mrb[135].mxu1  ;;  %v6758_v8 = vpop.f32.mrb[125].mxu0 }
0x13f4   :  { %v4438_v37 = vpop.f32.mrb[126].mxu0 }
0x13f5   :  { %v8569_v20 = vadd.f32 %v4546_v61, %v7635_v45  ;;  %v6759_v48 = vpop.f32.mrb[127].mxu0  ;;  %v4569_v28 = vsel %vm1036_vm14, %v8566_v52, -inf }
0x13f6   :  { %4570 = vmax.xlane.f32.xlu1 %v4569_v28 }
0x13f7   :  { %v4572_v42 = vsel %vm1036_vm14, %v8569_v20, -inf }
0x13f8   :  { %4573 = vmax.xlane.f32.xlu0 %v4572_v42  ;;  %v4485_v16 = vpop.f32.mrb[136].mxu1 }
0x13f9   :  { %v4547_v62 = vmul.f32 0.25, %v4485_v16  ;;  %v6764_v38 = vpop.f32.mrb[137].mxu1 }
0x13fa   :  { %v4488_v60 = vpop.f32.mrb[138].mxu1  ;;  %v4535_v46 = vpop.f32.mrb[128].mxu0 }
0x13fb   :  { %v4555_v29 = vadd.f32 %v4547_v62, %v7608_v59  ;;  %v4548_v63 = vmul.f32 0.25, %v4535_v46  ;;  %v6765_v41 = vpop.f32.mrb[139].mxu1  ;;  %v6770_v45 = vpop.f32.mrb[129].mxu0 }
0x13fc   :  { %v4538_v31 = vpop.f32.mrb[130].mxu0 }
0x13fd   :  { %v4556_v2 = vadd.f32 %v4548_v63, %v7646_v3  ;;  %v6771_v7 = vpop.f32.mrb[131].mxu0  ;;  %v4575_v56 = vsel %vm1036_vm14, %v4555_v29, -inf }
0x13fe   :  { %4576 = vmax.xlane.f32.xlu1 %v4575_v56 }
0x13ff   :  { %v4578_v47 = vsel %vm1036_vm14, %v4556_v2, -inf }
0x1400   :  { %4579 = vmax.xlane.f32.xlu0 %v4578_v47 }
0x140f   :  { %4749 = vrot.lane.b32.xlu1 %v8255_v54, %s7214_s7 }
0x1413   :  { %4797 = vrot.lane.b32.xlu1 %v8261_v43, %s7214_s7 }
0x1416   :  { %4701 = vrot.lane.b32.xlu0 %v8251_v14, %s7214_s7 }
0x1473   :  { %v4559_v59 = vpop.xlane.xlu0 %4558 }
0x1474   :  { %v4581_v4 = vsub.f32 %v8552_v13, %v4559_v59 }
0x1475   :  { %v4562_v3 = vpop.xlane.xlu1 %4561 }
0x1476   :  { %v4589_v22 = vmul.f32 1.442695, %v4581_v4  ;;  %v4582_v58 = vsub.f32 %v8555_v19, %v4562_v3 }
0x1478   :  { %7120 = vpow2.f32 %v4589_v22  ;;  %v4591_v33 = vmul.f32 1.442695, %v4582_v58 }
0x147a   :  { %7122 = vpow2.f32 %v4591_v33 }
0x147b   :  { %v4565_v18 = vpop.xlane.xlu0 %4564 }
0x147c   :  { %v4583_v50 = vsub.f32 %v4551_v36, %v4565_v18 }
0x147e   :  { %v4593_v27 = vmul.f32 1.442695, %v4583_v50 }
0x147f   :  { %v4568_v54 = vpop.xlane.xlu0 %4567 }
0x1480   :  { %7124 = vpow2.f32 %v4593_v27  ;;  %v4584_v51 = vsub.f32 %v4552_v0, %v4568_v54 }
0x1482   :  { %v7121_v43 = vpop.eup %7120  ;;  %v4595_v23 = vmul.f32 1.442695, %v4584_v51 }
0x1483   :  { %v4605_v14 = vsel %vm1036_vm14, %v7121_v43, 0.0  ;;  %v4571_v48 = vpop.xlane.xlu1 %4570 }
0x1484   :  { %v7123_v30 = vpop.eup %7122  ;;  %7126 = vpow2.f32 %v4595_v23  ;;  %4606 = vadd.xlane.f32.xlu1 %v4605_v14  ;;  %v4585_v28 = vsub.f32 %v8566_v52, %v4571_v48 }
0x1485   :  { %v4608_v13 = vsel %vm1036_vm14, %v7123_v30, 0.0  ;;  %v4574_v19 = vpop.xlane.xlu0 %4573 }
0x1486   :  { %4609 = vadd.xlane.f32.xlu0 %v4608_v13  ;;  %v4586_v16 = vsub.f32 %v8569_v20, %v4574_v19  ;;  %v4597_v62 = vmul.f32 1.442695, %v4585_v28 }
0x1488   :  { %v4599_v60 = vmul.f32 1.442695, %v4586_v16  ;;  %7128 = vpow2.f32 %v4597_v62 }
0x148a   :  { %v8589_v12 = vpop.eup %7124  ;;  %7130 = vpow2.f32 %v4599_v60 }
0x148b   :  { %v4611_v36 = vsel %vm1036_vm14, %v8589_v12, 0.0  ;;  %v4577_v42 = vpop.xlane.xlu1 %4576 }
0x148c   :  { %4612 = vadd.xlane.f32.xlu1 %v4611_v36  ;;  %v4587_v38 = vsub.f32 %v4555_v29, %v4577_v42 }
0x148d   :  { %v4580_v61 = vpop.xlane.xlu0 %4579 }
0x148e   :  { %v8593_v53 = vpop.eup %7126  ;;  %v4601_v46 = vmul.f32 1.442695, %v4587_v38  ;;  %v4588_v63 = vsub.f32 %v4556_v2, %v4580_v61 }
0x148f   :  { %v4614_v0 = vsel %vm1036_vm14, %v8593_v53, 0.0  ;;  %v4750_v7 = vpop.permute.xlu1 %4749 }
0x1490   :  { %4615 = vadd.xlane.f32.xlu0 %v4614_v0  ;;  %7132 = vpow2.f32 %v4601_v46  ;;  %v4603_v41 = vmul.f32 1.442695, %v4588_v63 }
0x1491   :  { %v4702_v8 = vpop.permute.xlu0 %4701 }
0x1492   :  { %v4707_v37 = vsel %vm1138_vm13, %v4702_v8, 0  ;;  %7134 = vpow2.f32 %v4603_v41 }
0x1493   :  { %6779 = vmatpush3.bf16.msra.mxu0 %v4707_v37  ;;  %v4798_v56 = vpop.permute.xlu1 %4797 }
0x1494   :  { %6790 = vmatprep.subr.bf16.mxu0 %v7207_v17  ;;  %v4803_v27 = vsel %vm1138_vm13, %v4798_v56, 0 }
0x149d   :  { %4893 = vrot.lane.b32.xlu1 %v8267_v15, %s7214_s7  ;;  %v8605_v15 = vpop.eup %7128 }
0x149e   :  { %v8607_v45 = vpop.eup %7130 }
0x149f   :  { %v8611_v52 = vpop.eup %7132  ;;  %v4620_v29 = vsel %vm1036_vm14, %v8607_v45, 0.0 }
0x14a0   :  { %v4623_v20 = vsel %vm1036_vm14, %v8611_v52, 0.0  ;;  %v8617_v31 = vpop.eup %7134 }
0x14a1   :  { %v4626_v2 = vsel %vm1036_vm14, %v8617_v31, 0.0 }
0x14a6   :  { %4845 = vrot.lane.b32.xlu0 %v8265_v32, %s7214_s7  ;;  %v4617_v32 = vsel %vm1036_vm14, %v8605_v15, 0.0 }
0x14c1   :  { %4618 = vadd.xlane.f32.xlu1 %v4617_v32 }
0x14c5   :  { %4624 = vadd.xlane.f32.xlu1 %v4623_v20  ;;  %4621 = vadd.xlane.f32.xlu0 %v4620_v29 }
0x14c9   :  { %4627 = vadd.xlane.f32.xlu0 %v4626_v2 }
0x14d6   :  { %4989 = vrot.lane.b32.xlu1 %v8275_v11, %s7214_s7  ;;  %v4755_v11 = vsel %vm1138_vm13, %v4750_v7, 0 }
0x14df   :  { %4941 = vrot.lane.b32.xlu0 %v8271_v49, %s7214_s7 }
0x1511   :  { %v4607_v47 = vpop.xlane.xlu1 %4606 }
0x1512   :  { %7136 = vrcp.f32 %v4607_v47 }
0x1513   :  { %v4610_v59 = vpop.xlane.xlu0 %4609 }
0x1514   :  { %7138 = vrcp.f32 %v4610_v59 }
0x1519   :  { %v4613_v4 = vpop.xlane.xlu1 %4612 }
0x151a   :  { %7140 = vrcp.f32 %v4613_v4 }
0x151c   :  { %v7137_v3 = vpop.eup %7136 }
0x151d   :  { %v4637_v22 = vmul.f32 %v7137_v3, %v7121_v43  ;;  %v4616_v58 = vpop.xlane.xlu0 %4615  ;;  %v4894_v19 = vpop.permute.xlu1 %4893 }
0x151e   :  { %v7139_v33 = vpop.eup %7138  ;;  %7142 = vrcp.f32 %v4616_v58 }
0x151f   :  { %v4638_v18 = vmul.f32 %v7139_v33, %v7123_v30  ;;  %v4645_v50 = vpack.c.bf16 %v4637_v22, %v4637_v22 }
0x1521   :  { %6775 = vmatmul.mubr.msk.bf16.vlgmr.msra.gmra.mrb[140].mxu1 %vm1036_vm14, %v4645_v50  ;;  %v4646_v49 = vpack.c.bf16 %v4638_v18, %v4638_v18  ;;  %v4846_v43 = vpop.permute.xlu0 %4845 }
0x1522   :  { %6785 = vmatpush3.bf16.msra.mxu1 %v4755_v11  ;;  %6786 = vmatprep.mubr.msk.bf16.mxu1 %vm7208_vm11, %v7207_v17  ;;  %v4851_v13 = vsel %vm1138_vm13, %v4846_v43, 0 }
0x1523   :  { %6781 = vmatmul.mubr.msk.bf16.vlgmr.msra.gmra.mrb[132].mxu0 %vm1036_vm14, %v4646_v49  ;;  %6796 = vmatprep.subr.bf16.mxu1 %v7207_v17 }
0x1524   :  { %v7141_v54 = vpop.eup %7140  ;;  %6791 = vmatpush3.bf16.msra.mxu0 %v4803_v27  ;;  %6792 = vmatprep.mubr.msk.bf16.mxu0 %vm7208_vm11, %v7207_v17 }
0x1525   :  { %v4639_v51 = vmul.f32 %v7141_v54, %v8589_v12  ;;  %6802 = vmatprep.subr.bf16.mxu0 %v7207_v17  ;;  %v4899_v12 = vsel %vm1138_vm13, %v4894_v19, 0 }
0x1527   :  { %v4647_v23 = vpack.c.bf16 %v4639_v51, %v4639_v51 }
0x1528   :  { %v7143_v14 = vpop.eup %7142 }
0x1529   :  { %v4640_v30 = vmul.f32 %v7143_v14, %v8593_v53  ;;  %6787 = vmatmul.mubr.msk.bf16.vlgmr.msra.gmra.mrb[144].mxu1 %vm1036_vm14, %v4647_v23 }
0x152a   :  { %6797 = vmatpush3.bf16.msra.mxu1 %v4851_v13  ;;  %6798 = vmatprep.mubr.msk.bf16.mxu1 %vm7208_vm11, %v7207_v17 }
0x152b   :  { %v4648_v36 = vpack.c.bf16 %v4640_v30, %v4640_v30  ;;  %6808 = vmatprep.subr.bf16.mxu1 %v7207_v17 }
0x152d   :  { %6793 = vmatmul.mubr.msk.bf16.vlgmr.msra.gmra.mrb[136].mxu0 %vm1036_vm14, %v4648_v36 }
0x152e   :  { %6803 = vmatpush3.bf16.msra.mxu0 %v4899_v12  ;;  %6804 = vmatprep.mubr.msk.bf16.mxu0 %vm7208_vm11, %v7207_v17 }
0x152f   :  { %6814 = vmatprep.subr.bf16.mxu0 %v7207_v17 }
0x154e   :  { %v4619_v61 = vpop.xlane.xlu1 %4618 }
0x154f   :  { %7144 = vrcp.f32 %v4619_v61 }
0x1552   :  { %v4625_v53 = vpop.xlane.xlu1 %4624  ;;  %v4622_v0 = vpop.xlane.xlu0 %4621 }
0x1553   :  { %7146 = vrcp.f32 %v4625_v53 }
0x1554   :  { %7148 = vrcp.f32 %v4622_v0 }
0x1556   :  { %v4628_v8 = vpop.xlane.xlu0 %4627  ;;  %v4990_v63 = vpop.permute.xlu1 %4989 }
0x1557   :  { %7150 = vrcp.f32 %v4628_v8 }
0x1559   :  { %v7145_v37 = vpop.eup %7144 }
0x155a   :  { %v4641_v48 = vmul.f32 %v7145_v37, %v8605_v15  ;;  %v4942_v28 = vpop.permute.xlu0 %4941  ;;  %v4995_v15 = vsel %vm1138_vm13, %v4990_v63, 0 }
0x155b   :  { %v4947_v38 = vsel %vm1138_vm13, %v4942_v28, 0 }
0x155c   :  { %v4649_v42 = vpack.c.bf16 %v4641_v48, %v4641_v48 }
0x155d   :  { %v7147_v16 = vpop.eup %7146 }
0x155e   :  { %v7149_v62 = vpop.eup %7148  ;;  %6799 = vmatmul.mubr.msk.bf16.vlgmr.msra.gmra.mrb[148].mxu1 %vm1036_vm14, %v4649_v42  ;;  %v4643_v46 = vmul.f32 %v7147_v16, %v8611_v52  ;;  %v6948_v52 = vld [vmem:[%s8925_s9 + $0x10] sm:$0xff]  }
0x155f   :  { %v4642_v60 = vmul.f32 %v7149_v62, %v8607_v45  ;;  %6809 = vmatpush3.bf16.msra.mxu1 %v4947_v38  ;;  %6810 = vmatprep.mubr.msk.bf16.mxu1 %vm7208_vm11, %v7207_v17 }
0x1560   :  { %v4651_v20 = vpack.c.bf16 %v4643_v46, %v4643_v46  ;;  %6820 = vmatprep.subr.bf16.mxu1 %v6948_v52 }
0x1561   :  { %v4650_v41 = vpack.c.bf16 %v4642_v60, %v4642_v60  ;;  %v7151_v32 = vpop.eup %7150 }
0x1562   :  { %v4644_v45 = vmul.f32 %v7151_v32, %v8617_v31  ;;  %v6949_v31 = vld [vmem:[%s8925_s9 + $0x18] sm:$0xff]  }
0x1563   :  { %6805 = vmatmul.mubr.msk.bf16.vlgmr.msra.gmra.mrb[140].mxu0 %vm1036_vm14, %v4650_v41 }
0x1564   :  { %6815 = vmatpush3.bf16.msra.mxu0 %v4995_v15  ;;  %6816 = vmatprep.mubr.msk.bf16.mxu0 %vm7208_vm11, %v7207_v17  ;;  %v4652_v29 = vpack.c.bf16 %v4644_v45, %v4644_v45 }
0x1566   :  { %6811 = vmatmul.mubr.msk.bf16.vlgmr.msra.gmra.mrb[152].mxu1 %vm1036_vm14, %v4651_v20 }
0x1567   :  { %6821 = vmatpush3.bf16.msra.mxu1 %v6948_v52 }
0x1568   :  { %6822 = vmatprep.subr.bf16.mxu1 %v6949_v31 }
0x156b   :  { %6817 = vmatmul.mubr.msk.bf16.vlgmr.msra.gmra.mrb[144].mxu0 %vm1036_vm14, %v4652_v29  ;;  %6823 = vmatpush3.bf16.msra.mxu1 %v6949_v31 }
0x15f4   :  { %v4695_v2 = vpop.f32.mrb[140].mxu1 }
0x15f5   :  { %v6776_v7 = vpop.f32.mrb[141].mxu1 }
0x15f6   :  { %v4698_v56 = vpop.f32.mrb[142].mxu1  ;;  %v4743_v47 = vpop.f32.mrb[132].mxu0 }
0x15f7   :  { %v6909_v59 = vpack.i.bf16 %v4743_v47, %v4695_v2  ;;  %v6777_v4 = vpop.f32.mrb[143].mxu1  ;;  %v6782_v3 = vpop.f32.mrb[133].mxu0 }
0x15f8   :  { %v4746_v22 = vpop.f32.mrb[134].mxu0 }
0x15f9   :  { %6910 = vrot.lane.b32.xlu0 %v6909_v59, %s7215_s25  ;;  %v6783_v58 = vpop.f32.mrb[135].mxu0 }
0x15fc   :  { %v4791_v33 = vpop.f32.mrb[144].mxu1 }
0x15fd   :  { %v6788_v18 = vpop.f32.mrb[145].mxu1 }
0x15fe   :  { %v4794_v50 = vpop.f32.mrb[146].mxu1 }
0x15ff   :  { %v6789_v11 = vpop.f32.mrb[147].mxu1 }
0x1600   :  { %v4839_v49 = vpop.f32.mrb[136].mxu0 }
0x1601   :  { %v6914_v27 = vpack.i.bf16 %v4839_v49, %v4791_v33  ;;  %v6794_v54 = vpop.f32.mrb[137].mxu0 }
0x1602   :  { %v4842_v51 = vpop.f32.mrb[138].mxu0 }
0x1603   :  { %6915 = vrot.lane.b32.xlu1 %v6914_v27, %s7215_s25  ;;  %v6795_v43 = vpop.f32.mrb[139].mxu0 }
0x1631   :  { %v4887_v23 = vpop.f32.mrb[148].mxu1 }
0x1632   :  { %v6800_v14 = vpop.f32.mrb[149].mxu1 }
0x1633   :  { %v4890_v30 = vpop.f32.mrb[150].mxu1 }
0x1634   :  { %v6801_v13 = vpop.f32.mrb[151].mxu1 }
0x1636   :  { %v4935_v19 = vpop.f32.mrb[140].mxu0 }
0x1637   :  { %v6919_v36 = vpack.i.bf16 %v4935_v19, %v4887_v23  ;;  %v6806_v12 = vpop.f32.mrb[141].mxu0 }
0x1638   :  { %v4938_v61 = vpop.f32.mrb[142].mxu0 }
0x1639   :  { %6920 = vrot.lane.b32.xlu0 %v6919_v36, %s7215_s25  ;;  %v6807_v53 = vpop.f32.mrb[143].mxu0  ;;  %v4983_v0 = vpop.f32.mrb[152].mxu1 }
0x163a   :  { %v6812_v8 = vpop.f32.mrb[153].mxu1 }
0x163b   :  { %v4986_v37 = vpop.f32.mrb[154].mxu1 }
0x163c   :  { %v6813_v48 = vpop.f32.mrb[155].mxu1 }
0x163e   :  { %v5031_v28 = vpop.f32.mrb[144].mxu0 }
0x163f   :  { %v6924_v42 = vpack.i.bf16 %v5031_v28, %v4983_v0  ;;  %v6818_v16 = vpop.f32.mrb[145].mxu0 }
0x1640   :  { %v5034_v62 = vpop.f32.mrb[146].mxu0 }
0x1641   :  { %v6819_v38 = vpop.f32.mrb[147].mxu0  ;;  %6925 = vrot.lane.b32.xlu1 %v6924_v42, %s7215_s25 }
0x166b   :  { %v6911_v60 = vpop.permute.xlu0 %6910 }
0x166c   :  { %v6913_v46 = vunpack.i.h.bf16 %v6911_v60  ;;  %v6912_v63 = vunpack.i.l.bf16 %v6911_v60 }
0x166e   :  { %v5070_v41 = vsel %vm630_vm12, %v8537_v25, %v6913_v46  ;;  %v5069_v32 = vsel %vm630_vm12, %v8535_v5, %v6912_v63 }
0x166f   :  { %v5082_v15 = vpack.c.bf16 %v5070_v41, %v5069_v32 }
0x1671   :  { %6824 = vmatprep.mubr.msk.bf16.mxu1 %vm287_vm10, %v5082_v15 }
0x1675   :  { %v6916_v20 = vpop.permute.xlu1 %6915 }
0x1676   :  { %v6918_v45 = vunpack.i.h.bf16 %v6916_v20  ;;  %v6917_v29 = vunpack.i.l.bf16 %v6916_v20 }
0x1678   :  { %v5072_v52 = vsel %vm630_vm12, %v8541_v40, %v6918_v45  ;;  %v5071_v2 = vsel %vm630_vm12, %v8539_v55, %v6917_v29 }
0x1679   :  { %v5083_v7 = vpack.c.bf16 %v5072_v52, %v5071_v2 }
0x167b   :  { %6825 = vmatmul.mubr.msk.bf16.vlgmr.msra.gmra.mrb[156].mxu1 %vm287_vm10, %v5083_v7 }
0x16ab   :  { %v6921_v56 = vpop.permute.xlu0 %6920 }
0x16ac   :  { %v6923_v25 = vunpack.i.h.bf16 %v6921_v56  ;;  %v6922_v47 = vunpack.i.l.bf16 %v6921_v56 }
0x16ae   :  { %v5074_v5 = vsel %vm630_vm12, %v8545_v35, %v6923_v25  ;;  %v5073_v59 = vsel %vm630_vm12, %v8543_v10, %v6922_v47  ;;  %v6099_v35 = vld [vmem:[%s8926_s10 + $0x1] ss:$0 sm:$0xff]  ;;  %v6950_v47 = vld [vmem:[%s8927_s13 + $0x10] sm:$0xff]  }
0x16af   :  { %v5084_v4 = vpack.c.bf16 %v5074_v5, %v5073_v59  ;;  %6832 = vmatprep.subr.bf16.mxu0 %v6950_v47  ;;  %v6951_v5 = vld [vmem:[%s8927_s13 + $0x18] sm:$0xff]  }
0x16b0   :  { %6833 = vmatpush3.bf16.msra.mxu0 %v6950_v47 }
0x16b1   :  { %6828 = vmatprep.mubr.msk.bf16.mxu1 %vm287_vm10, %v5084_v4  ;;  %6834 = vmatprep.subr.bf16.mxu0 %v6951_v5 }
0x16b3   :  { %v6926_v3 = vpop.permute.xlu1 %6925 }
0x16b4   :  { %v6928_v40 = vunpack.i.h.bf16 %v6926_v3  ;;  %v6927_v31 = vunpack.i.l.bf16 %v6926_v3  ;;  %6835 = vmatpush3.bf16.msra.mxu0 %v6951_v5 }
0x16b5   :  { %6860 = vmatprep.subr.bf16.mxu0 %v7207_v17 }
0x16b6   :  { %v5076_v55 = vsel %vm630_vm12, %v8549_v39, %v6928_v40  ;;  %v5075_v22 = vsel %vm630_vm12, %v8547_v44, %v6927_v31 }
0x16b7   :  { %v5085_v58 = vpack.c.bf16 %v5076_v55, %v5075_v22 }
0x16b9   :  { %6829 = vmatmul.mubr.msk.bf16.gmra.mrb[160].mxu1 %vm287_vm10, %v5085_v58 }
0x174e   :  { %v6826_v10 = vpop.f32.mrb[156].mxu1 }
0x174f   :  { %v5152_v33 = vpop.f32.mrb[157].mxu1  ;;  %v5161_v18 = vadd.f32 %v6826_v10, %v6099_v35 }
0x1750   :  { %v5153_v50 = vadd.f32 %v6099_v35, %v5152_v33  ;;  %v6827_v11 = vpop.f32.mrb[158].mxu1 }
0x1751   :  { %v5155_v49 = vpop.f32.mrb[159].mxu1  ;;  %v5185_v39 = vadd.f32 %v5161_v18, %v8218_v9  ;;  %v5164_v51 = vadd.f32 %v6827_v11, %v6099_v35 }
0x1752   :  { %v5183_v27 = vadd.f32 %v5153_v50, %v8212_v24  ;;  %v5156_v54 = vadd.f32 %v6099_v35, %v5155_v49 }
0x1753   :  { %v5186_v14 = vadd.f32 %v5164_v51, %v8220_v57  ;;  %v5201_v30 = vsel %vm287_vm10, %v5185_v39, 0.0 }
0x1754   :  { %v5184_v44 = vadd.f32 %v5156_v54, %v8214_v26  ;;  %v5195_v43 = vsel %vm287_vm10, %v5183_v27, 0.0 }
0x1755   :  { %5196 = vadd.xlane.f32.xlu0 %v5195_v43  ;;  %v5204_v13 = vsel %vm287_vm10, %v5186_v14, 0.0 }
0x1756   :  { %v5198_v23 = vsel %vm287_vm10, %v5184_v44, 0.0 }
0x1757   :  { %5199 = vadd.xlane.f32.xlu1 %v5198_v23 }
0x1759   :  { %5202 = vadd.xlane.f32.xlu0 %v5201_v30 }
0x175d   :  { %5205 = vadd.xlane.f32.xlu0 %v5204_v13 }
0x178c   :  { %v6830_v24 = vpop.f32.mrb[160].mxu1 }
0x178d   :  { %v5168_v19 = vpop.f32.mrb[161].mxu1  ;;  %v5177_v9 = vadd.f32 %v6830_v24, %v6099_v35 }
0x178e   :  { %v5169_v36 = vadd.f32 %v6099_v35, %v5168_v19  ;;  %v6831_v12 = vpop.f32.mrb[162].mxu1 }
0x178f   :  { %v5171_v26 = vpop.f32.mrb[163].mxu1  ;;  %v5180_v53 = vadd.f32 %v6831_v12, %v6099_v35  ;;  %v5189_v8 = vadd.f32 %v5177_v9, %v8236_v6 }
0x1790   :  { %v5187_v61 = vadd.f32 %v5169_v36, %v8229_v34  ;;  %v5172_v0 = vadd.f32 %v6099_v35, %v5171_v26 }
0x1791   :  { %v5190_v48 = vadd.f32 %v5180_v53, %v8239_v21  ;;  %v5213_v42 = vsel %vm287_vm10, %v5189_v8, 0.0 }
0x1792   :  { %v5188_v57 = vadd.f32 %v5172_v0, %v8231_v1  ;;  %v5207_v37 = vsel %vm287_vm10, %v5187_v61, 0.0  ;;  %v6108_v0 = vld [vmem:[%s8928_s11 + $0x1] ss:$0 sm:$0xff] }
0x1793   :  { %5208 = vadd.xlane.f32.xlu1 %v5207_v37  ;;  %v5216_v16 = vsel %vm287_vm10, %v5190_v48, 0.0 }
0x1794   :  { %v5210_v28 = vsel %vm287_vm10, %v5188_v57, 0.0 }
0x1795   :  { %5211 = vadd.xlane.f32.xlu0 %v5210_v28 }
0x1797   :  { %5214 = vadd.xlane.f32.xlu1 %v5213_v42  ;;  %v6109_v42 = vld [vmem:[%s8929_s12 + $0x1] ss:$0 sm:$0xff] }
0x1799   :  { %5217 = vadd.xlane.f32.xlu0 %v5216_v16 }
0x17e2   :  { %v5197_v34 = vpop.xlane.xlu0 %5196 }
0x17e3   :  { %v5219_v62 = vmul.f32 0.03125, %v5197_v34 }
0x17e4   :  { %v5200_v38 = vpop.xlane.xlu1 %5199 }
0x17e5   :  { %v8710_v6 = vsub.f32 %v5183_v27, %v5219_v62  ;;  %v5220_v1 = vmul.f32 0.03125, %v5200_v38 }
0x17e6   :  { %v5203_v60 = vpop.xlane.xlu0 %5202 }
0x17e7   :  { %v8712_v46 = vsub.f32 %v5184_v44, %v5220_v1  ;;  %v5221_v63 = vmul.f32 0.03125, %v5203_v60  ;;  %v5235_v21 = vmul.f32 %v8710_v6, %v8710_v6 }
0x17e9   :  { %v8716_v41 = vsub.f32 %v5185_v39, %v5221_v63  ;;  %v5243_v32 = vsel %vm287_vm10, %v5235_v21, 0.0  ;;  %v5236_v15 = vmul.f32 %v8712_v46, %v8712_v46 }
0x17ea   :  { %5244 = vadd.xlane.f32.xlu1 %v5243_v32  ;;  %v5206_v20 = vpop.xlane.xlu0 %5205 }
0x17eb   :  { %v5222_v45 = vmul.f32 0.03125, %v5206_v20  ;;  %v5246_v29 = vsel %vm287_vm10, %v5236_v15, 0.0  ;;  %v5237_v52 = vmul.f32 %v8716_v41, %v8716_v41 }
0x17ec   :  { %5247 = vadd.xlane.f32.xlu0 %v5246_v29 }
0x17ed   :  { %v8724_v2 = vsub.f32 %v5186_v14, %v5222_v45  ;;  %v5249_v7 = vsel %vm287_vm10, %v5237_v52, 0.0 }
0x17ee   :  { %5250 = vadd.xlane.f32.xlu1 %v5249_v7 }
0x17ef   :  { %v5238_v56 = vmul.f32 %v8724_v2, %v8724_v2 }
0x17f1   :  { %v5252_v25 = vsel %vm287_vm10, %v5238_v56, 0.0 }
0x17f2   :  { %5253 = vadd.xlane.f32.xlu0 %v5252_v25 }
0x1820   :  { %v5209_v59 = vpop.xlane.xlu1 %5208 }
0x1821   :  { %v5223_v4 = vmul.f32 0.03125, %v5209_v59 }
0x1822   :  { %v5212_v3 = vpop.xlane.xlu0 %5211 }
0x1823   :  { %v8737_v40 = vsub.f32 %v5187_v61, %v5223_v4  ;;  %v5224_v31 = vmul.f32 0.03125, %v5212_v3 }
0x1824   :  { %v5215_v55 = vpop.xlane.xlu1 %5214 }
0x1825   :  { %v8739_v22 = vsub.f32 %v5188_v57, %v5224_v31  ;;  %v5225_v58 = vmul.f32 0.03125, %v5215_v55  ;;  %v5239_v35 = vmul.f32 %v8737_v40, %v8737_v40 }
0x1826   :  { %v5218_v10 = vpop.xlane.xlu0 %5217 }
0x1827   :  { %v8743_v33 = vsub.f32 %v5189_v8, %v5225_v58  ;;  %v5226_v18 = vmul.f32 0.03125, %v5218_v10  ;;  %v5255_v50 = vsel %vm287_vm10, %v5239_v35, 0.0  ;;  %v5240_v11 = vmul.f32 %v8739_v22, %v8739_v22 }
0x1828   :  { %5256 = vadd.xlane.f32.xlu1 %v5255_v50 }
0x1829   :  { %v8748_v49 = vsub.f32 %v5190_v48, %v5226_v18  ;;  %v5258_v27 = vsel %vm287_vm10, %v5240_v11, 0.0  ;;  %v5241_v54 = vmul.f32 %v8743_v33, %v8743_v33 }
0x182a   :  { %5259 = vadd.xlane.f32.xlu0 %v5258_v27 }
0x182b   :  { %v5261_v39 = vsel %vm287_vm10, %v5241_v54, 0.0  ;;  %v5242_v51 = vmul.f32 %v8748_v49, %v8748_v49 }
0x182c   :  { %5262 = vadd.xlane.f32.xlu1 %v5261_v39 }
0x182d   :  { %v5264_v44 = vsel %vm287_vm10, %v5242_v51, 0.0 }
0x182e   :  { %5265 = vadd.xlane.f32.xlu0 %v5264_v44 }
0x1877   :  { %v5245_v43 = vpop.xlane.xlu1 %5244 }
0x1878   :  { %v5267_v23 = vmul.f32 0.03125, %v5245_v43  ;;  %v6953_v43 = vld [vmem:[%s8930_s15 + $0x28] sm:$0xff]  }
0x1879   :  { %v5248_v14 = vpop.xlane.xlu0 %5247 }
0x187a   :  { %v5275_v30 = vadd.f32 1e-12, %v5267_v23  ;;  %v5268_v13 = vmul.f32 0.03125, %v5248_v14  ;;  %v6954_v23 = vld [vmem:[%s8930_s15 + $0x30] sm:$0xff]   ;;  %v6955_v14 = vld [vmem:[%s8930_s15 + $0x38] sm:$0xff]  }
0x187b   :  { %v5251_v24 = vpop.xlane.xlu1 %5250 }
0x187c   :  { %7152 = vrsqrt.f32 %v5275_v30  ;;  %v5276_v19 = vadd.f32 1e-12, %v5268_v13  ;;  %v5269_v9 = vmul.f32 0.03125, %v5251_v24  ;;  %v6115_v30 = vld [vmem:[%s8931_s14 + $0x1] ss:$0 sm:$0xff] }
0x187e   :  { %7154 = vrsqrt.f32 %v5276_v19  ;;  %v5277_v36 = vadd.f32 1e-12, %v5269_v9 }
0x187f   :  { %v5254_v12 = vpop.xlane.xlu0 %5253 }
0x1880   :  { %7156 = vrsqrt.f32 %v5277_v36  ;;  %v5270_v26 = vmul.f32 0.03125, %v5254_v12 }
0x1882   :  { %v5278_v61 = vadd.f32 1e-12, %v5270_v26 }
0x1884   :  { %7158 = vrsqrt.f32 %v5278_v61 }
0x1886   :  { %v7153_v53 = vpop.eup %7152 }
0x1887   :  { %v5291_v8 = vmul.f32 %v7153_v53, %v8710_v6 }
0x1888   :  { %v7155_v57 = vpop.eup %7154 }
0x1889   :  { %v5292_v37 = vmul.f32 %v7155_v57, %v8712_v46  ;;  %v5305_v48 = vmul.f32 %v6108_v0, %v5291_v8 }
0x188a   :  { %v7157_v28 = vpop.eup %7156 }
0x188b   :  { %v5293_v16 = vmul.f32 %v7157_v28, %v8716_v41  ;;  %v5306_v34 = vmul.f32 %v6108_v0, %v5292_v37  ;;  %v8766_v62 = vadd.f32 %v6109_v42, %v5305_v48 }
0x188d   :  { %v8768_v38 = vadd.f32 %v6109_v42, %v5306_v34  ;;  %v5307_v60 = vmul.f32 %v6108_v0, %v5293_v16 }
0x188e   :  { %v7159_v1 = vpop.eup %7158 }
0x188f   :  { %v5294_v6 = vmul.f32 %v7159_v1, %v8724_v2  ;;  %v5332_v46 = vpack.c.bf16 %v8768_v38, %v8766_v62  ;;  %v8774_v21 = vadd.f32 %v6109_v42, %v5307_v60 }
0x1891   :  { %v5308_v63 = vmul.f32 %v6108_v0, %v5294_v6  ;;  %6836 = vmatprep.mubr.msk.bf16.mxu0 %vm287_vm10, %v5332_v46 }
0x1893   :  { %v8776_v32 = vadd.f32 %v6109_v42, %v5308_v63 }
0x1895   :  { %v5333_v41 = vpack.c.bf16 %v8776_v32, %v8774_v21 }
0x1897   :  { %6837 = vmatmul.mubr.msk.bf16.vlgmr.msra.gmra.mrb[148].mxu0 %vm287_vm10, %v5333_v41 }
0x18b5   :  { %v5257_v15 = vpop.xlane.xlu1 %5256 }
0x18b6   :  { %v5271_v20 = vmul.f32 0.03125, %v5257_v15 }
0x18b7   :  { %v5260_v45 = vpop.xlane.xlu0 %5259 }
0x18b8   :  { %v5279_v29 = vadd.f32 1e-12, %v5271_v20  ;;  %v5272_v52 = vmul.f32 0.03125, %v5260_v45 }
0x18b9   :  { %v5263_v2 = vpop.xlane.xlu1 %5262 }
0x18ba   :  { %7160 = vrsqrt.f32 %v5279_v29  ;;  %v5280_v7 = vadd.f32 1e-12, %v5272_v52  ;;  %v5273_v56 = vmul.f32 0.03125, %v5263_v2 }
0x18bb   :  { %v5266_v25 = vpop.xlane.xlu0 %5265 }
0x18bc   :  { %7162 = vrsqrt.f32 %v5280_v7  ;;  %v5281_v47 = vadd.f32 1e-12, %v5273_v56  ;;  %v5274_v5 = vmul.f32 0.03125, %v5266_v25 }
0x18be   :  { %7164 = vrsqrt.f32 %v5281_v47  ;;  %v5282_v59 = vadd.f32 1e-12, %v5274_v5 }
0x18c0   :  { %7166 = vrsqrt.f32 %v5282_v59 }
0x18c4   :  { %v7161_v4 = vpop.eup %7160 }
0x18c5   :  { %v5295_v3 = vmul.f32 %v7161_v4, %v8737_v40 }
0x18c6   :  { %v7163_v31 = vpop.eup %7162 }
0x18c7   :  { %v5296_v55 = vmul.f32 %v7163_v31, %v8739_v22  ;;  %v5309_v58 = vmul.f32 %v6108_v0, %v5295_v3 }
0x18c8   :  { %v7165_v35 = vpop.eup %7164 }
0x18c9   :  { %v5297_v10 = vmul.f32 %v7165_v35, %v8743_v33  ;;  %v5310_v18 = vmul.f32 %v6108_v0, %v5296_v55  ;;  %v8785_v27 = vadd.f32 %v6109_v42, %v5309_v58 }
0x18ca   :  { %v7167_v50 = vpop.eup %7166 }
0x18cb   :  { %v5298_v11 = vmul.f32 %v7167_v50, %v8748_v49  ;;  %v8787_v54 = vadd.f32 %v6109_v42, %v5310_v18  ;;  %v5311_v39 = vmul.f32 %v6108_v0, %v5297_v10  ;;  %v6952_v49 = vld [vmem:[%s8930_s15 + $0x20] sm:$0xff]  }
0x18cc   :  { %6844 = vmatprep.subr.bf16.mxu1 %v6952_v49 }
0x18cd   :  { %v5334_v51 = vpack.c.bf16 %v8787_v54, %v8785_v27  ;;  %v5312_v40 = vmul.f32 %v6108_v0, %v5298_v11  ;;  %v8792_v22 = vadd.f32 %v6109_v42, %v5311_v39  ;;  %6845 = vmatpush3.bf16.msra.mxu1 %v6952_v49 }
0x18ce   :  { %6846 = vmatprep.subr.bf16.mxu1 %v6953_v43 }
0x18cf   :  { %6840 = vmatprep.mubr.msk.bf16.mxu0 %vm287_vm10, %v5334_v51  ;;  %v8794_v44 = vadd.f32 %v6109_v42, %v5312_v40 }
0x18d1   :  { %v5335_v33 = vpack.c.bf16 %v8794_v44, %v8792_v22  ;;  %6847 = vmatpush3.bf16.msra.mxu1 %v6953_v43 }
0x18d2   :  { %6848 = vmatprep.subr.bf16.mxu1 %v6954_v23 }
0x18d3   :  { %6841 = vmatmul.mubr.msk.bf16.gmra.mrb[152].mxu0 %vm287_vm10, %v5335_v33 }
0x18d4   :  { %6864 = vmatprep.mubr.msk.bf16.mxu0 %vm7208_vm11, %v7207_v17 }
0x18d5   :  { %6849 = vmatpush3.bf16.msra.mxu1 %v6954_v23 }
0x18d6   :  { %6850 = vmatprep.subr.bf16.mxu1 %v6955_v14 }
0x18d9   :  { %6851 = vmatpush3.bf16.msra.mxu1 %v6955_v14 }
0x196a   :  { %v6838_v13 = vpop.f32.mrb[148].mxu0 }
0x196b   :  { %v5411_v24 = vadd.f32 %v6838_v13, %v6115_v30  ;;  %v5402_v19 = vpop.f32.mrb[149].mxu0 }
0x196c   :  { %v5403_v9 = vadd.f32 %v6115_v30, %v5402_v19  ;;  %v6839_v36 = vpop.f32.mrb[150].mxu0 }
0x196d   :  { %v5435_v12 = vmul.f32 %v5411_v24, %v5411_v24  ;;  %v5414_v26 = vadd.f32 %v6839_v36, %v6115_v30  ;;  %v5405_v61 = vpop.f32.mrb[151].mxu0 }
0x196e   :  { %v5433_v53 = vmul.f32 %v5403_v9, %v5403_v9  ;;  %v5406_v0 = vadd.f32 %v6115_v30, %v5405_v61 }
0x196f   :  { %v5443_v8 = vmul.f32 %v5435_v12, %v5411_v24  ;;  %v5436_v57 = vmul.f32 %v5414_v26, %v5414_v26 }
0x1970   :  { %v5441_v37 = vmul.f32 %v5433_v53, %v5403_v9  ;;  %v5434_v48 = vmul.f32 %v5406_v0, %v5406_v0 }
0x1971   :  { %v5451_v28 = vmul.f32 0.044715, %v5443_v8  ;;  %v5444_v42 = vmul.f32 %v5436_v57, %v5414_v26 }
0x1972   :  { %v5449_v16 = vmul.f32 0.044715, %v5441_v37  ;;  %v5442_v34 = vmul.f32 %v5434_v48, %v5406_v0 }
0x1973   :  { %v5459_v1 = vadd.f32 %v5451_v28, %v5411_v24  ;;  %v5452_v60 = vmul.f32 0.044715, %v5444_v42 }
0x1974   :  { %v5457_v6 = vadd.f32 %v5449_v16, %v5403_v9  ;;  %v5450_v46 = vmul.f32 0.044715, %v5442_v34 }
0x1975   :  { %v5467_v63 = vmul.f32 0.7978846, %v5459_v1  ;;  %v5460_v41 = vadd.f32 %v5452_v60, %v5414_v26 }
0x1976   :  { %v5465_v15 = vmul.f32 0.7978846, %v5457_v6  ;;  %v5458_v20 = vadd.f32 %v5450_v46, %v5406_v0 }
0x1977   :  { %7168 = vtanh.f32 %v5467_v63  ;;  %v5468_v45 = vmul.f32 0.7978846, %v5460_v41 }
0x1978   :  { %7170 = vtanh.f32 %v5465_v15  ;;  %v5466_v29 = vmul.f32 0.7978846, %v5458_v20 }
0x1979   :  { %7172 = vtanh.f32 %v5468_v45 }
0x197a   :  { %7174 = vtanh.f32 %v5466_v29 }
0x1981   :  { %v7169_v52 = vpop.eup %7168 }
0x1982   :  { %v7171_v2 = vpop.eup %7170  ;;  %v5483_v7 = vadd.f32 1.0, %v7169_v52 }
0x1983   :  { %v7173_v56 = vpop.eup %7172  ;;  %v5481_v25 = vadd.f32 1.0, %v7171_v2 }
0x1984   :  { %v7175_v47 = vpop.eup %7174  ;;  %v5491_v5 = vmul.f32 0.5, %v5483_v7  ;;  %v5484_v59 = vadd.f32 1.0, %v7173_v56 }
0x1985   :  { %v5489_v4 = vmul.f32 0.5, %v5481_v25  ;;  %v5482_v3 = vadd.f32 1.0, %v7175_v47 }
0x1986   :  { %v5492_v31 = vmul.f32 0.5, %v5484_v59  ;;  %v5499_v58 = vmul.f32 %v5491_v5, %v5411_v24 }
0x1987   :  { %v5490_v55 = vmul.f32 0.5, %v5482_v3  ;;  %v5497_v10 = vmul.f32 %v5489_v4, %v5403_v9  ;;  %v6131_v3 = vld [vmem:[%s8932_s16 + $0x1] ss:$0 sm:$0xff] }
0x1988   :  { %v5500_v35 = vmul.f32 %v5492_v31, %v5414_v26 }
0x1989   :  { %v5498_v18 = vmul.f32 %v5490_v55, %v5406_v0 }
0x198a   :  { %v5515_v50 = vpack.c.bf16 %v5500_v35, %v5499_v58 }
0x198b   :  { %v5514_v11 = vpack.c.bf16 %v5498_v18, %v5497_v10 }
0x198d   :  { %6852 = vmatprep.mubr.msk.bf16.mxu1 %vm2919_vm15, %v5514_v11 }
0x198e   :  { %6853 = vmatmul.mubr.msk.bf16.vlgmr.msra.gmra.mrb[164].mxu1 %vm2919_vm15, %v5515_v50 }
0x19a6   :  { %v6842_v39 = vpop.f32.mrb[152].mxu0 }
0x19a7   :  { %v5427_v51 = vadd.f32 %v6842_v39, %v6115_v30  ;;  %v5418_v40 = vpop.f32.mrb[153].mxu0 }
0x19a8   :  { %v5419_v33 = vadd.f32 %v6115_v30, %v5418_v40  ;;  %v6843_v49 = vpop.f32.mrb[154].mxu0 }
0x19a9   :  { %v5439_v43 = vmul.f32 %v5427_v51, %v5427_v51  ;;  %v5430_v23 = vadd.f32 %v6843_v49, %v6115_v30  ;;  %v5421_v14 = vpop.f32.mrb[155].mxu0 }
0x19aa   :  { %v5437_v13 = vmul.f32 %v5419_v33, %v5419_v33  ;;  %v5422_v19 = vadd.f32 %v6115_v30, %v5421_v14 }
0x19ab   :  { %v5447_v24 = vmul.f32 %v5439_v43, %v5427_v51  ;;  %v5440_v36 = vmul.f32 %v5430_v23, %v5430_v23 }
0x19ac   :  { %v5445_v9 = vmul.f32 %v5437_v13, %v5419_v33  ;;  %v5438_v12 = vmul.f32 %v5422_v19, %v5422_v19 }
0x19ad   :  { %v5455_v26 = vmul.f32 0.044715, %v5447_v24  ;;  %v5448_v61 = vmul.f32 %v5440_v36, %v5430_v23 }
0x19ae   :  { %v5453_v53 = vmul.f32 0.044715, %v5445_v9  ;;  %v5446_v0 = vmul.f32 %v5438_v12, %v5422_v19 }
0x19af   :  { %v5463_v8 = vadd.f32 %v5455_v26, %v5427_v51  ;;  %v5456_v57 = vmul.f32 0.044715, %v5448_v61 }
0x19b0   :  { %v5461_v37 = vadd.f32 %v5453_v53, %v5419_v33  ;;  %v5454_v48 = vmul.f32 0.044715, %v5446_v0 }
0x19b1   :  { %v5471_v28 = vmul.f32 0.7978846, %v5463_v8  ;;  %v5464_v42 = vadd.f32 %v5456_v57, %v5430_v23 }
0x19b2   :  { %v5469_v16 = vmul.f32 0.7978846, %v5461_v37  ;;  %v5462_v34 = vadd.f32 %v5454_v48, %v5422_v19 }
0x19b3   :  { %7176 = vtanh.f32 %v5471_v28  ;;  %v5472_v1 = vmul.f32 0.7978846, %v5464_v42 }
0x19b4   :  { %7178 = vtanh.f32 %v5469_v16  ;;  %v5470_v30 = vmul.f32 0.7978846, %v5462_v34 }
0x19b5   :  { %7180 = vtanh.f32 %v5472_v1 }
0x19b6   :  { %7182 = vtanh.f32 %v5470_v30 }
0x19bd   :  { %v7177_v60 = vpop.eup %7176 }
0x19be   :  { %v7179_v6 = vpop.eup %7178  ;;  %v5487_v46 = vadd.f32 1.0, %v7177_v60 }
0x19bf   :  { %v7181_v63 = vpop.eup %7180  ;;  %v5485_v41 = vadd.f32 1.0, %v7179_v6 }
0x19c0   :  { %v7183_v15 = vpop.eup %7182  ;;  %v5495_v20 = vmul.f32 0.5, %v5487_v46  ;;  %v5488_v45 = vadd.f32 1.0, %v7181_v63 }
0x19c1   :  { %v5493_v29 = vmul.f32 0.5, %v5485_v41  ;;  %v5486_v52 = vadd.f32 1.0, %v7183_v15 }
0x19c2   :  { %v5496_v2 = vmul.f32 0.5, %v5488_v45  ;;  %v5503_v56 = vmul.f32 %v5495_v20, %v5427_v51 }
0x19c3   :  { %v5494_v7 = vmul.f32 0.5, %v5486_v52  ;;  %v5501_v47 = vmul.f32 %v5493_v29, %v5419_v33 }
0x19c4   :  { %v5504_v25 = vmul.f32 %v5496_v2, %v5430_v23 }
0x19c5   :  { %v5502_v5 = vmul.f32 %v5494_v7, %v5422_v19 }
0x19c6   :  { %v5517_v59 = vpack.c.bf16 %v5504_v25, %v5503_v56 }
0x19c7   :  { %v5516_v4 = vpack.c.bf16 %v5502_v5, %v5501_v47 }
0x19c9   :  { %6856 = vmatprep.mubr.msk.bf16.mxu1 %vm2919_vm15, %v5516_v4 }
0x19ca   :  { %6857 = vmatmul.mubr.msk.bf16.gmra.mrb[168].mxu1 %vm2919_vm15, %v5517_v59 }
0x1a61   :  { %v6854_v31 = vpop.f32.mrb[164].mxu1 }
0x1a62   :  { %v5605_v55 = vadd.f32 %v6854_v31, %v6131_v3  ;;  %v5596_v58 = vpop.f32.mrb[165].mxu1 }
0x1a63   :  { %v5597_v35 = vadd.f32 %v6131_v3, %v5596_v58  ;;  %v6855_v10 = vpop.f32.mrb[166].mxu1 }
0x1a64   :  { %v5629_v18 = vadd.f32 %v5605_v55, %v8774_v21  ;;  %v5608_v50 = vadd.f32 %v6855_v10, %v6131_v3  ;;  %v5599_v11 = vpop.f32.mrb[167].mxu1 }
0x1a65   :  { %v5627_v39 = vadd.f32 %v5597_v35, %v8766_v62  ;;  %v5600_v51 = vadd.f32 %v6131_v3, %v5599_v11 }
0x1a66   :  { %v5630_v40 = vadd.f32 %v5608_v50, %v8776_v32  ;;  %v5645_v33 = vsel %vm287_vm10, %v5629_v18, 0.0 }
0x1a67   :  { %v5628_v49 = vadd.f32 %v5600_v51, %v8768_v38  ;;  %5646 = vadd.xlane.f32.xlu0 %v5645_v33  ;;  %v5639_v43 = vsel %vm287_vm10, %v5627_v39, 0.0  ;;  %v6956_v51 = vld [vmem:[%s8935_s19] sm:$0xff]  }
0x1a68   :  { %5640 = vadd.xlane.f32.xlu1 %v5639_v43  ;;  %v5648_v23 = vsel %vm287_vm10, %v5630_v40, 0.0  ;;  %6861 = vmatpush3.bf16.msra.mxu0 %v6956_v51 }
0x1a69   :  { %v5642_v21 = vsel %vm287_vm10, %v5628_v49, 0.0  ;;  %6862 = vmatprep.subr.bf16.mxu0 %v7207_v17 }
0x1a6b   :  { %5649 = vadd.xlane.f32.xlu0 %v5648_v23 }
0x1a6c   :  { %5643 = vadd.xlane.f32.xlu1 %v5642_v21 }
0x1a9d   :  { %v6858_v14 = vpop.f32.mrb[168].mxu1 }
0x1a9e   :  { %v5621_v13 = vadd.f32 %v6858_v14, %v6131_v3  ;;  %v5612_v62 = vpop.f32.mrb[169].mxu1 }
0x1a9f   :  { %v5613_v19 = vadd.f32 %v6131_v3, %v5612_v62  ;;  %v6859_v24 = vpop.f32.mrb[170].mxu1 }
0x1aa0   :  { %v5624_v32 = vadd.f32 %v6859_v24, %v6131_v3  ;;  %v5615_v36 = vpop.f32.mrb[171].mxu1  ;;  %v5633_v12 = vadd.f32 %v5621_v13, %v8792_v22 }
0x1aa1   :  { %v5631_v9 = vadd.f32 %v5613_v19, %v8785_v27  ;;  %v5616_v38 = vadd.f32 %v6131_v3, %v5615_v36 }
0x1aa2   :  { %v5634_v53 = vadd.f32 %v5624_v32, %v8794_v44  ;;  %v5657_v8 = vsel %vm287_vm10, %v5633_v12, 0.0 }
0x1aa3   :  { %v5632_v26 = vadd.f32 %v5616_v38, %v8787_v54  ;;  %v5651_v61 = vsel %vm287_vm10, %v5631_v9, 0.0 }
0x1aa4   :  { %5652 = vadd.xlane.f32.xlu1 %v5651_v61  ;;  %v5660_v57 = vsel %vm287_vm10, %v5634_v53, 0.0  ;;  %v6142_v61 = vld [vmem:[%s8933_s17 + $0x1] ss:$0 sm:$0xff] }
0x1aa5   :  { %v5654_v0 = vsel %vm287_vm10, %v5632_v26, 0.0 }
0x1aa6   :  { %5655 = vadd.xlane.f32.xlu0 %v5654_v0 }
0x1aa8   :  { %5658 = vadd.xlane.f32.xlu1 %v5657_v8 }
0x1aaa   :  { %5661 = vadd.xlane.f32.xlu0 %v5660_v57 }
0x1af4   :  { %v5647_v27 = vpop.xlane.xlu0 %5646 }
0x1af5   :  { %v5665_v37 = vmul.f32 0.03125, %v5647_v27  ;;  %v5641_v48 = vpop.xlane.xlu1 %5640 }
0x1af6   :  { %v5663_v22 = vmul.f32 0.03125, %v5641_v48 }
0x1af7   :  { %v8839_v28 = vsub.f32 %v5629_v18, %v5665_v37 }
0x1af8   :  { %v8841_v54 = vsub.f32 %v5627_v39, %v5663_v22  ;;  %v5650_v42 = vpop.xlane.xlu0 %5649  ;;  %v6143_v22 = vld [vmem:[%s8934_s18 + $0x1] ss:$0 sm:$0xff] }
0x1af9   :  { %v5666_v16 = vmul.f32 0.03125, %v5650_v42  ;;  %v5644_v44 = vpop.xlane.xlu1 %5643  ;;  %v5681_v34 = vmul.f32 %v8839_v28, %v8839_v28 }
0x1afa   :  { %v5664_v1 = vmul.f32 0.03125, %v5644_v44  ;;  %v5679_v30 = vmul.f32 %v8841_v54, %v8841_v54 }
0x1afb   :  { %v8847_v60 = vsub.f32 %v5630_v40, %v5666_v16  ;;  %v5693_v6 = vsel %vm287_vm10, %v5681_v34, 0.0  ;;  %v6957_v40 = vld [vmem:[%s8935_s19 + $0x8] sm:$0xff]  }
0x1afc   :  { %v5672_v46 = vsub.f32 %v5628_v49, %v5664_v1  ;;  %5694 = vadd.xlane.f32.xlu0 %v5693_v6  ;;  %v5687_v63 = vsel %vm287_vm10, %v5679_v30, 0.0  ;;  %6863 = vmatpush3.bf16.msra.mxu0 %v6957_v40 }
0x1afd   :  { %5688 = vadd.xlane.f32.xlu1 %v5687_v63  ;;  %v5682_v41 = vmul.f32 %v8847_v60, %v8847_v60  ;;  %6868 = vmatprep.subr.bf16.mxu0 %v7207_v17 }
0x1afe   :  { %v5680_v15 = vmul.f32 %v5672_v46, %v5672_v46 }
0x1aff   :  { %v5696_v20 = vsel %vm287_vm10, %v5682_v41, 0.0 }
0x1b00   :  { %5697 = vadd.xlane.f32.xlu0 %v5696_v20  ;;  %v5690_v45 = vsel %vm287_vm10, %v5680_v15, 0.0 }
0x1b01   :  { %5691 = vadd.xlane.f32.xlu1 %v5690_v45 }
0x1b31   :  { %v5653_v29 = vpop.xlane.xlu1 %5652 }
0x1b32   :  { %v5667_v52 = vmul.f32 0.03125, %v5653_v29 }
0x1b33   :  { %v5656_v2 = vpop.xlane.xlu0 %5655 }
0x1b34   :  { %v8855_v7 = vsub.f32 %v5631_v9, %v5667_v52  ;;  %v5668_v56 = vmul.f32 0.03125, %v5656_v2 }
0x1b35   :  { %v5659_v25 = vpop.xlane.xlu1 %5658 }
0x1b36   :  { %v8857_v47 = vsub.f32 %v5632_v26, %v5668_v56  ;;  %v5669_v5 = vmul.f32 0.03125, %v5659_v25  ;;  %v5683_v59 = vmul.f32 %v8855_v7, %v8855_v7 }
0x1b37   :  { %v5662_v4 = vpop.xlane.xlu0 %5661 }
0x1b38   :  { %v8861_v3 = vsub.f32 %v5633_v12, %v5669_v5  ;;  %v5670_v31 = vmul.f32 0.03125, %v5662_v4  ;;  %v5699_v55 = vsel %vm287_vm10, %v5683_v59, 0.0  ;;  %v5684_v58 = vmul.f32 %v8857_v47, %v8857_v47 }
0x1b39   :  { %5700 = vadd.xlane.f32.xlu1 %v5699_v55 }
0x1b3a   :  { %v8866_v35 = vsub.f32 %v5634_v53, %v5670_v31  ;;  %v5702_v10 = vsel %vm287_vm10, %v5684_v58, 0.0  ;;  %v5685_v18 = vmul.f32 %v8861_v3, %v8861_v3 }
0x1b3b   :  { %5703 = vadd.xlane.f32.xlu0 %v5702_v10 }
0x1b3c   :  { %v5705_v50 = vsel %vm287_vm10, %v5685_v18, 0.0  ;;  %v5686_v11 = vmul.f32 %v8866_v35, %v8866_v35 }
0x1b3d   :  { %5706 = vadd.xlane.f32.xlu1 %v5705_v50 }
0x1b3e   :  { %v5708_v39 = vsel %vm287_vm10, %v5686_v11, 0.0 }
0x1b3f   :  { %5709 = vadd.xlane.f32.xlu0 %v5708_v39 }
0x1b89   :  { %v5695_v43 = vpop.xlane.xlu0 %5694 }
0x1b8a   :  { %v5689_v33 = vpop.xlane.xlu1 %5688  ;;  %v5713_v21 = vmul.f32 0.03125, %v5695_v43 }
0x1b8b   :  { %v5711_v13 = vmul.f32 0.03125, %v5689_v33 }
0x1b8c   :  { %v5721_v19 = vadd.f32 1e-12, %v5713_v21 }
0x1b8d   :  { %v5698_v62 = vpop.xlane.xlu0 %5697  ;;  %v5719_v32 = vadd.f32 1e-12, %v5711_v13 }
0x1b8e   :  { %v5692_v49 = vpop.xlane.xlu1 %5691  ;;  %v5714_v24 = vmul.f32 0.03125, %v5698_v62 }
0x1b8f   :  { %v5712_v23 = vmul.f32 0.03125, %v5692_v49 }
0x1b90   :  { %v5722_v36 = vadd.f32 1e-12, %v5714_v24 }
0x1b91   :  { %v5720_v14 = vadd.f32 1e-12, %v5712_v23 }
0x1b93   :  { %7184 = vrsqrt.f32 %v5720_v14 }
0x1b94   :  { %7186 = vrsqrt.f32 %v5721_v19 }
0x1b95   :  { %7188 = vrsqrt.f32 %v5719_v32 }
0x1b96   :  { %7190 = vrsqrt.f32 %v5722_v36 }
0x1b9d   :  { %v7185_v9 = vpop.eup %7184 }
0x1b9e   :  { %v5736_v38 = vmul.f32 %v7185_v9, %v5672_v46  ;;  %v7187_v12 = vpop.eup %7186 }
0x1b9f   :  { %v7189_v26 = vpop.eup %7188  ;;  %v5737_v53 = vmul.f32 %v7187_v12, %v8839_v28 }
0x1ba0   :  { %v5750_v0 = vmul.f32 %v6142_v61, %v5736_v38  ;;  %v7191_v27 = vpop.eup %7190  ;;  %v5735_v37 = vmul.f32 %v7189_v26, %v8841_v54 }
0x1ba1   :  { %v5751_v44 = vmul.f32 %v6142_v61, %v5737_v53  ;;  %v5738_v30 = vmul.f32 %v7191_v27, %v8847_v60 }
0x1ba2   :  { %v5764_v34 = vadd.f32 %v6143_v22, %v5750_v0  ;;  %v5749_v46 = vmul.f32 %v6142_v61, %v5735_v37 }
0x1ba3   :  { %v5765_v20 = vadd.f32 %v6143_v22, %v5751_v44  ;;  %v5752_v45 = vmul.f32 %v6142_v61, %v5738_v30  ;;  %v6959_v44 = vld [vmem:[%s8936_s21 + $0x8] sm:$0xff]  }
0x1ba4   :  { %v5776_v15 = vpack.c.bf16 %v5764_v34, %v5764_v34  ;;  %v5763_v52 = vadd.f32 %v6143_v22, %v5749_v46  ;;  %v6144_v34 = vld [vmem:[%s8937_s20] ss:$0 sm:$0xff] }
0x1ba5   :  { %v5777_v56 = vpack.c.bf16 %v5765_v20, %v5765_v20  ;;  %v5766_v25 = vadd.f32 %v6143_v22, %v5752_v45 }
0x1ba6   :  { %v5799_v2 = vunpack.c.l.b16 %v5776_v15  ;;  %v5775_v5 = vpack.c.bf16 %v5763_v52, %v5763_v52 }
0x1ba7   :  { %v5800_v55 = vunpack.c.l.b16 %v5777_v56  ;;  %v5778_v58 = vpack.c.bf16 %v5766_v25, %v5766_v25 }
0x1ba8   :  { %v5806_v59 = vrot.slane %v5799_v2, 7  ;;  %v5798_v10 = vunpack.c.l.b16 %v5775_v5 }
0x1ba9   :  { %v5809_v43 = vrot.slane %v5800_v55, 6  ;;  %v5801_v23 = vunpack.c.l.b16 %v5778_v58 }
0x1baa   :  { %v5808_v39 = vsel %vm5807_vm0, %v5806_v59, %v5798_v10 }
0x1bab   :  { %v5811_v62 = vsel %vm5810_vm1, %v5809_v43, %v5808_v39  ;;  %v5812_v36 = vrot.slane %v5801_v23, 5 }
0x1bad   :  { %v5814_v26 = vsel %vm5813_vm2, %v5812_v36, %v5811_v62 }
0x1bc6   :  { %v5701_v8 = vpop.xlane.xlu1 %5700 }
0x1bc7   :  { %v5715_v57 = vmul.f32 0.03125, %v5701_v8 }
0x1bc8   :  { %v5704_v48 = vpop.xlane.xlu0 %5703 }
0x1bc9   :  { %v5723_v42 = vadd.f32 1e-12, %v5715_v57  ;;  %v5716_v16 = vmul.f32 0.03125, %v5704_v48 }
0x1bca   :  { %v5707_v1 = vpop.xlane.xlu1 %5706 }
0x1bcb   :  { %7192 = vrsqrt.f32 %v5723_v42  ;;  %v5724_v28 = vadd.f32 1e-12, %v5716_v16  ;;  %v5717_v6 = vmul.f32 0.03125, %v5707_v1 }
0x1bcc   :  { %v5710_v63 = vpop.xlane.xlu0 %5709 }
0x1bcd   :  { %7194 = vrsqrt.f32 %v5724_v28  ;;  %v5725_v41 = vadd.f32 1e-12, %v5717_v6  ;;  %v5718_v54 = vmul.f32 0.03125, %v5710_v63 }
0x1bcf   :  { %7196 = vrsqrt.f32 %v5725_v41  ;;  %v5726_v29 = vadd.f32 1e-12, %v5718_v54 }
0x1bd1   :  { %7198 = vrsqrt.f32 %v5726_v29 }
0x1bd5   :  { %v7193_v60 = vpop.eup %7192 }
0x1bd6   :  { %v5739_v4 = vmul.f32 %v7193_v60, %v8855_v7 }
0x1bd7   :  { %v7195_v31 = vpop.eup %7194 }
0x1bd8   :  { %v5753_v18 = vmul.f32 %v6142_v61, %v5739_v4  ;;  %v5740_v50 = vmul.f32 %v7195_v31, %v8857_v47 }
0x1bd9   :  { %v7197_v11 = vpop.eup %7196 }
0x1bda   :  { %v5767_v51 = vadd.f32 %v6143_v22, %v5753_v18  ;;  %v5754_v40 = vmul.f32 %v6142_v61, %v5740_v50  ;;  %v5741_v33 = vmul.f32 %v7197_v11, %v8861_v3 }
0x1bdb   :  { %v7199_v49 = vpop.eup %7198 }
0x1bdc   :  { %v5779_v21 = vpack.c.bf16 %v5767_v51, %v5767_v51  ;;  %v5768_v7 = vadd.f32 %v6143_v22, %v5754_v40  ;;  %v5755_v14 = vmul.f32 %v6142_v61, %v5741_v33  ;;  %v5742_v13 = vmul.f32 %v7199_v49, %v8866_v35 }
0x1bde   :  { %v5802_v19 = vunpack.c.l.b16 %v5779_v21  ;;  %v5780_v24 = vpack.c.bf16 %v5768_v7, %v5768_v7  ;;  %v5769_v47 = vadd.f32 %v6143_v22, %v5755_v14  ;;  %v5756_v32 = vmul.f32 %v6142_v61, %v5742_v13 }
0x1be0   :  { %v5815_v9 = vrot.slane %v5802_v19, 4  ;;  %v5803_v38 = vunpack.c.l.b16 %v5780_v24  ;;  %v5781_v12 = vpack.c.bf16 %v5769_v47, %v5769_v47  ;;  %v5770_v3 = vadd.f32 %v6143_v22, %v5756_v32  ;;  %v6958_v22 = vld [vmem:[%s8936_s21] sm:$0xff]  }
0x1be2   :  { %v5817_v53 = vsel %vm5816_vm3, %v5815_v9, %v5814_v26  ;;  %v5818_v0 = vrot.slane %v5803_v38, 3  ;;  %v5804_v8 = vunpack.c.l.b16 %v5781_v12  ;;  %v5782_v57 = vpack.c.bf16 %v5770_v3, %v5770_v3 }
0x1be4   :  { %v5821_v35 = vrot.slane %v5804_v8, 2  ;;  %v5805_v27 = vunpack.c.l.b16 %v5782_v57  ;;  %v5820_v37 = vsel %vm5819_vm4, %v5818_v0, %v5817_v53 }
0x1be6   :  { %v5824_v48 = vrot.slane %v5805_v27, 1  ;;  %v5823_v42 = vsel %vm5822_vm5, %v5821_v35, %v5820_v37 }
0x1be8   :  { %v5826_v61 = vsel %vm5825_vm6, %v5824_v48, %v5823_v42 }
0x1be9   :  { %v5827_v16 = vpack.c.b16 %v5826_v61, %v5826_v61 }
0x1beb   :  { %6865 = vmatmul.mubr.msk.bf16.vlgmr.msra.gmra.mrb[156].mxu0 %vm287_vm10, %v5827_v16 }
0x1bec   :  { %6872 = vmatprep.mubr.msk.bf16.mxu0 %vm7208_vm11, %v7207_v17  ;;  %6869 = vmatpush3.bf16.msra.mxu0 %v6958_v22 }
0x1bed   :  { %6870 = vmatprep.subr.bf16.mxu0 %v7207_v17  ;;  %v6148_v17 = vld [vmem:[%s8938_s22] ss:$0 sm:$0xff] }
0x1bf0   :  { %6871 = vmatpush3.bf16.msra.mxu0 %v6959_v44 }
0x1cbe   :  { %v5877_v1 = vpop.f32.mrb[156].mxu0 }
0x1cbf   :  { %v5878_v30 = vadd.f32 %v6144_v34, %v5877_v1  ;;  %v6866_v28 = vpop.f32.mrb[157].mxu0 }
0x1cc0   :  { %v5880_v6 = vpop.f32.mrb[158].mxu0 }
0x1cc1   :  { %7200 = vtanh.f32 %v5878_v30  ;;  %v6867_v46 = vpop.f32.mrb[159].mxu0 }
0x1ccb   :  { %v7201_v63 = vpop.eup %7200 }
0x1ccc   :  { %v5888_v41 = vpack.c.bf16 %v7201_v63, %v7201_v63 }
0x1cce   :  { %6873 = vmatmul.mubr.msk.bf16.vlgmr.msra.gmra.mrb[160].mxu0 %vm287_vm10, %v5888_v41 }
0x1da1   :  { %v5945_v54 = vpop.f32.mrb[160].mxu0 }
0x1da2   :  { %v5946_v15 = vadd.f32 %v6148_v17, %v5945_v54  ;;  %v6874_v20 = vpop.f32.mrb[161].mxu0 }
0x1da3   :  { %v5948_v45 = vpop.f32.mrb[162].mxu0 }
0x1da4   :  { %v6152_v29 = vmul.f32 -1.442695, %v5946_v15  ;;  %v6875_v52 = vpop.f32.mrb[163].mxu0 }
0x1da6   :  { %7202 = vpow2.f32 %v6152_v29 }
0x1db0   :  { %v7203_v2 = vpop.eup %7202 }
0x1db1   :  { %v5954_v56 = vadd.f32 1.0, %v7203_v2 }
0x1db3   :  { %7204 = vrcp.f32 %v5954_v56 }
0x1dbd   :  { %v7205_v25 = vpop.eup %7204 }
0x1dbe   :  { %5957 = vst [vmem:[%s8939_s23] sm:$0xff] %v7205_v25 }

</bundles_post_ra>
